<compile_context>
chip_gen: v5e
topology: v5e:2x2
jax: 0.10.0
libtpu: 0.0.40
codegen_flags: <defaults>
</compile_context>

<pallas_src>
import jax
import jax.numpy as jnp
from jax import lax
from jax.experimental import pallas as pl
from jax.experimental.pallas import tpu as pltpu


NEG_BIG = -1e30  # logit fill for padded (non-existent) classes (safe: logits stay f32)


# ----------------------------------------------------------------------------
# Fused per-source DSCNN -> AvgPool -> Linear -> softmax Pallas kernel
# ----------------------------------------------------------------------------
def _dscnn_kernel(feat_ref, w1_ref, w2_ref, w3_ref, wc_ref, bn_ref, bc_ref,
                  out_ref, y2_ref):
    f32 = jnp.float32
    bf16 = jnp.bfloat16
    Np = feat_ref.shape[0] // 4          # padded batch block (multiple of 8)
    bn = bn_ref[...]                     # (6, 256) f32 packed folded BN scale/shift

    # --- conv1 (1x1, 4 -> 256, bias=False) on the VPU + BN1 + ReLU ------------
    # rows ordered spatial-major: row = p*Np + n, p = h*2 + w of the 2x2 input.
    f = feat_ref[...]                                            # (4*Np, 4) f32
    w1 = w1_ref[...].astype(f32)                                 # (4, 256)
    y1 = (f[:, 0:1] * w1[0:1, :] + f[:, 1:2] * w1[1:2, :]
          + f[:, 2:3] * w1[2:3, :] + f[:, 3:4] * w1[3:4, :])     # (4*Np, 256)
    y1 = jnp.maximum(y1 * bn[0:1, :] + bn[1:2, :], 0.0)

    # --- conv2 (2x2, stride 1, pad 1) + BN2 + ReLU -----------------------------
    # ONE wide matmul: taps packed along output lanes, lane block t = kh*2 + kw.
    p2 = jnp.dot(y1.astype(bf16), w2_ref[...],
                 preferred_element_type=f32)                     # (4*Np, 1024)
    # Route tap partial products to the 3x3 output grid with aligned VPU slice-adds
    # (all slice offsets are multiples of Np=8 sublanes / 256 lanes -> no relayout).
    for oh in range(3):
        for ow in range(3):
            acc = None
            for kh in range(2):
                for kw in range(2):
                    ih, iw = oh + kh - 1, ow + kw - 1
                    if 0 <= ih < 2 and 0 <= iw < 2:
                        p, t = ih * 2 + iw, kh * 2 + kw
                        c = p2[p * Np:(p + 1) * Np, t * 256:(t + 1) * 256]
                        acc = c if acc is None else acc + c
            q = oh * 3 + ow
            y2_ref[q * Np:(q + 1) * Np, :] = jnp.maximum(
                acc * bn[2:3, :] + bn[3:4, :], 0.0)              # (Np, 256)

    # --- conv3 (2x2, valid) + BN3 + ReLU + AvgPool2d(2, stride=1) --------------
    p3 = jnp.dot(y2_ref[...].astype(bf16), w3_ref[...],
                 preferred_element_type=f32)                     # (9*Np, 1024)
    pooled = None
    for oh in range(2):
        for ow in range(2):
            acc = None
            for kh in range(2):
                for kw in range(2):
                    q, t = (oh + kh) * 3 + (ow + kw), kh * 2 + kw
                    c = p3[q * Np:(q + 1) * Np, t * 256:(t + 1) * 256]
                    acc = c if acc is None else acc + c
            a = jnp.maximum(acc * bn[4:5, :] + bn[5:6, :], 0.0)  # (Np, 256)
            pooled = a if pooled is None else pooled + a
    feat2 = pooled * 0.25                                        # AvgPool(2,1): mean of 4

    # --- Linear(256, nc) + softmax; classes padded to 128 lanes ----------------
    logits = jnp.dot(feat2.astype(bf16), wc_ref[...],
                     preferred_element_type=f32) + bc_ref[...]   # (Np, 128) f32
    m = jnp.max(logits, axis=-1, keepdims=True)
    e = jnp.exp(logits - m)
    out_ref[...] = (e / jnp.sum(e, axis=-1, keepdims=True)).astype(out_ref.dtype)


def pack_dscnn_params(spec, num_classes):
    """Fold eval-mode BN (eps=1e-5) into packed scale/shift rows, pack conv taps
    along output lanes, pad the classifier from num_classes to 128 lanes."""
    S = spec["w1"].shape[0]

    def fold(bnd):
        s = bnd["gamma"] * lax.rsqrt(bnd["var"] + 1e-5)
        return s, bnd["beta"] - bnd["mean"] * s

    s1, t1 = fold(spec["bn1"])
    s2, t2 = fold(spec["bn2"])
    s3, t3 = fold(spec["bn3"])
    bn_pack = jnp.stack([s1, t1, s2, t2, s3, t3], axis=1)        # (S, 6, 256) f32

    # wide weights: wide[s, cin, t*256 + cout] = w[s, t, cin, cout], t = kh*2 + kw
    w2_wide = jnp.transpose(spec["w2"], (0, 2, 1, 3)).reshape(S, 256, 1024)
    w3_wide = jnp.transpose(spec["w3"], (0, 2, 1, 3)).reshape(S, 256, 1024)

    nc = num_classes
    wc_pad = jnp.zeros((S, 256, 128), jnp.bfloat16).at[:, :, :nc].set(spec["wc"])
    bc_pad = jnp.full((S, 1, 128), NEG_BIG, jnp.float32).at[:, 0, :nc].set(spec["bc"])
    return dict(w1=spec["w1"], w2_wide=w2_wide, w3_wide=w3_wide,
                wc_pad=wc_pad, bn_pack=bn_pack, bc_pad=bc_pad)


def dscnn_forward(shared_nhwc, kp):
    """shared_nhwc: (N, 2, 2, 4) f32 shared features (channels-last).
    Returns (S, Np, 128) class-padded softmax predictions (slice [:, :N, :nc])."""
    S = kp["w1"].shape[0]
    N = shared_nhwc.shape[0]
    Np = max(8, -(-N // 8) * 8)          # pad batch to a sublane multiple (aligned slices)

    # spatial-major rows (p = h*2+w major, sample minor), zero-pad samples N -> Np
    f = jnp.transpose(shared_nhwc, (1, 2, 0, 3)).reshape(4, N, 4)
    f = jnp.pad(f, ((0, 0), (0, Np - N), (0, 0))).reshape(4 * Np, 4).astype(jnp.float32)

    in_specs = [
        pl.BlockSpec((4 * Np, 4), lambda s: (0, 0)),               # shared features
        pl.BlockSpec((None, 4, 256), lambda s: (s, 0, 0)),         # w1 (cin, cout)
        pl.BlockSpec((None, 256, 1024), lambda s: (s, 0, 0)),      # conv2 wide (taps on lanes)
        pl.BlockSpec((None, 256, 1024), lambda s: (s, 0, 0)),      # conv3 wide (taps on lanes)
        pl.BlockSpec((None, 256, 128), lambda s: (s, 0, 0)),       # classifier (padded)
        pl.BlockSpec((None, 6, 256), lambda s: (s, 0, 0)),         # packed folded BN
        pl.BlockSpec((None, 1, 128), lambda s: (s, 0, 0)),         # padded class bias
    ]
    out_specs = pl.BlockSpec((None, Np, 128), lambda s: (s, 0, 0))

    return pl.pallas_call(
        _dscnn_kernel,
        out_shape=jax.ShapeDtypeStruct((S, Np, 128), jnp.float32),
        grid=(S,),
        in_specs=in_specs,
        out_specs=out_specs,
        scratch_shapes=[pltpu.VMEM((9 * Np, 256), jnp.float32)],   # assembled conv2 output
        compiler_params=pltpu.CompilerParams(dimension_semantics=("parallel",)),
    )(f, kp["w1"], kp["w2_wide"], kp["w3_wide"], kp["wc_pad"], kp["bn_pack"], kp["bc_pad"])


# ----------------------------------------------------------------------------
# Shared ComEEGNet front-end (tiny; plain XLA as recommended by the perf review)
# ----------------------------------------------------------------------------
def bn_fold(bnd, eps):
    s = bnd["gamma"] / jnp.sqrt(bnd["var"] + eps)
    return s, bnd["beta"] - bnd["mean"] * s


def im2col_nhwc(x, kh, kw):
    """(..., H, W, C) -> (..., Ho, Wo, C*kh*kw), patch flattened (C, kh, kw) to match
    torch weight.reshape(Cout, -1)."""
    *lead, H, W, C = x.shape
    Ho, Wo = H - kh + 1, W - kw + 1
    cols = []
    for i in range(kh):
        for j in range(kw):
            cols.append(x[..., i:i + Ho, j:j + Wo, :])
    nl = len(lead)
    p = jnp.stack(cols, axis=0).reshape((kh, kw) + tuple(lead) + (Ho, Wo, C))
    perm = tuple(range(2, 2 + nl + 3)) + (0, 1)          # (*lead, Ho, Wo, C, kh, kw)
    p = jnp.transpose(p, perm)
    return p.reshape(tuple(lead) + (Ho, Wo, C * kh * kw))


def maxpool_nhwc(x, ksize, stride):
    return lax.reduce_window(
        x, -jnp.inf, lax.max,
        window_dimensions=(1,) + ksize + (1,),
        window_strides=(1,) + stride + (1,),
        padding="VALID")


def shared_eegnet(x, p):
    """x: (N, 1, 20, 61) NCHW f32.  Returns (N, 2, 2, 4) channels-last
    (== torch (N, 4, 2, 2))."""
    N, _, H, W = x.shape
    # conv1 (1, 61): kernel width == input width -> plain matmul; conv -> ELU -> BN
    y = x.reshape(N * H, W) @ p["c1_w"].reshape(16, 61).T + p["c1_b"]   # (N*H, 16)
    y = jax.nn.elu(y)
    s, t = bn_fold(p["bn1"], 0.0)            # BatchNorm2d(16, False): eps == 0.0
    y = y * s + t
    # TODO(synk): F.dropout(x, 0.25) is stochastic even in eval; omitted (identity).
    # torch (N,16,H,1).permute(0,3,1,2) -> (N,1,16,H); channels-last with C=1:
    y = y.reshape(N, H, 16).transpose(0, 2, 1)[..., None]               # (N, 16, H, 1)
    y = jnp.pad(y, ((0, 0), (0, 1), (16, 17), (0, 0)))                  # ZeroPad2d((16,17,0,1))
    # conv2 (2, 32), 1 -> 4: conv -> ELU -> BN2
    pat = im2col_nhwc(y, 2, 32)
    y = jnp.einsum("nhwk,kc->nhwc", pat, p["c2_w"].reshape(4, 64).T) + p["c2_b"]
    y = jax.nn.elu(y)
    s, t = bn_fold(p["bn2"], 0.0)
    y = y * s + t
    y = maxpool_nhwc(y, (2, 2), (4, 4))                                 # MaxPool2d(2, 4)
    y = jnp.pad(y, ((0, 0), (4, 3), (2, 1), (0, 0)))                    # ZeroPad2d((2,1,4,3))
    # conv3 (8, 2), 4 -> 4: conv -> ELU -> BN3
    pat = im2col_nhwc(y, 8, 2)
    y = jnp.einsum("nhwk,kc->nhwc", pat, p["c3_w"].reshape(4, 64).T) + p["c3_b"]
    y = jax.nn.elu(y)
    s, t = bn_fold(p["bn3"], 0.0)
    y = y * s + t
    y = maxpool_nhwc(y, (2, 4), (2, 4))                                 # MaxPool2d((2, 4))
    return y                                                            # (N, 2, 2, 4)


# ----------------------------------------------------------------------------
# LAMSDA eval forward
# ----------------------------------------------------------------------------
def lamsda_eval(x, params):
    """Eval branch of LAMSDA.forward: list of per-source softmax predictions."""
    spec = params["spec"]
    nc = spec["nc"]
    S = spec["w1"].shape[0]
    shared = shared_eegnet(x, params["shared"])           # (N, 2, 2, 4) channels-last
    N = shared.shape[0]
    kp = pack_dscnn_params(spec, nc)
    pred_pad = dscnn_forward(shared, kp)                  # (S, Np, 128)
    return [pred_pad[i, :N, :nc] for i in range(S)]


# ----------------------------------------------------------------------------
# Pure-JAX (lax.conv) reference for the fused DSCNN kernel (correctness check)
# ----------------------------------------------------------------------------
def dscnn_ref(shared_nhwc, spec):
    x = jnp.transpose(shared_nhwc, (0, 3, 1, 2)).astype(jnp.float32)    # NCHW (N,4,2,2)
    dn = ("NCHW", "OIHW", "NCHW")
    S = spec["w1"].shape[0]
    preds = []
    for i in range(S):
        w1 = spec["w1"][i].astype(jnp.float32).T.reshape(256, 4, 1, 1)
        w2 = spec["w2"][i].astype(jnp.float32).reshape(2, 2, 256, 256).transpose(3, 2, 0, 1)
        w3 = spec["w3"][i].astype(jnp.float32).reshape(2, 2, 256, 256).transpose(3, 2, 0, 1)

        def bn_relu(y, bnd):
            sc = bnd["gamma"][i] / jnp.sqrt(bnd["var"][i] + 1e-5)
            sh = bnd["beta"][i] - bnd["mean"][i] * sc
            return jnp.maximum(y * sc[None, :, None, None] + sh[None, :, None, None], 0.0)

        y = lax.conv_general_dilated(x, w1, (1, 1), "VALID", dimension_numbers=dn)
        y = bn_relu(y, spec["bn1"])
        y = lax.conv_general_dilated(y, w2, (1, 1), ((1, 1), (1, 1)), dimension_numbers=dn)
        y = bn_relu(y, spec["bn2"])
        y = lax.conv_general_dilated(y, w3, (1, 1), "VALID", dimension_numbers=dn)
        y = bn_relu(y, spec["bn3"])
        feat = jnp.mean(y, axis=(2, 3))                                  # (N, 256)
        logits = feat @ spec["wc"][i].astype(jnp.float32) + spec["bc"][i]
        preds.append(jax.nn.softmax(logits, axis=-1))
    return preds


# ----------------------------------------------------------------------------
# Deterministic synthetic parameters (shapes from the module __init__)
# ----------------------------------------------------------------------------
def init_params(key, num_classes=2, num_source=14):
    ks = iter(jax.random.split(key, 64))

    def nrm(shape, scale=0.1, dtype=jnp.float32):
        return (scale * jax.random.normal(next(ks), shape, jnp.float32)).astype(dtype)

    def bn(shape):
        return dict(
            gamma=jax.random.uniform(next(ks), shape, jnp.float32, 0.5, 1.5),
            beta=nrm(shape),
            mean=nrm(shape),
            var=jax.random.uniform(next(ks), shape, jnp.float32, 0.5, 1.5),
        )

    shared = dict(
        c1_w=nrm((16, 1, 1, 61)), c1_b=nrm((16,)), bn1=bn((16,)),
        c2_w=nrm((4, 1, 2, 32)), c2_b=nrm((4,)), bn2=bn((4,)),
        c3_w=nrm((4, 4, 8, 2)), c3_b=nrm((4,)), bn3=bn((4,)),
    )
    S = num_source
    # DSCNN + classifier weights, generated directly in kernel layout (bf16):
    #   w1[s]          == torch conv1.weight[s].reshape(256, 4).T        (cin, cout)
    #   w2[s, kh*2+kw] == torch conv2.weight[s][:, :, kh, kw].T          (cin, cout)
    #   w3[s, kh*2+kw] == torch conv3.weight[s][:, :, kh, kw].T
    #   wc[s]          == torch cls_List_spec[s].weight.T                (256, nc)
    spec = dict(
        w1=nrm((S, 4, 256), 0.1, jnp.bfloat16),
        w2=nrm((S, 4, 256, 256), 0.03, jnp.bfloat16),
        w3=nrm((S, 4, 256, 256), 0.03, jnp.bfloat16),
        wc=nrm((S, 256, num_classes), 0.1, jnp.bfloat16),
        bc=nrm((S, num_classes)),
        bn1=bn((S, 256)), bn2=bn((S, 256)), bn3=bn((S, 256)),
        nc=num_classes,
    )
    return dict(shared=shared, spec=spec)


if __name__ == "__main__":
    key = jax.random.PRNGKey(0)
    pkey, xkey = jax.random.split(key)
    params = init_params(pkey, num_classes=2, num_source=14)

    # ComEEGNet's conv1 kernel (1, 61) forces input width 61; H=20 yields the
    # sharedNet output (N, 4, 2, 2) that DSCNN(4, 256) / Linear(256, nc) expect.
    x = jax.random.normal(xkey, (2, 1, 20, 61), jnp.float32)    # NCHW

    fwd = jax.jit(lambda inp: lamsda_eval(inp, params))
    preds = jax.block_until_ready(fwd(x))

    assert len(preds) == 14
    assert all(p.shape == (2, 2) for p in preds)
    assert all(bool(jnp.all(jnp.isfinite(p))) for p in preds)
    # each row is a softmax distribution
    assert all(bool(jnp.allclose(jnp.sum(p, axis=1), 1.0, atol=1e-5)) for p in preds)

    # cross-check the fused Pallas DSCNN kernel against a pure-JAX lax.conv reference
    shared = shared_eegnet(x, params["shared"])
    refs = dscnn_ref(shared, params["spec"])
    for p, r in zip(preds, refs):
        assert bool(jnp.allclose(p, r, atol=3e-2)), (p, r)

    print("KERNEL_OK")
</pallas_src>

<mosaic_0001>
module attributes {stable_mosaic.version = 11 : i64} {
  func.func @_dscnn_kernel(%arg0: i32, %arg1: memref<32x4xf32, #tpu.memory_space<vmem>>, %arg2: memref<1x4x256xbf16, #tpu.memory_space<vmem>>, %arg3: memref<1x256x1024xbf16, #tpu.memory_space<vmem>>, %arg4: memref<1x256x1024xbf16, #tpu.memory_space<vmem>>, %arg5: memref<1x256x128xbf16, #tpu.memory_space<vmem>>, %arg6: memref<1x6x256xf32, #tpu.memory_space<vmem>>, %arg7: memref<1x1x128xf32, #tpu.memory_space<vmem>>, %arg8: memref<1x8x128xf32, #tpu.memory_space<vmem>>, %arg9: memref<72x256xf32, #tpu.memory_space<vmem>>) attributes {dimension_semantics = [#tpu.dimension_semantics<parallel>], iteration_bounds = array<i64: 14>, scalar_prefetch = 0 : i64, scratch_operands = 1 : i64, tpu.core_type = #tpu.core_type<tc>, window_params = [{pipeline_mode = #tpu.pipeline_mode<synchronous>, transform_indices = @transform_0, window_bounds = array<i64: 32, 4>}, {transform_indices = @transform_1, window_bounds = array<i64: 1, 4, 256>}, {transform_indices = @transform_2, window_bounds = array<i64: 1, 256, 1024>}, {transform_indices = @transform_3, window_bounds = array<i64: 1, 256, 1024>}, {transform_indices = @transform_4, window_bounds = array<i64: 1, 256, 128>}, {transform_indices = @transform_5, window_bounds = array<i64: 1, 6, 256>}, {transform_indices = @transform_6, window_bounds = array<i64: 1, 1, 128>}, {transform_indices = @transform_7, window_bounds = array<i64: 1, 8, 128>}]} {
    %c0 = arith.constant 0 : index
    %c0_0 = arith.constant 0 : index
    %c0_1 = arith.constant 0 : index
    %0 = vector.load %arg6[%c0, %c0_0, %c0_1] : memref<1x6x256xf32, #tpu.memory_space<vmem>>, vector<1x6x256xf32>
    %1 = vector.shape_cast %0 : vector<1x6x256xf32> to vector<6x256xf32>
    %c0_2 = arith.constant 0 : index
    %c0_3 = arith.constant 0 : index
    %2 = vector.load %arg1[%c0_2, %c0_3] : memref<32x4xf32, #tpu.memory_space<vmem>>, vector<32x4xf32>
    %c0_4 = arith.constant 0 : index
    %c0_5 = arith.constant 0 : index
    %c0_6 = arith.constant 0 : index
    %3 = vector.load %arg2[%c0_4, %c0_5, %c0_6] : memref<1x4x256xbf16, #tpu.memory_space<vmem>>, vector<1x4x256xbf16>
    %4 = vector.shape_cast %3 : vector<1x4x256xbf16> to vector<4x256xbf16>
    %5 = arith.extf %4 : vector<4x256xbf16> to vector<4x256xf32>
    %6 = vector.extract_strided_slice %2 {offsets = [0, 0], sizes = [32, 1], strides = [1, 1]} : vector<32x4xf32> to vector<32x1xf32>
    %7 = vector.extract_strided_slice %5 {offsets = [0, 0], sizes = [1, 256], strides = [1, 1]} : vector<4x256xf32> to vector<1x256xf32>
    %8 = vector.broadcast %6 : vector<32x1xf32> to vector<32x256xf32>
    %9 = vector.broadcast %7 : vector<1x256xf32> to vector<32x256xf32>
    %10 = arith.mulf %8, %9 : vector<32x256xf32>
    %11 = vector.extract_strided_slice %2 {offsets = [0, 1], sizes = [32, 1], strides = [1, 1]} : vector<32x4xf32> to vector<32x1xf32>
    %12 = vector.extract_strided_slice %5 {offsets = [1, 0], sizes = [1, 256], strides = [1, 1]} : vector<4x256xf32> to vector<1x256xf32>
    %13 = vector.broadcast %11 : vector<32x1xf32> to vector<32x256xf32>
    %14 = vector.broadcast %12 : vector<1x256xf32> to vector<32x256xf32>
    %15 = arith.mulf %13, %14 : vector<32x256xf32>
    %16 = arith.addf %10, %15 : vector<32x256xf32>
    %17 = vector.extract_strided_slice %2 {offsets = [0, 2], sizes = [32, 1], strides = [1, 1]} : vector<32x4xf32> to vector<32x1xf32>
    %18 = vector.extract_strided_slice %5 {offsets = [2, 0], sizes = [1, 256], strides = [1, 1]} : vector<4x256xf32> to vector<1x256xf32>
    %19 = vector.broadcast %17 : vector<32x1xf32> to vector<32x256xf32>
    %20 = vector.broadcast %18 : vector<1x256xf32> to vector<32x256xf32>
    %21 = arith.mulf %19, %20 : vector<32x256xf32>
    %22 = arith.addf %16, %21 : vector<32x256xf32>
    %23 = vector.extract_strided_slice %2 {offsets = [0, 3], sizes = [32, 1], strides = [1, 1]} : vector<32x4xf32> to vector<32x1xf32>
    %24 = vector.extract_strided_slice %5 {offsets = [3, 0], sizes = [1, 256], strides = [1, 1]} : vector<4x256xf32> to vector<1x256xf32>
    %25 = vector.broadcast %23 : vector<32x1xf32> to vector<32x256xf32>
    %26 = vector.broadcast %24 : vector<1x256xf32> to vector<32x256xf32>
    %27 = arith.mulf %25, %26 : vector<32x256xf32>
    %28 = arith.addf %22, %27 : vector<32x256xf32>
    %29 = vector.extract_strided_slice %1 {offsets = [0, 0], sizes = [1, 256], strides = [1, 1]} : vector<6x256xf32> to vector<1x256xf32>
    %30 = vector.broadcast %29 : vector<1x256xf32> to vector<32x256xf32>
    %31 = arith.mulf %28, %30 : vector<32x256xf32>
    %32 = vector.extract_strided_slice %1 {offsets = [1, 0], sizes = [1, 256], strides = [1, 1]} : vector<6x256xf32> to vector<1x256xf32>
    %33 = vector.broadcast %32 : vector<1x256xf32> to vector<32x256xf32>
    %34 = arith.addf %31, %33 : vector<32x256xf32>
    %cst = arith.constant 0.000000e+00 : f32
    %35 = vector.broadcast %cst : f32 to vector<32x256xf32>
    %36 = arith.maximumf %34, %35 : vector<32x256xf32>
    %37 = arith.truncf %36 : vector<32x256xf32> to vector<32x256xbf16>
    %c0_7 = arith.constant 0 : index
    %c0_8 = arith.constant 0 : index
    %c0_9 = arith.constant 0 : index
    %38 = vector.load %arg3[%c0_7, %c0_8, %c0_9] : memref<1x256x1024xbf16, #tpu.memory_space<vmem>>, vector<1x256x1024xbf16>
    %39 = vector.shape_cast %38 : vector<1x256x1024xbf16> to vector<256x1024xbf16>
    %cst_10 = arith.constant dense<0.000000e+00> : vector<32x1024xf32>
    %40 = tpu.matmul %37, %39, %cst_10 {dimension_numbers = #tpu.dot_dimension_numbers<[1], [0], [0], [1], [0, 0, 1, 1], [], []>} : vector<32x256xbf16>, vector<256x1024xbf16>, vector<32x1024xf32> -> vector<32x1024xf32>
    %41 = vector.extract_strided_slice %40 {offsets = [0, 768], sizes = [8, 256], strides = [1, 1]} : vector<32x1024xf32> to vector<8x256xf32>
    %42 = vector.extract_strided_slice %1 {offsets = [2, 0], sizes = [1, 256], strides = [1, 1]} : vector<6x256xf32> to vector<1x256xf32>
    %43 = vector.broadcast %42 : vector<1x256xf32> to vector<8x256xf32>
    %44 = arith.mulf %41, %43 : vector<8x256xf32>
    %45 = vector.extract_strided_slice %1 {offsets = [3, 0], sizes = [1, 256], strides = [1, 1]} : vector<6x256xf32> to vector<1x256xf32>
    %46 = vector.broadcast %45 : vector<1x256xf32> to vector<8x256xf32>
    %47 = arith.addf %44, %46 : vector<8x256xf32>
    %cst_11 = arith.constant 0.000000e+00 : f32
    %48 = vector.broadcast %cst_11 : f32 to vector<8x256xf32>
    %49 = arith.maximumf %47, %48 : vector<8x256xf32>
    %c0_12 = arith.constant 0 : index
    %c0_13 = arith.constant 0 : index
    %50 = vector.load %arg9[%c0_12, %c0_13] : memref<72x256xf32, #tpu.memory_space<vmem>>, vector<8x256xf32>
    tpu.vector_store %arg9[%c0_12, %c0_13], %49 {strides = array<i32>} : memref<72x256xf32, #tpu.memory_space<vmem>>, vector<8x256xf32>,
    %51 = vector.extract_strided_slice %40 {offsets = [0, 512], sizes = [8, 256], strides = [1, 1]} : vector<32x1024xf32> to vector<8x256xf32>
    %52 = vector.extract_strided_slice %40 {offsets = [8, 768], sizes = [8, 256], strides = [1, 1]} : vector<32x1024xf32> to vector<8x256xf32>
    %53 = arith.addf %51, %52 : vector<8x256xf32>
    %54 = vector.extract_strided_slice %1 {offsets = [2, 0], sizes = [1, 256], strides = [1, 1]} : vector<6x256xf32> to vector<1x256xf32>
    %55 = vector.broadcast %54 : vector<1x256xf32> to vector<8x256xf32>
    %56 = arith.mulf %53, %55 : vector<8x256xf32>
    %57 = vector.extract_strided_slice %1 {offsets = [3, 0], sizes = [1, 256], strides = [1, 1]} : vector<6x256xf32> to vector<1x256xf32>
    %58 = vector.broadcast %57 : vector<1x256xf32> to vector<8x256xf32>
    %59 = arith.addf %56, %58 : vector<8x256xf32>
    %cst_14 = arith.constant 0.000000e+00 : f32
    %60 = vector.broadcast %cst_14 : f32 to vector<8x256xf32>
    %61 = arith.maximumf %59, %60 : vector<8x256xf32>
    %c8 = arith.constant 8 : index
    %c0_15 = arith.constant 0 : index
    %62 = vector.load %arg9[%c8, %c0_15] : memref<72x256xf32, #tpu.memory_space<vmem>>, vector<8x256xf32>
    tpu.vector_store %arg9[%c8, %c0_15], %61 {strides = array<i32>} : memref<72x256xf32, #tpu.memory_space<vmem>>, vector<8x256xf32>,
    %63 = vector.extract_strided_slice %40 {offsets = [8, 512], sizes = [8, 256], strides = [1, 1]} : vector<32x1024xf32> to vector<8x256xf32>
    %64 = vector.extract_strided_slice %1 {offsets = [2, 0], sizes = [1, 256], strides = [1, 1]} : vector<6x256xf32> to vector<1x256xf32>
    %65 = vector.broadcast %64 : vector<1x256xf32> to vector<8x256xf32>
    %66 = arith.mulf %63, %65 : vector<8x256xf32>
    %67 = vector.extract_strided_slice %1 {offsets = [3, 0], sizes = [1, 256], strides = [1, 1]} : vector<6x256xf32> to vector<1x256xf32>
    %68 = vector.broadcast %67 : vector<1x256xf32> to vector<8x256xf32>
    %69 = arith.addf %66, %68 : vector<8x256xf32>
    %cst_16 = arith.constant 0.000000e+00 : f32
    %70 = vector.broadcast %cst_16 : f32 to vector<8x256xf32>
    %71 = arith.maximumf %69, %70 : vector<8x256xf32>
    %c16 = arith.constant 16 : index
    %c0_17 = arith.constant 0 : index
    %72 = vector.load %arg9[%c16, %c0_17] : memref<72x256xf32, #tpu.memory_space<vmem>>, vector<8x256xf32>
    tpu.vector_store %arg9[%c16, %c0_17], %71 {strides = array<i32>} : memref<72x256xf32, #tpu.memory_space<vmem>>, vector<8x256xf32>,
    %73 = vector.extract_strided_slice %40 {offsets = [0, 256], sizes = [8, 256], strides = [1, 1]} : vector<32x1024xf32> to vector<8x256xf32>
    %74 = vector.extract_strided_slice %40 {offsets = [16, 768], sizes = [8, 256], strides = [1, 1]} : vector<32x1024xf32> to vector<8x256xf32>
    %75 = arith.addf %73, %74 : vector<8x256xf32>
    %76 = vector.extract_strided_slice %1 {offsets = [2, 0], sizes = [1, 256], strides = [1, 1]} : vector<6x256xf32> to vector<1x256xf32>
    %77 = vector.broadcast %76 : vector<1x256xf32> to vector<8x256xf32>
    %78 = arith.mulf %75, %77 : vector<8x256xf32>
    %79 = vector.extract_strided_slice %1 {offsets = [3, 0], sizes = [1, 256], strides = [1, 1]} : vector<6x256xf32> to vector<1x256xf32>
    %80 = vector.broadcast %79 : vector<1x256xf32> to vector<8x256xf32>
    %81 = arith.addf %78, %80 : vector<8x256xf32>
    %cst_18 = arith.constant 0.000000e+00 : f32
    %82 = vector.broadcast %cst_18 : f32 to vector<8x256xf32>
    %83 = arith.maximumf %81, %82 : vector<8x256xf32>
    %c24 = arith.constant 24 : index
    %c0_19 = arith.constant 0 : index
    %84 = vector.load %arg9[%c24, %c0_19] : memref<72x256xf32, #tpu.memory_space<vmem>>, vector<8x256xf32>
    tpu.vector_store %arg9[%c24, %c0_19], %83 {strides = array<i32>} : memref<72x256xf32, #tpu.memory_space<vmem>>, vector<8x256xf32>,
    %85 = vector.extract_strided_slice %40 {offsets = [0, 0], sizes = [8, 256], strides = [1, 1]} : vector<32x1024xf32> to vector<8x256xf32>
    %86 = vector.extract_strided_slice %40 {offsets = [8, 256], sizes = [8, 256], strides = [1, 1]} : vector<32x1024xf32> to vector<8x256xf32>
    %87 = arith.addf %85, %86 : vector<8x256xf32>
    %88 = vector.extract_strided_slice %40 {offsets = [16, 512], sizes = [8, 256], strides = [1, 1]} : vector<32x1024xf32> to vector<8x256xf32>
    %89 = arith.addf %87, %88 : vector<8x256xf32>
    %90 = vector.extract_strided_slice %40 {offsets = [24, 768], sizes = [8, 256], strides = [1, 1]} : vector<32x1024xf32> to vector<8x256xf32>
    %91 = arith.addf %89, %90 : vector<8x256xf32>
    %92 = vector.extract_strided_slice %1 {offsets = [2, 0], sizes = [1, 256], strides = [1, 1]} : vector<6x256xf32> to vector<1x256xf32>
    %93 = vector.broadcast %92 : vector<1x256xf32> to vector<8x256xf32>
    %94 = arith.mulf %91, %93 : vector<8x256xf32>
    %95 = vector.extract_strided_slice %1 {offsets = [3, 0], sizes = [1, 256], strides = [1, 1]} : vector<6x256xf32> to vector<1x256xf32>
    %96 = vector.broadcast %95 : vector<1x256xf32> to vector<8x256xf32>
    %97 = arith.addf %94, %96 : vector<8x256xf32>
    %cst_20 = arith.constant 0.000000e+00 : f32
    %98 = vector.broadcast %cst_20 : f32 to vector<8x256xf32>
    %99 = arith.maximumf %97, %98 : vector<8x256xf32>
    %c32 = arith.constant 32 : index
    %c0_21 = arith.constant 0 : index
    %100 = vector.load %arg9[%c32, %c0_21] : memref<72x256xf32, #tpu.memory_space<vmem>>, vector<8x256xf32>
    tpu.vector_store %arg9[%c32, %c0_21], %99 {strides = array<i32>} : memref<72x256xf32, #tpu.memory_space<vmem>>, vector<8x256xf32>,
    %101 = vector.extract_strided_slice %40 {offsets = [8, 0], sizes = [8, 256], strides = [1, 1]} : vector<32x1024xf32> to vector<8x256xf32>
    %102 = vector.extract_strided_slice %40 {offsets = [24, 512], sizes = [8, 256], strides = [1, 1]} : vector<32x1024xf32> to vector<8x256xf32>
    %103 = arith.addf %101, %102 : vector<8x256xf32>
    %104 = vector.extract_strided_slice %1 {offsets = [2, 0], sizes = [1, 256], strides = [1, 1]} : vector<6x256xf32> to vector<1x256xf32>
    %105 = vector.broadcast %104 : vector<1x256xf32> to vector<8x256xf32>
    %106 = arith.mulf %103, %105 : vector<8x256xf32>
    %107 = vector.extract_strided_slice %1 {offsets = [3, 0], sizes = [1, 256], strides = [1, 1]} : vector<6x256xf32> to vector<1x256xf32>
    %108 = vector.broadcast %107 : vector<1x256xf32> to vector<8x256xf32>
    %109 = arith.addf %106, %108 : vector<8x256xf32>
    %cst_22 = arith.constant 0.000000e+00 : f32
    %110 = vector.broadcast %cst_22 : f32 to vector<8x256xf32>
    %111 = arith.maximumf %109, %110 : vector<8x256xf32>
    %c40 = arith.constant 40 : index
    %c0_23 = arith.constant 0 : index
    %112 = vector.load %arg9[%c40, %c0_23] : memref<72x256xf32, #tpu.memory_space<vmem>>, vector<8x256xf32>
    tpu.vector_store %arg9[%c40, %c0_23], %111 {strides = array<i32>} : memref<72x256xf32, #tpu.memory_space<vmem>>, vector<8x256xf32>,
    %113 = vector.extract_strided_slice %40 {offsets = [16, 256], sizes = [8, 256], strides = [1, 1]} : vector<32x1024xf32> to vector<8x256xf32>
    %114 = vector.extract_strided_slice %1 {offsets = [2, 0], sizes = [1, 256], strides = [1, 1]} : vector<6x256xf32> to vector<1x256xf32>
    %115 = vector.broadcast %114 : vector<1x256xf32> to vector<8x256xf32>
    %116 = arith.mulf %113, %115 : vector<8x256xf32>
    %117 = vector.extract_strided_slice %1 {offsets = [3, 0], sizes = [1, 256], strides = [1, 1]} : vector<6x256xf32> to vector<1x256xf32>
    %118 = vector.broadcast %117 : vector<1x256xf32> to vector<8x256xf32>
    %119 = arith.addf %116, %118 : vector<8x256xf32>
    %cst_24 = arith.constant 0.000000e+00 : f32
    %120 = vector.broadcast %cst_24 : f32 to vector<8x256xf32>
    %121 = arith.maximumf %119, %120 : vector<8x256xf32>
    %c48 = arith.constant 48 : index
    %c0_25 = arith.constant 0 : index
    %122 = vector.load %arg9[%c48, %c0_25] : memref<72x256xf32, #tpu.memory_space<vmem>>, vector<8x256xf32>
    tpu.vector_store %arg9[%c48, %c0_25], %121 {strides = array<i32>} : memref<72x256xf32, #tpu.memory_space<vmem>>, vector<8x256xf32>,
    %123 = vector.extract_strided_slice %40 {offsets = [16, 0], sizes = [8, 256], strides = [1, 1]} : vector<32x1024xf32> to vector<8x256xf32>
    %124 = vector.extract_strided_slice %40 {offsets = [24, 256], sizes = [8, 256], strides = [1, 1]} : vector<32x1024xf32> to vector<8x256xf32>
    %125 = arith.addf %123, %124 : vector<8x256xf32>
    %126 = vector.extract_strided_slice %1 {offsets = [2, 0], sizes = [1, 256], strides = [1, 1]} : vector<6x256xf32> to vector<1x256xf32>
    %127 = vector.broadcast %126 : vector<1x256xf32> to vector<8x256xf32>
    %128 = arith.mulf %125, %127 : vector<8x256xf32>
    %129 = vector.extract_strided_slice %1 {offsets = [3, 0], sizes = [1, 256], strides = [1, 1]} : vector<6x256xf32> to vector<1x256xf32>
    %130 = vector.broadcast %129 : vector<1x256xf32> to vector<8x256xf32>
    %131 = arith.addf %128, %130 : vector<8x256xf32>
    %cst_26 = arith.constant 0.000000e+00 : f32
    %132 = vector.broadcast %cst_26 : f32 to vector<8x256xf32>
    %133 = arith.maximumf %131, %132 : vector<8x256xf32>
    %c56 = arith.constant 56 : index
    %c0_27 = arith.constant 0 : index
    %134 = vector.load %arg9[%c56, %c0_27] : memref<72x256xf32, #tpu.memory_space<vmem>>, vector<8x256xf32>
    tpu.vector_store %arg9[%c56, %c0_27], %133 {strides = array<i32>} : memref<72x256xf32, #tpu.memory_space<vmem>>, vector<8x256xf32>,
    %135 = vector.extract_strided_slice %40 {offsets = [24, 0], sizes = [8, 256], strides = [1, 1]} : vector<32x1024xf32> to vector<8x256xf32>
    %136 = vector.extract_strided_slice %1 {offsets = [2, 0], sizes = [1, 256], strides = [1, 1]} : vector<6x256xf32> to vector<1x256xf32>
    %137 = vector.broadcast %136 : vector<1x256xf32> to vector<8x256xf32>
    %138 = arith.mulf %135, %137 : vector<8x256xf32>
    %139 = vector.extract_strided_slice %1 {offsets = [3, 0], sizes = [1, 256], strides = [1, 1]} : vector<6x256xf32> to vector<1x256xf32>
    %140 = vector.broadcast %139 : vector<1x256xf32> to vector<8x256xf32>
    %141 = arith.addf %138, %140 : vector<8x256xf32>
    %cst_28 = arith.constant 0.000000e+00 : f32
    %142 = vector.broadcast %cst_28 : f32 to vector<8x256xf32>
    %143 = arith.maximumf %141, %142 : vector<8x256xf32>
    %c64 = arith.constant 64 : index
    %c0_29 = arith.constant 0 : index
    %144 = vector.load %arg9[%c64, %c0_29] : memref<72x256xf32, #tpu.memory_space<vmem>>, vector<8x256xf32>
    tpu.vector_store %arg9[%c64, %c0_29], %143 {strides = array<i32>} : memref<72x256xf32, #tpu.memory_space<vmem>>, vector<8x256xf32>,
    %c0_30 = arith.constant 0 : index
    %c0_31 = arith.constant 0 : index
    %145 = vector.load %arg9[%c0_30, %c0_31] : memref<72x256xf32, #tpu.memory_space<vmem>>, vector<72x256xf32>
    %146 = arith.truncf %145 : vector<72x256xf32> to vector<72x256xbf16>
    %c0_32 = arith.constant 0 : index
    %c0_33 = arith.constant 0 : index
    %c0_34 = arith.constant 0 : index
    %147 = vector.load %arg4[%c0_32, %c0_33, %c0_34] : memref<1x256x1024xbf16, #tpu.memory_space<vmem>>, vector<1x256x1024xbf16>
    %148 = vector.shape_cast %147 : vector<1x256x1024xbf16> to vector<256x1024xbf16>
    %cst_35 = arith.constant dense<0.000000e+00> : vector<72x1024xf32>
    %149 = tpu.matmul %146, %148, %cst_35 {dimension_numbers = #tpu.dot_dimension_numbers<[1], [0], [0], [1], [0, 0, 1, 1], [], []>} : vector<72x256xbf16>, vector<256x1024xbf16>, vector<72x1024xf32> -> vector<72x1024xf32>
    %150 = vector.extract_strided_slice %149 {offsets = [0, 0], sizes = [8, 256], strides = [1, 1]} : vector<72x1024xf32> to vector<8x256xf32>
    %151 = vector.extract_strided_slice %149 {offsets = [8, 256], sizes = [8, 256], strides = [1, 1]} : vector<72x1024xf32> to vector<8x256xf32>
    %152 = arith.addf %150, %151 : vector<8x256xf32>
    %153 = vector.extract_strided_slice %149 {offsets = [24, 512], sizes = [8, 256], strides = [1, 1]} : vector<72x1024xf32> to vector<8x256xf32>
    %154 = arith.addf %152, %153 : vector<8x256xf32>
    %155 = vector.extract_strided_slice %149 {offsets = [32, 768], sizes = [8, 256], strides = [1, 1]} : vector<72x1024xf32> to vector<8x256xf32>
    %156 = arith.addf %154, %155 : vector<8x256xf32>
    %157 = vector.extract_strided_slice %1 {offsets = [4, 0], sizes = [1, 256], strides = [1, 1]} : vector<6x256xf32> to vector<1x256xf32>
    %158 = vector.broadcast %157 : vector<1x256xf32> to vector<8x256xf32>
    %159 = arith.mulf %156, %158 : vector<8x256xf32>
    %160 = vector.extract_strided_slice %1 {offsets = [5, 0], sizes = [1, 256], strides = [1, 1]} : vector<6x256xf32> to vector<1x256xf32>
    %161 = vector.broadcast %160 : vector<1x256xf32> to vector<8x256xf32>
    %162 = arith.addf %159, %161 : vector<8x256xf32>
    %cst_36 = arith.constant 0.000000e+00 : f32
    %163 = vector.broadcast %cst_36 : f32 to vector<8x256xf32>
    %164 = arith.maximumf %162, %163 : vector<8x256xf32>
    %165 = vector.extract_strided_slice %149 {offsets = [8, 0], sizes = [8, 256], strides = [1, 1]} : vector<72x1024xf32> to vector<8x256xf32>
    %166 = vector.extract_strided_slice %149 {offsets = [16, 256], sizes = [8, 256], strides = [1, 1]} : vector<72x1024xf32> to vector<8x256xf32>
    %167 = arith.addf %165, %166 : vector<8x256xf32>
    %168 = vector.extract_strided_slice %149 {offsets = [32, 512], sizes = [8, 256], strides = [1, 1]} : vector<72x1024xf32> to vector<8x256xf32>
    %169 = arith.addf %167, %168 : vector<8x256xf32>
    %170 = vector.extract_strided_slice %149 {offsets = [40, 768], sizes = [8, 256], strides = [1, 1]} : vector<72x1024xf32> to vector<8x256xf32>
    %171 = arith.addf %169, %170 : vector<8x256xf32>
    %172 = vector.extract_strided_slice %1 {offsets = [4, 0], sizes = [1, 256], strides = [1, 1]} : vector<6x256xf32> to vector<1x256xf32>
    %173 = vector.broadcast %172 : vector<1x256xf32> to vector<8x256xf32>
    %174 = arith.mulf %171, %173 : vector<8x256xf32>
    %175 = vector.extract_strided_slice %1 {offsets = [5, 0], sizes = [1, 256], strides = [1, 1]} : vector<6x256xf32> to vector<1x256xf32>
    %176 = vector.broadcast %175 : vector<1x256xf32> to vector<8x256xf32>
    %177 = arith.addf %174, %176 : vector<8x256xf32>
    %cst_37 = arith.constant 0.000000e+00 : f32
    %178 = vector.broadcast %cst_37 : f32 to vector<8x256xf32>
    %179 = arith.maximumf %177, %178 : vector<8x256xf32>
    %180 = arith.addf %164, %179 : vector<8x256xf32>
    %181 = vector.extract_strided_slice %149 {offsets = [24, 0], sizes = [8, 256], strides = [1, 1]} : vector<72x1024xf32> to vector<8x256xf32>
    %182 = vector.extract_strided_slice %149 {offsets = [32, 256], sizes = [8, 256], strides = [1, 1]} : vector<72x1024xf32> to vector<8x256xf32>
    %183 = arith.addf %181, %182 : vector<8x256xf32>
    %184 = vector.extract_strided_slice %149 {offsets = [48, 512], sizes = [8, 256], strides = [1, 1]} : vector<72x1024xf32> to vector<8x256xf32>
    %185 = arith.addf %183, %184 : vector<8x256xf32>
    %186 = vector.extract_strided_slice %149 {offsets = [56, 768], sizes = [8, 256], strides = [1, 1]} : vector<72x1024xf32> to vector<8x256xf32>
    %187 = arith.addf %185, %186 : vector<8x256xf32>
    %188 = vector.extract_strided_slice %1 {offsets = [4, 0], sizes = [1, 256], strides = [1, 1]} : vector<6x256xf32> to vector<1x256xf32>
    %189 = vector.broadcast %188 : vector<1x256xf32> to vector<8x256xf32>
    %190 = arith.mulf %187, %189 : vector<8x256xf32>
    %191 = vector.extract_strided_slice %1 {offsets = [5, 0], sizes = [1, 256], strides = [1, 1]} : vector<6x256xf32> to vector<1x256xf32>
    %192 = vector.broadcast %191 : vector<1x256xf32> to vector<8x256xf32>
    %193 = arith.addf %190, %192 : vector<8x256xf32>
    %cst_38 = arith.constant 0.000000e+00 : f32
    %194 = vector.broadcast %cst_38 : f32 to vector<8x256xf32>
    %195 = arith.maximumf %193, %194 : vector<8x256xf32>
    %196 = arith.addf %180, %195 : vector<8x256xf32>
    %197 = vector.extract_strided_slice %149 {offsets = [32, 0], sizes = [8, 256], strides = [1, 1]} : vector<72x1024xf32> to vector<8x256xf32>
    %198 = vector.extract_strided_slice %149 {offsets = [40, 256], sizes = [8, 256], strides = [1, 1]} : vector<72x1024xf32> to vector<8x256xf32>
    %199 = arith.addf %197, %198 : vector<8x256xf32>
    %200 = vector.extract_strided_slice %149 {offsets = [56, 512], sizes = [8, 256], strides = [1, 1]} : vector<72x1024xf32> to vector<8x256xf32>
    %201 = arith.addf %199, %200 : vector<8x256xf32>
    %202 = vector.extract_strided_slice %149 {offsets = [64, 768], sizes = [8, 256], strides = [1, 1]} : vector<72x1024xf32> to vector<8x256xf32>
    %203 = arith.addf %201, %202 : vector<8x256xf32>
    %204 = vector.extract_strided_slice %1 {offsets = [4, 0], sizes = [1, 256], strides = [1, 1]} : vector<6x256xf32> to vector<1x256xf32>
    %205 = vector.broadcast %204 : vector<1x256xf32> to vector<8x256xf32>
    %206 = arith.mulf %203, %205 : vector<8x256xf32>
    %207 = vector.extract_strided_slice %1 {offsets = [5, 0], sizes = [1, 256], strides = [1, 1]} : vector<6x256xf32> to vector<1x256xf32>
    %208 = vector.broadcast %207 : vector<1x256xf32> to vector<8x256xf32>
    %209 = arith.addf %206, %208 : vector<8x256xf32>
    %cst_39 = arith.constant 0.000000e+00 : f32
    %210 = vector.broadcast %cst_39 : f32 to vector<8x256xf32>
    %211 = arith.maximumf %209, %210 : vector<8x256xf32>
    %212 = arith.addf %196, %211 : vector<8x256xf32>
    %cst_40 = arith.constant 2.500000e-01 : f32
    %213 = vector.broadcast %cst_40 : f32 to vector<8x256xf32>
    %214 = arith.mulf %212, %213 : vector<8x256xf32>
    %215 = arith.truncf %214 : vector<8x256xf32> to vector<8x256xbf16>
    %c0_41 = arith.constant 0 : index
    %c0_42 = arith.constant 0 : index
    %c0_43 = arith.constant 0 : index
    %216 = vector.load %arg5[%c0_41, %c0_42, %c0_43] : memref<1x256x128xbf16, #tpu.memory_space<vmem>>, vector<1x256x128xbf16>
    %217 = vector.shape_cast %216 : vector<1x256x128xbf16> to vector<256x128xbf16>
    %cst_44 = arith.constant dense<0.000000e+00> : vector<8x128xf32>
    %218 = tpu.matmul %215, %217, %cst_44 {dimension_numbers = #tpu.dot_dimension_numbers<[1], [0], [0], [1], [0, 0, 1, 1], [], []>} : vector<8x256xbf16>, vector<256x128xbf16>, vector<8x128xf32> -> vector<8x128xf32>
    %c0_45 = arith.constant 0 : index
    %c0_46 = arith.constant 0 : index
    %c0_47 = arith.constant 0 : index
    %219 = vector.load %arg7[%c0_45, %c0_46, %c0_47] : memref<1x1x128xf32, #tpu.memory_space<vmem>>, vector<1x1x128xf32>
    %220 = vector.shape_cast %219 : vector<1x1x128xf32> to vector<1x128xf32>
    %221 = vector.broadcast %220 : vector<1x128xf32> to vector<8x128xf32>
    %222 = arith.addf %218, %221 : vector<8x128xf32>
    %cst_48 = arith.constant dense<0xFF800000> : vector<8xf32>
    %223 = vector.multi_reduction <maximumf>, %222, %cst_48 [1] : vector<8x128xf32> to vector<8xf32>
    %224 = vector.shape_cast %223 : vector<8xf32> to vector<8x1xf32>
    %225 = vector.broadcast %224 : vector<8x1xf32> to vector<8x128xf32>
    %226 = arith.subf %222, %225 : vector<8x128xf32>
    %227 = math.exp %226 : vector<8x128xf32>
    %cst_49 = arith.constant dense<0.000000e+00> : vector<8xf32>
    %228 = vector.multi_reduction <add>, %227, %cst_49 [1] : vector<8x128xf32> to vector<8xf32>
    %229 = vector.shape_cast %228 : vector<8xf32> to vector<8x1xf32>
    %230 = vector.broadcast %229 : vector<8x1xf32> to vector<8x128xf32>
    %231 = arith.divf %227, %230 : vector<8x128xf32>
    %c0_50 = arith.constant 0 : index
    %c0_51 = arith.constant 0 : index
    %c0_52 = arith.constant 0 : index
    %232 = vector.load %arg8[%c0_50, %c0_51, %c0_52] : memref<1x8x128xf32, #tpu.memory_space<vmem>>, vector<1x8x128xf32>
    %233 = vector.shape_cast %232 : vector<1x8x128xf32> to vector<8x128xf32>
    %234 = vector.shape_cast %231 : vector<8x128xf32> to vector<1x8x128xf32>
    tpu.vector_store %arg8[%c0_50, %c0_51, %c0_52], %234 {strides = array<i32>} : memref<1x8x128xf32, #tpu.memory_space<vmem>>, vector<1x8x128xf32>,
    return
  }
  func.func @transform_0(%arg0: i32) -> (i32, i32) {
    %c0_i32 = arith.constant 0 : i32
    %c0_i32_0 = arith.constant 0 : i32
    %c0_i32_1 = arith.constant 0 : i32
    return %c0_i32, %c0_i32_0 : i32, i32
  }
  func.func @transform_1(%arg0: i32) -> (i32, i32, i32) {
    %c0_i32 = arith.constant 0 : i32
    %c0_i32_0 = arith.constant 0 : i32
    %c0_i32_1 = arith.constant 0 : i32
    return %arg0, %c0_i32, %c0_i32_0 : i32, i32, i32
  }
  func.func @transform_2(%arg0: i32) -> (i32, i32, i32) {
    %c0_i32 = arith.constant 0 : i32
    %c0_i32_0 = arith.constant 0 : i32
    %c0_i32_1 = arith.constant 0 : i32
    return %arg0, %c0_i32, %c0_i32_0 : i32, i32, i32
  }
  func.func @transform_3(%arg0: i32) -> (i32, i32, i32) {
    %c0_i32 = arith.constant 0 : i32
    %c0_i32_0 = arith.constant 0 : i32
    %c0_i32_1 = arith.constant 0 : i32
    return %arg0, %c0_i32, %c0_i32_0 : i32, i32, i32
  }
  func.func @transform_4(%arg0: i32) -> (i32, i32, i32) {
    %c0_i32 = arith.constant 0 : i32
    %c0_i32_0 = arith.constant 0 : i32
    %c0_i32_1 = arith.constant 0 : i32
    return %arg0, %c0_i32, %c0_i32_0 : i32, i32, i32
  }
  func.func @transform_5(%arg0: i32) -> (i32, i32, i32) {
    %c0_i32 = arith.constant 0 : i32
    %c0_i32_0 = arith.constant 0 : i32
    %c0_i32_1 = arith.constant 0 : i32
    return %arg0, %c0_i32, %c0_i32_0 : i32, i32, i32
  }
  func.func @transform_6(%arg0: i32) -> (i32, i32, i32) {
    %c0_i32 = arith.constant 0 : i32
    %c0_i32_0 = arith.constant 0 : i32
    %c0_i32_1 = arith.constant 0 : i32
    return %arg0, %c0_i32, %c0_i32_0 : i32, i32, i32
  }
  func.func @transform_7(%arg0: i32) -> (i32, i32, i32) {
    %c0_i32 = arith.constant 0 : i32
    %c0_i32_0 = arith.constant 0 : i32
    %c0_i32_1 = arith.constant 0 : i32
    return %arg0, %c0_i32, %c0_i32_0 : i32, i32, i32
  }
}

</mosaic_0001>

<bundles_post_ra>
// kernel: _lambda_.1
= control target key start
LH: loop header
LB: loop body
LE: loop exit
PB: predicated region body
PF: predicated region fallthrough
CT: control target
= control target key end

     0   :  { %s4789_s24 = smov 0   ;;  %s5842_s0 = inlined_call_operand.vmem [shape: f32[32,4], index: 0, kind: input, shape index: {}]   ;;  %s5843_s1 = inlined_call_operand.vmem [shape: bf16[14,4,256], index: 1, kind: input, shape index: {}]   ;;  %s5844_s2 = inlined_call_operand.vmem [shape: bf16[14,256,1024], index: 2, kind: input, shape index: {}]   ;;  %s5845_s3 = inlined_call_operand.vmem [shape: bf16[14,256,1024], index: 3, kind: input, shape index: {}]   ;;  %s5846_s4 = inlined_call_operand.vmem [shape: bf16[14,256,128], index: 4, kind: input, shape index: {}]   ;;  %s5847_s5 = inlined_call_operand.vmem [shape: f32[14,6,256], index: 5, kind: input, shape index: {}]   ;;  %s5848_s6 = inlined_call_operand.vmem [shape: f32[14,1,128], index: 6, kind: input, shape index: {}]   ;;  %s5849_s7 = inlined_call_operand.vmem [shape: f32[14,8,128], index: 7, kind: output, shape index: {}]  }
   0x1 LB: > { %s3319_s25 = sadd.s32 4294967295, %s4743_s24   ;;  %p3323_p0 = scmp.ge.s32.totalorder %s4743_s24, 1  ;;  %s4743_s24 = sphi %s4789_s24, %s17_s24  }
   0x2   : > { %p285_p1 = scmp.lt.s32.totalorder %s4743_s24, 15 }
   0x4   : > { %p286_p2 = pnand %p3323_p0, %p285_p1 }
   0x5   : > { %p339_p3 = scmp.lt.s32.totalorder (!%p286_p2), %s3319_s25, 13 }
   0x6   : > { %289 = sbr.rel (%p286_p2) target bundleno = 1260 (0x4ec), region = 48 }
   0xb   : > { %v373_v0 = vld [vmem:[%s5842_s0] sm:$0xff]  ;;  %v4745_v1 = vmov 1   ;;  %v4746_v2 = vmov 0   ;;  %v4747_v3 = vmov 2   ;;  %v374_v4 = vld [vmem:[%s5842_s0 + $0x8] sm:$0xff]  ;;  %v4748_v5 = vmov 3  }
   0xc   : > { %4715 = vset.pattern.permute.xlu1 %v4745_v1  ;;  %4714 = vset.pattern.permute.xlu0 %v4746_v2  ;;  %v375_v6 = vld [vmem:[%s5842_s0 + $0x10] sm:$0xff]  ;;  %v376_v7 = vld [vmem:[%s5842_s0 + $0x18] sm:$0xff]  ;;  %s5851_s25 = smov (!%p339_p3, %s3319_s25), 13 }
   0xd   : > { %415 = vperm.xlu1 %4715, %v373_v0   ;;  %381 = vperm.xlu0 %4714, %v373_v0   ;;  %s4426_s11 = sshll.u32 %s5851_s25, 10  ;;  %s4425_s15 = sshll.u32 %s5851_s25, 2 }
   0xe   : > { %4716 = vset.pattern.permute.xlu2 %v4747_v3  ;;  %s4821_s14 = scalar_lea.vmem %s5844_s2, %s4426_s11  ;;  %s343_s18 = scalar_lea.vmem %s5843_s1, %s4425_s15 }
   0xf   : > { %453 = vperm.xlu2 %4716, %v373_v0   ;;  %v3561_v8 = vld [vmem:[%s4821_s14 + $0x1c0] sm:$0xf]  ;;  %v4486_v13 = vld [vmem:[%s4821_s14 + $0x1c4] sm:$0xf]  ;;  %s4429_s19 = sshll.u32 %s5851_s25, 4  ;;  %s5277_s27 = scalar_lea.vmem %s5845_s3, %s4426_s11 }
  0x10   : > { %v4490_v9 = vld [vmem:[%s4821_s14 + $0x1dc] sm:$0xf0]  ;;  %v3563_v14 = vld [vmem:[%s4821_s14 + $0x1e0] sm:$0xf0]  ;;  %s4920_s22 = scalar_lea.vmem %s5847_s5, %s4429_s19  ;;  %s366_s30 = scalar_lea.vmem %s5848_s6, %s5851_s25 }
  0x11   : > { %v3817_v10 = vld [vmem:[%s4821_s14 + $0x3c0] sm:$0xf]  ;;  %v3562_v11 = vor.u32 %v4490_v9, %v3561_v8  ;;  %v3566_v16 = vor.u32 %v4486_v13, %v3563_v14  ;;  %v4550_v17 = vld [vmem:[%s4821_s14 + $0x3c4] sm:$0xf]  ;;  %s4428_s8 = sshll.u32 %s5851_s25, 7 }
  0x12   : > { %v4554_v12 = vld [vmem:[%s4821_s14 + $0x3dc] sm:$0xf0]  ;;  %v3819_v18 = vld [vmem:[%s4821_s14 + $0x3e0] sm:$0xf0]  ;;  %s5790_s11 = scalar_lea.vmem %s5846_s4, %s4428_s8 }
  0x13   : > { %v3818_v15 = vor.u32 %v4554_v12, %v3817_v10  ;;  %1328 = vmatpush.bf16.msra.mxu0 %v3562_v11  ;;  %v3822_v19 = vor.u32 %v4550_v17, %v3819_v18  ;;  %1366 = vmatpush.bf16.msra.mxu2 %v3566_v16  ;;  %v3529_v20 = vld [vmem:[%s4821_s14 + $0x180] sm:$0xf]  ;;  %v4478_v25 = vld [vmem:[%s4821_s14 + $0x184] sm:$0xf] }
  0x14   : > { %v4482_v21 = vld [vmem:[%s4821_s14 + $0x19c] sm:$0xf0]  ;;  %v3531_v26 = vld [vmem:[%s4821_s14 + $0x1a0] sm:$0xf0] }
  0x15   : > { %419 = vperm.xlu1 %4715, %v374_v4   ;;  %386 = vperm.xlu0 %4714, %v374_v4   ;;  %v3785_v22 = vld [vmem:[%s4821_s14 + $0x380] sm:$0xf]  ;;  %v3530_v23 = vor.u32 %v4482_v21, %v3529_v20  ;;  %v3534_v28 = vor.u32 %v4478_v25, %v3531_v26  ;;  %v4542_v29 = vld [vmem:[%s4821_s14 + $0x384] sm:$0xf] }
  0x16   : > { %1347 = vmatpush.bf16.msra.mxu1 %v3818_v15  ;;  %1385 = vmatpush.bf16.msra.mxu3 %v3822_v19  ;;  %v4546_v24 = vld [vmem:[%s4821_s14 + $0x39c] sm:$0xf0]  ;;  %v3787_v30 = vld [vmem:[%s4821_s14 + $0x3a0] sm:$0xf0] }
  0x17   : > { %457 = vperm.xlu2 %4716, %v374_v4   ;;  %v3786_v27 = vor.u32 %v4546_v24, %v3785_v22  ;;  %1329 = vmatpush.bf16.msra.mxu0 %v3530_v23  ;;  %v3790_v31 = vor.u32 %v4542_v29, %v3787_v30  ;;  %v3497_v32 = vld [vmem:[%s4821_s14 + $0x140] sm:$0xf]  ;;  %v4470_v37 = vld [vmem:[%s4821_s14 + $0x144] sm:$0xf] }
  0x18   : > { %v4474_v33 = vld [vmem:[%s4821_s14 + $0x15c] sm:$0xf0]  ;;  %1367 = vmatpush.bf16.msra.mxu2 %v3534_v28  ;;  %v3499_v38 = vld [vmem:[%s4821_s14 + $0x160] sm:$0xf0] }
  0x19   : > { %v3753_v34 = vld [vmem:[%s4821_s14 + $0x340] sm:$0xf]  ;;  %v3498_v35 = vor.u32 %v4474_v33, %v3497_v32  ;;  %v3502_v40 = vor.u32 %v4470_v37, %v3499_v38  ;;  %v4534_v41 = vld [vmem:[%s4821_s14 + $0x344] sm:$0xf] }
  0x1a   : > { %1348 = vmatpush.bf16.msra.mxu1 %v3786_v27  ;;  %v4538_v36 = vld [vmem:[%s4821_s14 + $0x35c] sm:$0xf0]  ;;  %1386 = vmatpush.bf16.msra.mxu3 %v3790_v31  ;;  %v3755_v42 = vld [vmem:[%s4821_s14 + $0x360] sm:$0xf0] }
  0x1b   : > { %v3754_v39 = vor.u32 %v4538_v36, %v3753_v34  ;;  %v3758_v43 = vor.u32 %v4534_v41, %v3755_v42  ;;  %1330 = vmatpush.bf16.msra.mxu0 %v3498_v35  ;;  %v3465_v44 = vld [vmem:[%s4821_s14 + $0x100] sm:$0xf]  ;;  %v4462_v49 = vld [vmem:[%s4821_s14 + $0x104] sm:$0xf] }
  0x1c   : > { %1368 = vmatpush.bf16.msra.mxu2 %v3502_v40  ;;  %v4466_v45 = vld [vmem:[%s4821_s14 + $0x11c] sm:$0xf0]  ;;  %v3467_v50 = vld [vmem:[%s4821_s14 + $0x120] sm:$0xf0] }
  0x1d   : > { %4718 = vset.pattern.permute.xlu1 %v4748_v5  ;;  %4717 = vset.pattern.permute.xlu0 %v4748_v5  ;;  %v3721_v46 = vld [vmem:[%s4821_s14 + $0x300] sm:$0xf]  ;;  %v3466_v47 = vor.u32 %v4466_v45, %v3465_v44  ;;  %v3470_v52 = vor.u32 %v4462_v49, %v3467_v50  ;;  %v4526_v53 = vld [vmem:[%s4821_s14 + $0x304] sm:$0xf] }
  0x1e   : > { %495 = vperm.xlu1 %4718, %v374_v4   ;;  %491 = vperm.xlu0 %4717, %v373_v0   ;;  %v4530_v48 = vld [vmem:[%s4821_s14 + $0x31c] sm:$0xf0]  ;;  %v3723_v54 = vld [vmem:[%s4821_s14 + $0x320] sm:$0xf0] }
  0x1f   : > { %4719 = vset.pattern.permute.xlu2 %v4746_v2  ;;  %1349 = vmatpush.bf16.msra.mxu1 %v3754_v39  ;;  %v3722_v51 = vor.u32 %v4530_v48, %v3721_v46  ;;  %v3726_v55 = vor.u32 %v4526_v53, %v3723_v54  ;;  %v3433_v56 = vld [vmem:[%s4821_s14 + $0xc0] sm:$0xf]  ;;  %v4454_v61 = vld [vmem:[%s4821_s14 + $0xc4] sm:$0xf] }
  0x20   : > { %391 = vperm.xlu2 %4719, %v375_v6   ;;  %1387 = vmatpush.bf16.msra.mxu3 %v3758_v43  ;;  %v4458_v57 = vld [vmem:[%s4821_s14 + $0xdc] sm:$0xf0]  ;;  %v3435_v62 = vld [vmem:[%s4821_s14 + $0xe0] sm:$0xf0] }
  0x21   : > { %1331 = vmatpush.bf16.msra.mxu0 %v3466_v47  ;;  %v3689_v58 = vld [vmem:[%s4821_s14 + $0x2c0] sm:$0xf]  ;;  %1369 = vmatpush.bf16.msra.mxu2 %v3470_v52  ;;  %v3434_v59 = vor.u32 %v4458_v57, %v3433_v56  ;;  %v4446_v10 = vld [vmem:[%s4821_s14 + $0x84] sm:$0xf] }
  0x22   : > { %v4522_v60 = vld [vmem:[%s4821_s14 + $0x2dc] sm:$0xf0]  ;;  %v3403_v11 = vld [vmem:[%s4821_s14 + $0xa0] sm:$0xf0] }
  0x23   : > { %1350 = vmatpush.bf16.msra.mxu1 %v3722_v51  ;;  %v3690_v0 = vor.u32 %v4522_v60, %v3689_v58  ;;  %v3657_v8 = vld [vmem:[%s4821_s14 + $0x280] sm:$0xf]  ;;  %v3406_v13 = vor.u32 %v4446_v10, %v3403_v11  ;;  %v4510_v14 = vld [vmem:[%s4821_s14 + $0x284] sm:$0xf]  ;;  %v4491_v10 = vld [vmem:[%s4821_s14 + $0x1e4] sm:$0xf0] }
  0x24   : > { %1388 = vmatpush.bf16.msra.mxu3 %v3726_v55  ;;  %v4514_v9 = vld [vmem:[%s4821_s14 + $0x29c] sm:$0xf0]  ;;  %v3659_v15 = vld [vmem:[%s4821_s14 + $0x2a0] sm:$0xf0] }
  0x25   : > { %1332 = vmatpush.bf16.msra.mxu0 %v3434_v59  ;;  %v3658_v12 = vor.u32 %v4514_v9, %v3657_v8  ;;  %v3662_v16 = vor.u32 %v4510_v14, %v3659_v15  ;;  %v3369_v17 = vld [vmem:[%s4821_s14 + $0x40] sm:$0xf]  ;;  %v4438_v22 = vld [vmem:[%s4821_s14 + $0x44] sm:$0xf]  ;;  %v3827_v8 = vld [vmem:[%s4821_s14 + $0x3e8] sm:$0xf0] }
  0x26   : > { %4720 = vset.pattern.permute.xlu1 %v4746_v2  ;;  %4722 = vset.pattern.permute.xlu0 %v4745_v1  ;;  %v4518_v2 = vld [vmem:[%s4821_s14 + $0x2c4] sm:$0xf]  ;;  %v4442_v18 = vld [vmem:[%s4821_s14 + $0x5c] sm:$0xf0]  ;;  %v3569_v9 = vld [vmem:[%s4821_s14 + $0x1c8] sm:$0xf] }
  0x27   : > { %396 = vperm.xlu1 %4720, %v376_v7   ;;  %427 = vperm.xlu0 %4722, %v376_v7   ;;  %v3370_v19 = vor.u32 %v4442_v18, %v3369_v17  ;;  %v3625_v20 = vld [vmem:[%s4821_s14 + $0x240] sm:$0xf]  ;;  %v3371_v24 = vld [vmem:[%s4821_s14 + $0x60] sm:$0xf0]  ;;  %v3825_v15 = vld [vmem:[%s4821_s14 + $0x3c8] sm:$0xf]  ;;  %v3570_v18 = vor.u32 %v4491_v10, %v3569_v9 }
  0x28   : > { %4721 = vset.pattern.permute.xlu2 %v4745_v1  ;;  %v3438_v1 = vor.u32 %v4454_v61, %v3435_v62  ;;  %1351 = vmatpush.bf16.msra.mxu1 %v3690_v0  ;;  %v4506_v21 = vld [vmem:[%s4821_s14 + $0x25c] sm:$0xf0]  ;;  %v4502_v25 = vld [vmem:[%s4821_s14 + $0x244] sm:$0xf]  ;;  %v3374_v28 = vor.u32 %v4438_v22, %v3371_v24  ;;  %v4487_v62 = vld [vmem:[%s4821_s14 + $0x1cc] sm:$0xf] }
  0x29   : > { %423 = vperm.xlu2 %4721, %v375_v6   ;;  %v3626_v23 = vor.u32 %v4506_v21, %v3625_v20  ;;  %v377_v26 = vld [vmem:[%s343_s18] sm:$0xf]  ;;  %v3627_v29 = vld [vmem:[%s4821_s14 + $0x260] sm:$0xf0]  ;;  %v3571_v0 = vld [vmem:[%s4821_s14 + $0x1e8] sm:$0xf0] }
  0x2a   : > { %1370 = vmatpush.bf16.msra.mxu2 %v3438_v1  ;;  %v3630_v30 = vor.u32 %v4502_v25, %v3627_v29  ;;  %v3337_v31 = vld [vmem:[%s4821_s14] sm:$0xf]  ;;  %v4430_v36 = vld [vmem:[%s4821_s14 + $0x4] sm:$0xf]  ;;  %v378_v39 = vunpack.c.l.bf16 %v377_v26  ;;  %v4551_v1 = vld [vmem:[%s4821_s14 + $0x3cc] sm:$0xf] }
  0x2b   : > { %v4434_v32 = vld [vmem:[%s4821_s14 + $0x1c] sm:$0xf0]  ;;  %v3339_v37 = vld [vmem:[%s4821_s14 + $0x20] sm:$0xf0]  ;;  %v3830_v17 = vor.u32 %v4551_v1, %v3827_v8  ;;  %v372_v22 = vld [vmem:[%s4920_s22 + $0x8] sm:$0x3f] }
  0x2c   : > { %1352 = vmatpush.bf16.msra.mxu1 %v3658_v12  ;;  %v3593_v33 = vld [vmem:[%s4821_s14 + $0x200] sm:$0xf]  ;;  %v3338_v34 = vor.u32 %v4434_v32, %v3337_v31  ;;  %v4494_v38 = vld [vmem:[%s4821_s14 + $0x204] sm:$0xf]  ;;  %v3342_v41 = vor.u32 %v4430_v36, %v3339_v37  ;;  %v430_v44 = vperm.slane %v378_v39, 1  ;;  %v431_v46 = vperm.slane %v378_v39, 5 }
  0x2d   : > { %v4498_v35 = vld [vmem:[%s4821_s14 + $0x21c] sm:$0xf0]  ;;  %v3595_v42 = vld [vmem:[%s4821_s14 + $0x220] sm:$0xf0]  ;;  %v400_v48 = vperm.slane %v378_v39, 0  ;;  %v401_v49 = vperm.slane %v378_v39, 4 }
  0x2e   : > { %1371 = vmatpush.bf16.msra.mxu2 %v3406_v13  ;;  %v3594_v40 = vor.u32 %v4498_v35, %v3593_v33  ;;  %v3598_v43 = vor.u32 %v4494_v38, %v3595_v42  ;;  %v468_v51 = vperm.slane %v378_v39, 2  ;;  %v469_v52 = vperm.slane %v378_v39, 6  ;;  %v4934_v21 = vld [vmem:[%s4920_s22] sm:$0x3f]  ;;  %v4479_v29 = vld [vmem:[%s4821_s14 + $0x18c] sm:$0xf] }
  0x2f   : > { %4723 = vset.pattern.permute.xlu1 %v4747_v3  ;;  %4727 = vset.pattern.permute.xlu0 %v4748_v5  ;;  %v4897_v53 = vperm.slane %v430_v44, 1  ;;  %v4899_v54 = vperm.slane %v431_v46, 1  ;;  %v4901_v55 = vperm.slane %v400_v48, 0  ;;  %v4903_v56 = vperm.slane %v401_v49, 0  ;;  %v4543_v31 = vld [vmem:[%s4821_s14 + $0x38c] sm:$0xf] }
  0x30   : > { %461 = vperm.xlu1 %4723, %v375_v6   ;;  %1353 = vmatpush.bf16.msra.mxu1 %v3626_v23  ;;  %v4906_v57 = vperm.slane %v468_v51, 2  ;;  %v4908_v58 = vperm.slane %v469_v52, 2  ;;  %v506_v59 = vperm.slane %v378_v39, 3  ;;  %v507_v60 = vperm.slane %v378_v39, 7  ;;  %v3795_v36 = vld [vmem:[%s4821_s14 + $0x3a8] sm:$0xf0] }
  0x31   : > { %4724 = vset.pattern.permute.xlu2 %v4747_v3  ;;  %v3691_v3 = vld [vmem:[%s4821_s14 + $0x2e0] sm:$0xf0]  ;;  %v3537_v37 = vld [vmem:[%s4821_s14 + $0x188] sm:$0xf]  ;;  %v4958_v44 = vperm.slane %v4934_v21, 0  ;;  %v4963_v46 = vperm.slane %v4934_v21, 1 }
  0x32   : > { %465 = vperm.xlu2 %4724, %v376_v7   ;;  %v3694_v4 = vor.u32 %v4518_v2, %v3691_v3  ;;  %1372 = vmatpush.bf16.msra.mxu2 %v3374_v28  ;;  %v4937_v23 = vperm.slane %v506_v59, 3  ;;  %v4939_v24 = vperm.slane %v507_v60, 3  ;;  %v4483_v38 = vld [vmem:[%s4821_s14 + $0x1a4] sm:$0xf0]  ;;  %v3507_v49 = vld [vmem:[%s4821_s14 + $0x168] sm:$0xf0] }
  0x33   : > { %v3793_v42 = vld [vmem:[%s4821_s14 + $0x388] sm:$0xf]  ;;  %v4535_v51 = vld [vmem:[%s4821_s14 + $0x34c] sm:$0xf]  ;;  %v4977_v10 = vperm.slane %v372_v22, 1 }
  0x34   : > { %1389 = vmatpush.bf16.msra.mxu3 %v3694_v4  ;;  %1354 = vmatpush.bf16.msra.mxu1 %v3594_v40  ;;  %v3798_v40 = vor.u32 %v4543_v31, %v3795_v36  ;;  %v3763_v1 = vld [vmem:[%s4821_s14 + $0x368] sm:$0xf0]  ;;  %v3761_v8 = vld [vmem:[%s4821_s14 + $0x348] sm:$0xf] }
  0x35   : > { %v4539_v9 = vld [vmem:[%s4821_s14 + $0x364] sm:$0xf0] }
  0x36   : > { %1373 = vmatpush.bf16.msra.mxu2 %v3342_v41  ;;  %v3538_v41 = vor.u32 %v4483_v38, %v3537_v37  ;;  %v4531_v36 = vld [vmem:[%s4821_s14 + $0x324] sm:$0xf0] }
  0x38   : > { %4725 = vset.pattern.permute.xlu1 %v4748_v5  ;;  %1390 = vmatpush.bf16.msra.mxu3 %v3662_v16  ;;  %v4555_v16 = vld [vmem:[%s4821_s14 + $0x3e4] sm:$0xf0] }
  0x39   : > { %499 = vperm.xlu1 %4725, %v375_v6   ;;  %v4450_v6 = vld [vmem:[%s4821_s14 + $0x9c] sm:$0xf0] }
  0x3a   : > { %4726 = vset.pattern.permute.xlu2 %v4748_v5  ;;  %v3401_v5 = vld [vmem:[%s4821_s14 + $0x80] sm:$0xf] }
  0x3b   : > { %503 = vperm.xlu2 %4726, %v376_v7   ;;  %v3402_v7 = vor.u32 %v4450_v6, %v3401_v5 }
  0x3c   : > { %1391 = vmatpush.bf16.msra.mxu3 %v3630_v30  ;;  %v3539_v30 = vld [vmem:[%s4821_s14 + $0x1a8] sm:$0xf0] }
  0x3d   : > { %1333 = vmatpush.bf16.msra.mxu0 %v3402_v7  ;;  %v3574_v7 = vor.u32 %v4487_v62, %v3571_v0  ;;  %v3542_v35 = vor.u32 %v4479_v29, %v3539_v30  ;;  %v3473_v29 = vld [vmem:[%s4821_s14 + $0x108] sm:$0xf] }
  0x3e   : > { %v4467_v30 = vld [vmem:[%s4821_s14 + $0x124] sm:$0xf0] }
  0x3f   : > { %1442 = vmatpush.bf16.msrb.mxu2 %v3574_v7  ;;  %v3474_v38 = vor.u32 %v4467_v30, %v3473_v29  ;;  %v4515_v30 = vld [vmem:[%s4821_s14 + $0x2a4] sm:$0xf0] }
  0x40   : > { %1392 = vmatpush.bf16.msra.mxu3 %v3598_v43  ;;  %v4547_v43 = vld [vmem:[%s4821_s14 + $0x3a4] sm:$0xf0] }
  0x41   : > { %1334 = vmatpush.bf16.msra.mxu0 %v3370_v19  ;;  %v3826_v19 = vor.u32 %v4555_v16, %v3825_v15 }
  0x43   : > { %1423 = vmatpush.bf16.msrb.mxu1 %v3826_v19  ;;  %1443 = vmatpush.bf16.msrb.mxu2 %v3542_v35  ;;  %v3475_v19 = vld [vmem:[%s4821_s14 + $0x128] sm:$0xf0]  ;;  %v3729_v35 = vld [vmem:[%s4821_s14 + $0x308] sm:$0xf] }
  0x44   : > { %1461 = vmatpush.bf16.msrb.mxu3 %v3830_v17 }
  0x45   : > { %1335 = vmatpush.bf16.msra.mxu0 %v3338_v34 }
  0x48   : > { %1462 = vmatpush.bf16.msrb.mxu3 %v3798_v40 }
  0x49   : > { %1404 = vmatpush.bf16.msrb.mxu0 %v3570_v18  ;;  %v4463_v18 = vld [vmem:[%s4821_s14 + $0x10c] sm:$0xf] }
  0x4d   : > { %1405 = vmatpush.bf16.msrb.mxu0 %v3538_v41 }
  0x69   : > { %v4861_v63 = vpop.permute.xlu2 %453 }
  0x6a   : > { %v474_v25 = vmul.f32 %v4906_v57, %v4861_v63  ;;  %v475_v26 = vmul.f32 %v4908_v58, %v4861_v63 }
  0x71   : > { %v4884_v27 = vpop.permute.xlu2 %457 }
  0x72   : > { %v476_v63 = vmul.f32 %v4906_v57, %v4884_v27  ;;  %v477_v39 = vmul.f32 %v4908_v58, %v4884_v27  ;;  %v4471_v27 = vld [vmem:[%s4821_s14 + $0x14c] sm:$0xf] }
  0x73   : > { %v3510_v0 = vor.u32 %v4471_v27, %v3507_v49  ;;  %v3699_v49 = vld [vmem:[%s4821_s14 + $0x2e8] sm:$0xf0] }
  0x75   : > { %1444 = vmatpush.bf16.msrb.mxu2 %v3510_v0 }
  0x7a   : > { %v4895_v50 = vpop.permute.xlu2 %391 }
  0x7f   : > { %v416_v45 = vpop.permute.xlu1 %415  ;;  %v382_v47 = vpop.permute.xlu0 %381 }
  0x80   : > { %v436_v61 = vmul.f32 %v4897_v53, %v416_v45  ;;  %v437_v2 = vmul.f32 %v4899_v54, %v416_v45  ;;  %v406_v3 = vmul.f32 %v4901_v55, %v382_v47  ;;  %v407_v4 = vmul.f32 %v4903_v56, %v382_v47 }
  0x81   : > { %v4960_v45 = vperm.slane %v372_v22, 0  ;;  %v3794_v47 = vor.u32 %v4547_v43, %v3793_v42  ;;  %v3478_v22 = vor.u32 %v4463_v18, %v3475_v19  ;;  %v4455_v42 = vld [vmem:[%s4821_s14 + $0xcc] sm:$0xf]  ;;  %v3409_v19 = vld [vmem:[%s4821_s14 + $0x88] sm:$0xf] }
  0x82   : > { %v444_v28 = vadd.f32 %v436_v61, %v406_v3  ;;  %v445_v32 = vadd.f32 %v437_v2, %v407_v4  ;;  %v3505_v2 = vld [vmem:[%s4821_s14 + $0x148] sm:$0xf]  ;;  %v3443_v43 = vld [vmem:[%s4821_s14 + $0xe8] sm:$0xf0] }
  0x83   : > { %v4931_v20 = vpop.permute.xlu2 %423  ;;  %1424 = vmatpush.bf16.msrb.mxu1 %v3794_v47  ;;  %v4475_v3 = vld [vmem:[%s4821_s14 + $0x164] sm:$0xf0]  ;;  %1445 = vmatpush.bf16.msrb.mxu2 %v3478_v22  ;;  %v4519_v47 = vld [vmem:[%s4821_s14 + $0x2cc] sm:$0xf]  ;;  %v3446_v27 = vor.u32 %v4455_v42, %v3443_v43 }
  0x84   : > { %v482_v48 = vadd.f32 %v474_v25, %v444_v28  ;;  %v483_v62 = vadd.f32 %v475_v26, %v445_v32  ;;  %v4527_v25 = vld [vmem:[%s4821_s14 + $0x30c] sm:$0xf]  ;;  %v3665_v22 = vld [vmem:[%s4821_s14 + $0x288] sm:$0xf] }
  0x85   : > { %v3731_v28 = vld [vmem:[%s4821_s14 + $0x328] sm:$0xf0]  ;;  %v3633_v42 = vld [vmem:[%s4821_s14 + $0x248] sm:$0xf] }
  0x86   : > { %v3734_v37 = vor.u32 %v4527_v25, %v3731_v28  ;;  %v4451_v25 = vld [vmem:[%s4821_s14 + $0xa4] sm:$0xf0] }
  0x87   : > { %v420_v5 = vpop.permute.xlu1 %419  ;;  %v387_v6 = vpop.permute.xlu0 %386  ;;  %1446 = vmatpush.bf16.msrb.mxu2 %v3446_v27  ;;  %v4431_v27 = vld [vmem:[%s4821_s14 + $0xc] sm:$0xf] }
  0x88   : > { %v438_v11 = vmul.f32 %v4897_v53, %v420_v5  ;;  %v439_v12 = vmul.f32 %v4899_v54, %v420_v5  ;;  %v408_v13 = vmul.f32 %v4901_v55, %v387_v6  ;;  %v409_v14 = vmul.f32 %v4903_v56, %v387_v6 }
  0x8a   : > { %v446_v33 = vadd.f32 %v438_v11, %v408_v13  ;;  %v447_v34 = vadd.f32 %v439_v12, %v409_v14  ;;  %v3766_v11 = vor.u32 %v4535_v51, %v3763_v1  ;;  %v3506_v12 = vor.u32 %v4475_v3, %v3505_v2  ;;  %v3441_v51 = vld [vmem:[%s4821_s14 + $0xc8] sm:$0xf] }
  0x8b   : > { %v3762_v13 = vor.u32 %v4539_v9, %v3761_v8  ;;  %v3697_v2 = vld [vmem:[%s4821_s14 + $0x2c8] sm:$0xf]  ;;  %v4447_v8 = vld [vmem:[%s4821_s14 + $0x8c] sm:$0xf] }
  0x8c   : > { %v484_v59 = vadd.f32 %v476_v63, %v446_v33  ;;  %v485_v60 = vadd.f32 %v477_v39, %v447_v34  ;;  %v4982_v26 = vpop.permute.xlu2 %465  ;;  %1463 = vmatpush.bf16.msrb.mxu3 %v3766_v11  ;;  %1406 = vmatpush.bf16.msrb.mxu0 %v3506_v12  ;;  %v3411_v9 = vld [vmem:[%s4821_s14 + $0xa8] sm:$0xf0] }
  0x8d   : > { %1425 = vmatpush.bf16.msrb.mxu1 %v3762_v13  ;;  %v3702_v13 = vor.u32 %v4519_v47, %v3699_v49  ;;  %v3414_v18 = vor.u32 %v4447_v8, %v3411_v9  ;;  %v480_v28 = vmul.f32 %v4906_v57, %v4982_v26  ;;  %v3347_v49 = vld [vmem:[%s4821_s14 + $0x28] sm:$0xf0]  ;;  %v3601_v9 = vld [vmem:[%s4821_s14 + $0x208] sm:$0xf] }
  0x8f   : > { %1447 = vmatpush.bf16.msrb.mxu2 %v3414_v18 }
  0x90   : > { %v496_v52 = vpop.permute.xlu1 %495  ;;  %v492_v61 = vpop.permute.xlu0 %491  ;;  %1464 = vmatpush.bf16.msrb.mxu3 %v3734_v37  ;;  %1407 = vmatpush.bf16.msrb.mxu0 %v3474_v38  ;;  %v3410_v37 = vor.u32 %v4451_v25, %v3409_v19  ;;  %v4503_v38 = vld [vmem:[%s4821_s14 + $0x24c] sm:$0xf]  ;;  %v3577_v25 = vld [vmem:[%s4821_s14 + $0x1d0] sm:$0xf] }
  0x91   : > { %v514_v4 = vmul.f32 %v4937_v23, %v496_v52  ;;  %v515_v5 = vmul.f32 %v4939_v24, %v496_v52  ;;  %v512_v6 = vmul.f32 %v4937_v23, %v492_v61  ;;  %v513_v7 = vmul.f32 %v4939_v24, %v492_v61  ;;  %v4459_v52 = vld [vmem:[%s4821_s14 + $0xe4] sm:$0xf0] }
  0x93   : > { %v522_v14 = vadd.f32 %v514_v4, %v484_v59  ;;  %v523_v15 = vadd.f32 %v515_v5, %v485_v60  ;;  %v520_v16 = vadd.f32 %v512_v6, %v482_v48  ;;  %v521_v17 = vadd.f32 %v513_v7, %v483_v62  ;;  %v4523_v7 = vld [vmem:[%s4821_s14 + $0x2e4] sm:$0xf0] }
  0x94   : > { %v3730_v48 = vor.u32 %v4531_v36, %v3729_v35  ;;  %1465 = vmatpush.bf16.msrb.mxu3 %v3702_v13  ;;  %v4499_v13 = vld [vmem:[%s4821_s14 + $0x224] sm:$0xf0] }
  0x95   : > { %v532_v31 = vmul.f32 %v4958_v44, %v522_v14  ;;  %v533_v32 = vmul.f32 %v4960_v45, %v523_v15  ;;  %v530_v33 = vmul.f32 %v4958_v44, %v520_v16  ;;  %v531_v34 = vmul.f32 %v4960_v45, %v521_v17  ;;  %v4511_v15 = vld [vmem:[%s4821_s14 + $0x28c] sm:$0xf]  ;;  %v504_v35 = vpop.permute.xlu2 %503 }
  0x96   : > { %1426 = vmatpush.bf16.msrb.mxu1 %v3730_v48  ;;  %v3442_v14 = vor.u32 %v4459_v52, %v3441_v51  ;;  %v3667_v16 = vld [vmem:[%s4821_s14 + $0x2a8] sm:$0xf0]  ;;  %v3698_v17 = vor.u32 %v4523_v7, %v3697_v2  ;;  %v518_v47 = vmul.f32 %v4937_v23, %v504_v35  ;;  %v4507_v48 = vld [vmem:[%s4821_s14 + $0x264] sm:$0xf0]  ;;  %v519_v52 = vmul.f32 %v4939_v24, %v504_v35 }
  0x97   : > { %v542_v63 = vadd.f32 %v4963_v46, %v532_v31  ;;  %v543_v39 = vadd.f32 %v4977_v10, %v533_v32  ;;  %v540_v40 = vadd.f32 %v4963_v46, %v530_v33  ;;  %v541_v41 = vadd.f32 %v4977_v10, %v531_v34  ;;  %v4439_v31 = vld [vmem:[%s4821_s14 + $0x4c] sm:$0xf] }
  0x98   : > { %v3379_v32 = vld [vmem:[%s4821_s14 + $0x68] sm:$0xf0]  ;;  %v481_v33 = vmul.f32 %v4908_v58, %v4982_v26  ;;  %1408 = vmatpush.bf16.msrb.mxu0 %v3442_v14  ;;  %v3670_v36 = vor.u32 %v4511_v15, %v3667_v16  ;;  %v3666_v26 = vor.u32 %v4515_v30, %v3665_v22  ;;  %v440_v2 = vmul.f32 %v4897_v53, %v4931_v20 }
  0x99   : > { %v550_v59 = vmax.f32 %v542_v63, 0.0  ;;  %v551_v60 = vmax.f32 %v543_v39, 0.0  ;;  %v548_v61 = vmax.f32 %v540_v40, 0.0  ;;  %v549_v62 = vmax.f32 %v541_v41, 0.0  ;;  %v397_v0 = vpop.permute.xlu1 %396  ;;  %v428_v1 = vpop.permute.xlu0 %427  ;;  %v3635_v63 = vld [vmem:[%s4821_s14 + $0x268] sm:$0xf0] }
  0x9a   : > { %v412_v3 = vmul.f32 %v4901_v55, %v397_v0  ;;  %v413_v4 = vmul.f32 %v4903_v56, %v397_v0  ;;  %v442_v5 = vmul.f32 %v4897_v53, %v428_v1  ;;  %v443_v6 = vmul.f32 %v4899_v54, %v428_v1  ;;  %1427 = vmatpush.bf16.msrb.mxu1 %v3698_v17  ;;  %v3377_v40 = vld [vmem:[%s4821_s14 + $0x48] sm:$0xf]  ;;  %v4495_v0 = vld [vmem:[%s4821_s14 + $0x20c] sm:$0xf] }
  0x9b   : > { %v5011_v11 = vpack.c.bf16 %v550_v59, %v548_v61  ;;  %v5013_v12 = vpack.c.bf16 %v551_v60, %v549_v62  ;;  %v3382_v39 = vor.u32 %v4439_v31, %v3379_v32  ;;  %v4443_v41 = vld [vmem:[%s4821_s14 + $0x64] sm:$0xf0]  ;;  %v410_v60 = vmul.f32 %v4901_v55, %v4895_v50  ;;  %1466 = vmatpush.bf16.msrb.mxu3 %v3670_v36  ;;  %v3603_v1 = vld [vmem:[%s4821_s14 + $0x228] sm:$0xf0]  ;;  %v3833_v31 = vld [vmem:[%s4821_s14 + $0x3d0] sm:$0xf] }
  0x9c   : > { %v450_v29 = vadd.f32 %v442_v5, %v412_v3  ;;  %v451_v34 = vadd.f32 %v443_v6, %v413_v4  ;;  %1409 = vmatpush.bf16.msrb.mxu0 %v3410_v37  ;;  %v3638_v61 = vor.u32 %v4503_v38, %v3635_v63  ;;  %v3378_v62 = vor.u32 %v4443_v41, %v3377_v40  ;;  %v3345_v5 = vld [vmem:[%s4821_s14 + $0x8] sm:$0xf]  ;;  %v4556_v32 = vld [vmem:[%s4821_s14 + $0x3ec] sm:$0xf0]  ;;  %v3547_v36 = vld [vmem:[%s4821_s14 + $0x1b0] sm:$0xf0] }
  0x9d   : > { %1336 = vmatmul.bf16.vlgmr.msra.gmra.mxu0 %v5011_v11  ;;  %1355 = vmatmul.bf16.vlgmr.msra.gmra.mxu1 %v5013_v12  ;;  %v3634_v3 = vor.u32 %v4507_v48, %v3633_v42  ;;  %v3350_v4 = vor.u32 %v4431_v27, %v3347_v49  ;;  %v4435_v55 = vld [vmem:[%s4821_s14 + $0x24] sm:$0xf0]  ;;  %v411_v6 = vmul.f32 %v4903_v56, %v4895_v50  ;;  %v4488_v50 = vld [vmem:[%s4821_s14 + $0x1d4] sm:$0xf]  ;;  %v3545_v41 = vld [vmem:[%s4821_s14 + $0x190] sm:$0xf] }
  0x9e   : > { %1374 = vmatmul.bf16.vlgmr.msra.gmra.mxu2 %v5011_v11  ;;  %1393 = vmatmul.bf16.vlgmr.msra.gmra.mxu3 %v5013_v12  ;;  %v488_v43 = vadd.f32 %v480_v28, %v450_v29  ;;  %v489_v51 = vadd.f32 %v481_v33, %v451_v34  ;;  %v441_v7 = vmul.f32 %v4899_v54, %v4931_v20  ;;  %v3579_v56 = vld [vmem:[%s4821_s14 + $0x1f0] sm:$0xf0]  ;;  %v4484_v42 = vld [vmem:[%s4821_s14 + $0x1ac] sm:$0xf0] }
  0x9f   : > { %1428 = vmatpush.bf16.msrb.mxu1 %v3666_v26  ;;  %1448 = vmatpush.bf16.msrb.mxu2 %v3382_v39  ;;  %v3606_v14 = vor.u32 %v4495_v0, %v3603_v1  ;;  %v3346_v17 = vor.u32 %v4435_v55, %v3345_v5  ;;  %v4552_v54 = vld [vmem:[%s4821_s14 + $0x3d4] sm:$0xf]  ;;  %v448_v20 = vadd.f32 %v440_v2, %v410_v60  ;;  %v4548_v49 = vld [vmem:[%s4821_s14 + $0x3ac] sm:$0xf0] }
  0xa0   : > { %v526_v8 = vadd.f32 %v518_v47, %v488_v43  ;;  %v527_v53 = vadd.f32 %v519_v52, %v489_v51  ;;  %1467 = vmatpush.bf16.msrb.mxu3 %v3638_v61  ;;  %1410 = vmatpush.bf16.msrb.mxu0 %v3378_v62  ;;  %v3602_v18 = vor.u32 %v4499_v13, %v3601_v9  ;;  %v4480_v33 = vld [vmem:[%s4821_s14 + $0x194] sm:$0xf]  ;;  %v3801_v43 = vld [vmem:[%s4821_s14 + $0x390] sm:$0xf] }
  0xa1   : > { %v3582_v19 = vor.u32 %v4488_v50, %v3579_v56  ;;  %v449_v22 = vadd.f32 %v441_v7, %v411_v6  ;;  %v3834_v35 = vor.u32 %v4556_v32, %v3833_v31  ;;  %v4544_v37 = vld [vmem:[%s4821_s14 + $0x394] sm:$0xf]  ;;  %v3550_v40 = vor.u32 %v4480_v33, %v3547_v36  ;;  %v3769_v5 = vld [vmem:[%s4821_s14 + $0x350] sm:$0xf] }
  0xa2   : > { %v462_v59 = vpop.permute.xlu1 %461  ;;  %v536_v28 = vmul.f32 %v4958_v44, %v526_v8  ;;  %v537_v34 = vmul.f32 %v4960_v45, %v527_v53  ;;  %v3803_v38 = vld [vmem:[%s4821_s14 + $0x3b0] sm:$0xf0]  ;;  %v3546_v60 = vor.u32 %v4484_v42, %v3545_v41  ;;  %v3802_v61 = vor.u32 %v4548_v49, %v3801_v43  ;;  %v4540_v55 = vld [vmem:[%s4821_s14 + $0x36c] sm:$0xf0] }
  0xa3   : > { %v478_v15 = vmul.f32 %v4906_v57, %v462_v59  ;;  %v479_v16 = vmul.f32 %v4908_v58, %v462_v59  ;;  %1429 = vmatpush.bf16.msrb.mxu1 %v3634_v3  ;;  %1449 = vmatpush.bf16.msrb.mxu2 %v3350_v4  ;;  %v3835_v57 = vld [vmem:[%s4821_s14 + $0x3f0] sm:$0xf0]  ;;  %v4492_v58 = vld [vmem:[%s4821_s14 + $0x1ec] sm:$0xf0]  ;;  %v3806_v27 = vor.u32 %v4544_v37, %v3803_v38 }
  0xa4   : > { %v3838_v29 = vor.u32 %v4552_v54, %v3835_v57  ;;  %v3578_v30 = vor.u32 %v4492_v58, %v3577_v25  ;;  %1468 = vmatpush.bf16.msrb.mxu3 %v3606_v14  ;;  %1411 = vmatpush.bf16.msrb.mxu0 %v3346_v17  ;;  %v4472_v51 = vld [vmem:[%s4821_s14 + $0x154] sm:$0xf]  ;;  %v546_v59 = vadd.f32 %v4963_v46, %v536_v28  ;;  %v4476_v4 = vld [vmem:[%s4821_s14 + $0x16c] sm:$0xf0] }
  0xa5   : > { %v486_v63 = vadd.f32 %v478_v15, %v448_v20  ;;  %v487_v26 = vadd.f32 %v479_v16, %v449_v22  ;;  %v3515_v52 = vld [vmem:[%s4821_s14 + $0x170] sm:$0xf0]  ;;  %v547_v0 = vadd.f32 %v4977_v10, %v537_v34  ;;  %v3770_v15 = vor.u32 %v4540_v55, %v3769_v5  ;;  %v4468_v20 = vld [vmem:[%s4821_s14 + $0x12c] sm:$0xf0] }
  0xa6   : > { %v3771_v62 = vld [vmem:[%s4821_s14 + $0x370] sm:$0xf0]  ;;  %v3518_v3 = vor.u32 %v4472_v51, %v3515_v52  ;;  %v554_v53 = vmax.f32 %v546_v59, 0.0  ;;  %v3737_v57 = vld [vmem:[%s4821_s14 + $0x310] sm:$0xf] }
  0xa7   : > { %1518 = vmatpush.bf16.msra.mxu2 %v3582_v19  ;;  %1430 = vmatpush.bf16.msrb.mxu1 %v3602_v18  ;;  %v4464_v6 = vld [vmem:[%s4821_s14 + $0x114] sm:$0xf]  ;;  %v555_v16 = vmax.f32 %v547_v0, 0.0  ;;  %v4532_v25 = vld [vmem:[%s4821_s14 + $0x32c] sm:$0xf0] }
  0xa8   : > { %1537 = vmatpush.bf16.msra.mxu3 %v3838_v29  ;;  %1480 = vmatpush.bf16.msra.mxu0 %v3578_v30  ;;  %v3483_v7 = vld [vmem:[%s4821_s14 + $0x130] sm:$0xf0]  ;;  %v3738_v28 = vor.u32 %v4532_v25, %v3737_v57  ;;  %v3449_v34 = vld [vmem:[%s4821_s14 + $0xd0] sm:$0xf]  ;;  %v4493_v57 = vld [vmem:[%s4821_s14 + $0x1f4] sm:$0xf0] }
  0xa9   : > { %v4528_v56 = vld [vmem:[%s4821_s14 + $0x314] sm:$0xf]  ;;  %v3705_v36 = vld [vmem:[%s4821_s14 + $0x2d0] sm:$0xf] }
  0xaa   : > { %v3739_v54 = vld [vmem:[%s4821_s14 + $0x330] sm:$0xf0]  ;;  %v4524_v37 = vld [vmem:[%s4821_s14 + $0x2ec] sm:$0xf0] }
  0xab   : > { %v500_v39 = vpop.permute.xlu1 %499  ;;  %1499 = vmatpush.bf16.msra.mxu1 %v3834_v35  ;;  %1519 = vmatpush.bf16.msra.mxu2 %v3550_v40  ;;  %v3742_v58 = vor.u32 %v4528_v56, %v3739_v54  ;;  %v4456_v29 = vld [vmem:[%s4821_s14 + $0xd4] sm:$0xf]  ;;  %v4460_v35 = vld [vmem:[%s4821_s14 + $0xec] sm:$0xf0]  ;;  %v3706_v42 = vor.u32 %v4524_v37, %v3705_v36  ;;  %v4489_v56 = vld [vmem:[%s4821_s14 + $0x1dc] sm:$0xf] }
  0xac   : > { %v516_v47 = vmul.f32 %v4937_v23, %v500_v39  ;;  %v517_v48 = vmul.f32 %v4939_v24, %v500_v39  ;;  %v4536_v23 = vld [vmem:[%s4821_s14 + $0x354] sm:$0xf]  ;;  %v3513_v24 = vld [vmem:[%s4821_s14 + $0x150] sm:$0xf]  ;;  %1538 = vmatpush.bf16.msra.mxu3 %v3806_v27  ;;  %1481 = vmatpush.bf16.msra.mxu0 %v3546_v60  ;;  %v3587_v54 = vld [vmem:[%s4821_s14 + $0x1f8] sm:$0xf0] }
  0xad   : > { %v3774_v13 = vor.u32 %v4536_v23, %v3771_v62  ;;  %v3514_v14 = vor.u32 %v4476_v4, %v3513_v24  ;;  %v3451_v30 = vld [vmem:[%s4821_s14 + $0xf0] sm:$0xf0]  ;;  %v3673_v27 = vld [vmem:[%s4821_s14 + $0x290] sm:$0xf]  ;;  %v4485_v36 = vld [vmem:[%s4821_s14 + $0x1b4] sm:$0xf0] }
  0xae   : > { %v524_v1 = vadd.f32 %v516_v47, %v486_v63  ;;  %v525_v2 = vadd.f32 %v517_v48, %v487_v26  ;;  %v4520_v31 = vld [vmem:[%s4821_s14 + $0x2d4] sm:$0xf]  ;;  %v3454_v32 = vor.u32 %v4456_v29, %v3451_v30  ;;  %v3450_v26 = vor.u32 %v4460_v35, %v3449_v34  ;;  %v3417_v47 = vld [vmem:[%s4821_s14 + $0x90] sm:$0xf]  ;;  %v4481_v29 = vld [vmem:[%s4821_s14 + $0x19c] sm:$0xf] }
  0xaf   : > { %1500 = vmatpush.bf16.msra.mxu1 %v3802_v61  ;;  %1520 = vmatpush.bf16.msra.mxu2 %v3518_v3  ;;  %v3707_v33 = vld [vmem:[%s4821_s14 + $0x2f0] sm:$0xf0]  ;;  %v4452_v48 = vld [vmem:[%s4821_s14 + $0xac] sm:$0xf0]  ;;  %v3553_v35 = vld [vmem:[%s4821_s14 + $0x198] sm:$0xf] }
  0xb0   : > { %v534_v8 = vmul.f32 %v4958_v44, %v524_v1  ;;  %v535_v9 = vmul.f32 %v4960_v45, %v525_v2  ;;  %v3486_v44 = vor.u32 %v4464_v6, %v3483_v7  ;;  %v3481_v45 = vld [vmem:[%s4821_s14 + $0x110] sm:$0xf]  ;;  %1539 = vmatpush.bf16.msra.mxu3 %v3774_v13  ;;  %1482 = vmatpush.bf16.msra.mxu0 %v3514_v14  ;;  %v4448_v38 = vld [vmem:[%s4821_s14 + $0x94] sm:$0xf]  ;;  %v3809_v37 = vld [vmem:[%s4821_s14 + $0x398] sm:$0xf] }
  0xb1   : > { %v3482_v22 = vor.u32 %v4468_v20, %v3481_v45  ;;  %v3710_v63 = vor.u32 %v4520_v31, %v3707_v33  ;;  %v3419_v39 = vld [vmem:[%s4821_s14 + $0xb0] sm:$0xf0]  ;;  %v4516_v49 = vld [vmem:[%s4821_s14 + $0x2ac] sm:$0xf0]  ;;  %v3418_v60 = vor.u32 %v4452_v48, %v3417_v47  ;;  %v4553_v45 = vld [vmem:[%s4821_s14 + $0x3dc] sm:$0xf]  ;;  %v3590_v20 = vor.u32 %v4489_v56, %v3587_v54 }
  0xb2   : > { %v544_v17 = vadd.f32 %v4963_v46, %v534_v8  ;;  %v545_v50 = vadd.f32 %v4977_v10, %v535_v9  ;;  %v4512_v40 = vld [vmem:[%s4821_s14 + $0x294] sm:$0xf]  ;;  %v3422_v43 = vor.u32 %v4448_v38, %v3419_v39  ;;  %v3674_v62 = vor.u32 %v4516_v49, %v3673_v27  ;;  %v3385_v0 = vld [vmem:[%s4821_s14 + $0x50] sm:$0xf]  ;;  %v3555_v31 = vld [vmem:[%s4821_s14 + $0x1b8] sm:$0xf0] }
  0xb3   : > { %1501 = vmatpush.bf16.msra.mxu1 %v3770_v15  ;;  %1521 = vmatpush.bf16.msra.mxu2 %v3486_v44  ;;  %v3675_v41 = vld [vmem:[%s4821_s14 + $0x2b0] sm:$0xf0]  ;;  %v4444_v1 = vld [vmem:[%s4821_s14 + $0x6c] sm:$0xf0]  ;;  %v3811_v33 = vld [vmem:[%s4821_s14 + $0x3b8] sm:$0xf0]  ;;  %v3558_v34 = vor.u32 %v4481_v29, %v3555_v31 }
  0xb4   : > { %v552_v18 = vmax.f32 %v544_v17, 0.0  ;;  %v553_v19 = vmax.f32 %v545_v50, 0.0  ;;  %1540 = vmatpush.bf16.msra.mxu3 %v3742_v58  ;;  %1483 = vmatpush.bf16.msra.mxu0 %v3482_v22  ;;  %v4440_v51 = vld [vmem:[%s4821_s14 + $0x54] sm:$0xf]  ;;  %v3678_v59 = vor.u32 %v4512_v40, %v3675_v41  ;;  %v3641_v2 = vld [vmem:[%s4821_s14 + $0x250] sm:$0xf]  ;;  %v3386_v6 = vor.u32 %v4444_v1, %v3385_v0 }
  0xb5   : > { %v3387_v52 = vld [vmem:[%s4821_s14 + $0x70] sm:$0xf0]  ;;  %v4508_v3 = vld [vmem:[%s4821_s14 + $0x26c] sm:$0xf0]  ;;  %v3841_v22 = vld [vmem:[%s4821_s14 + $0x3d8] sm:$0xf] }
  0xb6   : > { %v5099_v46 = vpack.c.bf16 %v554_v53, %v552_v18  ;;  %v5101_v10 = vpack.c.bf16 %v555_v16, %v553_v19  ;;  %v4504_v61 = vld [vmem:[%s4821_s14 + $0x254] sm:$0xf]  ;;  %v3390_v24 = vor.u32 %v4440_v51, %v3387_v52  ;;  %v3642_v8 = vor.u32 %v4508_v3, %v3641_v2  ;;  %v3353_v53 = vld [vmem:[%s4821_s14 + $0x10] sm:$0xf]  ;;  %v3843_v18 = vld [vmem:[%s4821_s14 + $0x3f8] sm:$0xf0] }
  0xb7   : > { %1502 = vmatpush.bf16.msra.mxu1 %v3738_v28  ;;  %1522 = vmatpush.bf16.msra.mxu2 %v3454_v32  ;;  %v3643_v23 = vld [vmem:[%s4821_s14 + $0x270] sm:$0xf0]  ;;  %v4436_v14 = vld [vmem:[%s4821_s14 + $0x2c] sm:$0xf0]  ;;  %v3585_v19 = vld [vmem:[%s4821_s14 + $0x1d8] sm:$0xf]  ;;  %v3846_v25 = vor.u32 %v4553_v45, %v3843_v18 }
  0xb8   : > { %1341 = vmatmul.bf16.gmra.mxu0 %v5099_v46  ;;  %1360 = vmatmul.bf16.gmra.mxu1 %v5101_v10  ;;  %v4432_v4 = vld [vmem:[%s4821_s14 + $0x14] sm:$0xf]  ;;  %v3646_v55 = vor.u32 %v4504_v61, %v3643_v23  ;;  %v3609_v15 = vld [vmem:[%s4821_s14 + $0x210] sm:$0xf]  ;;  %v3354_v50 = vor.u32 %v4436_v14, %v3353_v53  ;;  %v3586_v58 = vor.u32 %v4493_v57, %v3585_v19  ;;  %v4557_v28 = vld [vmem:[%s4821_s14 + $0x3f4] sm:$0xf0] }
  0xb9   : > { %1379 = vmatmul.bf16.gmra.mxu2 %v5099_v46  ;;  %1398 = vmatmul.bf16.gmra.mxu3 %v5101_v10  ;;  %v3355_v5 = vld [vmem:[%s4821_s14 + $0x30] sm:$0xf0]  ;;  %v4500_v16 = vld [vmem:[%s4821_s14 + $0x22c] sm:$0xf0]  ;;  %v3842_v30 = vor.u32 %v4557_v28, %v3841_v22  ;;  %v4545_v32 = vld [vmem:[%s4821_s14 + $0x39c] sm:$0xf] }
  0xba   : > { %1541 = vmatpush.bf16.msra.mxu3 %v3710_v63  ;;  %1484 = vmatpush.bf16.msra.mxu0 %v3450_v26  ;;  %v4496_v7 = vld [vmem:[%s4821_s14 + $0x214] sm:$0xf]  ;;  %v3358_v9 = vor.u32 %v4432_v4, %v3355_v5  ;;  %v3610_v44 = vor.u32 %v4500_v16, %v3609_v15  ;;  %v3814_v38 = vor.u32 %v4545_v32, %v3811_v33  ;;  %v4549_v26 = vld [vmem:[%s4821_s14 + $0x3b4] sm:$0xf0]  ;;  %v4473_v39 = vld [vmem:[%s4821_s14 + $0x15c] sm:$0xf] }
  0xbb   : > { %1503 = vmatpush.bf16.msra.mxu1 %v3706_v42  ;;  %1523 = vmatpush.bf16.msra.mxu2 %v3422_v43  ;;  %v3611_v13 = vld [vmem:[%s4821_s14 + $0x230] sm:$0xf0]  ;;  %v3554_v63 = vor.u32 %v4485_v36, %v3553_v35  ;;  %v3523_v40 = vld [vmem:[%s4821_s14 + $0x178] sm:$0xf0]  ;;  %v3810_v41 = vor.u32 %v4549_v26, %v3809_v37  ;;  %v3521_v47 = vld [vmem:[%s4821_s14 + $0x158] sm:$0xf] }
  0xbc   : > { %v3614_v17 = vor.u32 %v4496_v7, %v3611_v13  ;;  %v4537_v42 = vld [vmem:[%s4821_s14 + $0x35c] sm:$0xf]  ;;  %v4477_v48 = vld [vmem:[%s4821_s14 + $0x174] sm:$0xf0]  ;;  %v3526_v51 = vor.u32 %v4473_v39, %v3523_v40 }
  0xbd   : > { %v3779_v43 = vld [vmem:[%s4821_s14 + $0x378] sm:$0xf0]  ;;  %v3777_v27 = vld [vmem:[%s4821_s14 + $0x358] sm:$0xf] }
  0xbe   : > { %1542 = vmatpush.bf16.msra.mxu3 %v3678_v59  ;;  %1485 = vmatpush.bf16.msra.mxu0 %v3418_v60  ;;  %v4541_v49 = vld [vmem:[%s4821_s14 + $0x374] sm:$0xf0]  ;;  %v3782_v52 = vor.u32 %v4537_v42, %v3779_v43  ;;  %v3522_v59 = vor.u32 %v4477_v48, %v3521_v47  ;;  %v4465_v60 = vld [vmem:[%s4821_s14 + $0x11c] sm:$0xf] }
  0xbf   : > { %1504 = vmatpush.bf16.msra.mxu1 %v3674_v62  ;;  %1524 = vmatpush.bf16.msra.mxu2 %v3390_v24  ;;  %v3491_v61 = vld [vmem:[%s4821_s14 + $0x138] sm:$0xf0]  ;;  %v3778_v23 = vor.u32 %v4541_v49, %v3777_v27  ;;  %v3489_v1 = vld [vmem:[%s4821_s14 + $0x118] sm:$0xf] }
  0xc0   : > { %v4529_v62 = vld [vmem:[%s4821_s14 + $0x31c] sm:$0xf]  ;;  %v3494_v24 = vor.u32 %v4465_v60, %v3491_v61  ;;  %v4469_v2 = vld [vmem:[%s4821_s14 + $0x134] sm:$0xf0] }
  0xc1   : > { %v3747_v0 = vld [vmem:[%s4821_s14 + $0x338] sm:$0xf0]  ;;  %v3745_v3 = vld [vmem:[%s4821_s14 + $0x318] sm:$0xf] }
  0xc2   : > { %1543 = vmatpush.bf16.msra.mxu3 %v3646_v55  ;;  %1486 = vmatpush.bf16.msra.mxu0 %v3386_v6  ;;  %v4533_v4 = vld [vmem:[%s4821_s14 + $0x334] sm:$0xf0]  ;;  %v3750_v5 = vor.u32 %v4529_v62, %v3747_v0  ;;  %v3490_v55 = vor.u32 %v4469_v2, %v3489_v1  ;;  %v4457_v7 = vld [vmem:[%s4821_s14 + $0xdc] sm:$0xf] }
  0xc3   : > { %1505 = vmatpush.bf16.msra.mxu1 %v3642_v8  ;;  %1525 = vmatpush.bf16.msra.mxu2 %v3358_v9  ;;  %v3746_v6 = vor.u32 %v4533_v4, %v3745_v3  ;;  %v3459_v8 = vld [vmem:[%s4821_s14 + $0xf8] sm:$0xf0]  ;;  %v3457_v14 = vld [vmem:[%s4821_s14 + $0xd8] sm:$0xf] }
  0xc4   : > { %v4521_v9 = vld [vmem:[%s4821_s14 + $0x2dc] sm:$0xf]  ;;  %v3462_v13 = vor.u32 %v4457_v7, %v3459_v8  ;;  %v4461_v15 = vld [vmem:[%s4821_s14 + $0xf4] sm:$0xf0] }
  0xc5   : > { %v3715_v53 = vld [vmem:[%s4821_s14 + $0x2f8] sm:$0xf0]  ;;  %v3713_v16 = vld [vmem:[%s4821_s14 + $0x2d8] sm:$0xf]  ;;  %v3458_v56 = vor.u32 %v4461_v15, %v3457_v14 }
  0xc6   : > { %1544 = vmatpush.bf16.msra.mxu3 %v3614_v17  ;;  %1487 = vmatpush.bf16.msra.mxu0 %v3354_v50  ;;  %v4525_v17 = vld [vmem:[%s4821_s14 + $0x2f4] sm:$0xf0]  ;;  %v4449_v50 = vld [vmem:[%s4821_s14 + $0x9c] sm:$0xf] }
  0xc7   : > { %1506 = vmatpush.bf16.msra.mxu1 %v3610_v44  ;;  %v3718_v44 = vor.u32 %v4521_v9, %v3715_v53  ;;  %v3427_v54 = vld [vmem:[%s4821_s14 + $0xb8] sm:$0xf0]  ;;  %v3714_v18 = vor.u32 %v4525_v17, %v3713_v16  ;;  %v3425_v57 = vld [vmem:[%s4821_s14 + $0x98] sm:$0xf]  ;;  %v4733_v53 = vld [vmem:[%s4920_s22] sm:$0x3f] }
  0xc8   : > { %1412 = vmatmul.bf16.vlgmr.msrb.gmra.mxu0 %v5011_v11  ;;  %1431 = vmatmul.bf16.vlgmr.msrb.gmra.mxu1 %v5013_v12  ;;  %v4513_v45 = vld [vmem:[%s4821_s14 + $0x29c] sm:$0xf]  ;;  %v3430_v19 = vor.u32 %v4449_v50, %v3427_v54  ;;  %v4517_v22 = vld [vmem:[%s4821_s14 + $0x2b4] sm:$0xf0]  ;;  %v5245_v14 = vperm.slane %v4733_v53, 3 }
  0xc9   : > { %1450 = vmatmul.bf16.vlgmr.msrb.gmra.mxu2 %v5011_v11  ;;  %1469 = vmatmul.bf16.vlgmr.msrb.gmra.mxu3 %v5013_v12  ;;  %v4441_v28 = vld [vmem:[%s4821_s14 + $0x5c] sm:$0xf]  ;;  %v3393_v36 = vld [vmem:[%s4821_s14 + $0x58] sm:$0xf]  ;;  %v4734_v50 = vld [vmem:[%s4920_s22 + $0x8] sm:$0x3f] }
  0xca   : > { %1594 = vmatpush.bf16.msrb.mxu2 %v3590_v20  ;;  %1613 = vmatpush.bf16.msrb.mxu3 %v3846_v25  ;;  %v3683_v20 = vld [vmem:[%s4821_s14 + $0x2b8] sm:$0xf0]  ;;  %v4453_v25 = vld [vmem:[%s4821_s14 + $0xb4] sm:$0xf0]  ;;  %v5254_v54 = vperm.slane %v4734_v50, 3 }
  0xcb   : > { %1556 = vmatpush.bf16.msrb.mxu0 %v3586_v58  ;;  %1575 = vmatpush.bf16.msrb.mxu1 %v3842_v30  ;;  %v3681_v58 = vld [vmem:[%s4821_s14 + $0x298] sm:$0xf]  ;;  %v3395_v29 = vld [vmem:[%s4821_s14 + $0x78] sm:$0xf0]  ;;  %v3686_v30 = vor.u32 %v4513_v45, %v3683_v20  ;;  %v3426_v31 = vor.u32 %v4453_v25, %v3425_v57 }
  0xcc   : > { %v4505_v32 = vld [vmem:[%s4821_s14 + $0x25c] sm:$0xf]  ;;  %v3398_v35 = vor.u32 %v4441_v28, %v3395_v29  ;;  %v4445_v37 = vld [vmem:[%s4821_s14 + $0x74] sm:$0xf0] }
  0xcd   : > { %v3651_v33 = vld [vmem:[%s4821_s14 + $0x278] sm:$0xf0]  ;;  %v3361_v27 = vld [vmem:[%s4821_s14 + $0x18] sm:$0xf] }
  0xce   : > { %1595 = vmatpush.bf16.msrb.mxu2 %v3558_v34  ;;  %1614 = vmatpush.bf16.msrb.mxu3 %v3814_v38  ;;  %v3682_v34 = vor.u32 %v4517_v22, %v3681_v58  ;;  %v3649_v38 = vld [vmem:[%s4821_s14 + $0x258] sm:$0xf]  ;;  %v4433_v26 = vld [vmem:[%s4821_s14 + $0x1c] sm:$0xf]  ;;  %v3654_v40 = vor.u32 %v4505_v32, %v3651_v33 }
  0xcf   : > { %1557 = vmatpush.bf16.msrb.mxu0 %v3554_v63  ;;  %1576 = vmatpush.bf16.msrb.mxu1 %v3810_v41  ;;  %v4509_v63 = vld [vmem:[%s4821_s14 + $0x274] sm:$0xf0]  ;;  %v3363_v39 = vld [vmem:[%s4821_s14 + $0x38] sm:$0xf0]  ;;  %v3394_v41 = vor.u32 %v4445_v37, %v3393_v36  ;;  %v4073_v36 = vld [vmem:[%s5277_s27 + $0x1c0] sm:$0xf] }
  0xd0   : > { %v4497_v42 = vld [vmem:[%s4821_s14 + $0x21c] sm:$0xf]  ;;  %v3650_v43 = vor.u32 %v4509_v63, %v3649_v38  ;;  %v3366_v47 = vor.u32 %v4433_v26, %v3363_v39  ;;  %v4437_v49 = vld [vmem:[%s4821_s14 + $0x34] sm:$0xf0]  ;;  %v4618_v37 = vld [vmem:[%s5277_s27 + $0x1dc] sm:$0xf0] }
  0xd1   : > { %v3619_v48 = vld [vmem:[%s4821_s14 + $0x238] sm:$0xf0]  ;;  %v3362_v60 = vor.u32 %v4437_v49, %v3361_v27  ;;  %v4614_v38 = vld [vmem:[%s5277_s27 + $0x1c4] sm:$0xf]  ;;  %v4074_v63 = vor.u32 %v4618_v37, %v4073_v36  ;;  %v4610_v27 = vld [vmem:[%s5277_s27 + $0x19c] sm:$0xf0] }
  0xd2   : > { %1596 = vmatpush.bf16.msrb.mxu2 %v3526_v51  ;;  %1615 = vmatpush.bf16.msrb.mxu3 %v3782_v52  ;;  %v3617_v51 = vld [vmem:[%s4821_s14 + $0x218] sm:$0xf]  ;;  %v4075_v26 = vld [vmem:[%s5277_s27 + $0x1e0] sm:$0xf0] }
  0xd3   : > { %1558 = vmatpush.bf16.msrb.mxu0 %v3522_v59  ;;  %1577 = vmatpush.bf16.msrb.mxu1 %v3778_v23  ;;  %v4501_v52 = vld [vmem:[%s4821_s14 + $0x234] sm:$0xf0]  ;;  %v3622_v59 = vor.u32 %v4497_v42, %v3619_v48  ;;  %v4078_v39 = vor.u32 %v4614_v38, %v4075_v26  ;;  %v4041_v48 = vld [vmem:[%s5277_s27 + $0x180] sm:$0xf]  ;;  %v4606_v49 = vld [vmem:[%s5277_s27 + $0x184] sm:$0xf] }
  0xd4   : > { %v3618_v61 = vor.u32 %v4501_v52, %v3617_v51  ;;  %v3977_v38 = vld [vmem:[%s5277_s27 + $0x100] sm:$0xf]  ;;  %v4590_v26 = vld [vmem:[%s5277_s27 + $0x104] sm:$0xf]  ;;  %s3334_s14 = sshll.u32 %s5851_s25, 3 }
  0xd5   : > { %s370_s17 = scalar_lea.vmem %s5849_s7, %s3334_s14 }
  0xd6   : > { %1597 = vmatpush.bf16.msrb.mxu2 %v3494_v24  ;;  %1616 = vmatpush.bf16.msrb.mxu3 %v3750_v5 }
  0xd7   : > { %1559 = vmatpush.bf16.msrb.mxu0 %v3490_v55  ;;  %1578 = vmatpush.bf16.msrb.mxu1 %v3746_v6  ;;  %v5240_v55 = vperm.slane %v4934_v21, 2 }
  0xd8   : > { %1417 = vmatmul.bf16.gmra.mxu0 %v5099_v46  ;;  %1436 = vmatmul.bf16.gmra.mxu1 %v5101_v10 }
  0xd9   : > { %1455 = vmatmul.bf16.gmra.mxu2 %v5099_v46  ;;  %1474 = vmatmul.bf16.gmra.mxu3 %v5101_v10 }
  0xda   : > { %1598 = vmatpush.bf16.msrb.mxu2 %v3462_v13  ;;  %1617 = vmatpush.bf16.msrb.mxu3 %v3718_v44  ;;  %v5252_v44 = vperm.slane %v4734_v50, 2  ;;  %v4011_v50 = vld [vmem:[%s5277_s27 + $0x160] sm:$0xf0] }
  0xdb   : > { %1560 = vmatpush.bf16.msrb.mxu0 %v3458_v56  ;;  %1579 = vmatpush.bf16.msrb.mxu1 %v3714_v18 }
  0xde   : > { %1599 = vmatpush.bf16.msrb.mxu2 %v3430_v19  ;;  %1618 = vmatpush.bf16.msrb.mxu3 %v3686_v30 }
  0xdf   : > { %1561 = vmatpush.bf16.msrb.mxu0 %v3426_v31  ;;  %1580 = vmatpush.bf16.msrb.mxu1 %v3682_v34 }
  0xe2   : > { %1600 = vmatpush.bf16.msrb.mxu2 %v3398_v35  ;;  %1619 = vmatpush.bf16.msrb.mxu3 %v3654_v40 }
  0xe3   : > { %1562 = vmatpush.bf16.msrb.mxu0 %v3394_v41  ;;  %1581 = vmatpush.bf16.msrb.mxu1 %v3650_v43 }
  0xe6   : > { %1601 = vmatpush.bf16.msrb.mxu2 %v3366_v47  ;;  %1620 = vmatpush.bf16.msrb.mxu3 %v3622_v59  ;;  %v4042_v59 = vor.u32 %v4610_v27, %v4041_v48  ;;  %v4662_v48 = vld [vmem:[%s5277_s27 + $0x344] sm:$0xf] }
  0xe7   : > { %1563 = vmatpush.bf16.msrb.mxu0 %v3362_v60  ;;  %1582 = vmatpush.bf16.msrb.mxu1 %v3618_v61  ;;  %v4043_v60 = vld [vmem:[%s5277_s27 + $0x1a0] sm:$0xf0] }
  0xe8   : > { %1488 = vmatmul.bf16.vlgmr.msra.gmra.mxu0 %v5011_v11  ;;  %1507 = vmatmul.bf16.vlgmr.msra.gmra.mxu1 %v5013_v12  ;;  %v4046_v61 = vor.u32 %v4606_v49, %v4043_v60  ;;  %v4267_v27 = vld [vmem:[%s5277_s27 + $0x360] sm:$0xf0]  ;;  %v4265_v49 = vld [vmem:[%s5277_s27 + $0x340] sm:$0xf] }
  0xe9   : > { %1526 = vmatmul.bf16.vlgmr.msra.gmra.mxu2 %v5011_v11  ;;  %1545 = vmatmul.bf16.vlgmr.msra.gmra.mxu3 %v5013_v12 }
  0xea   : > { %2574 = vmatpush.bf16.msra.mxu2 %v4078_v39 }
  0xeb   : > { %2518 = vmatpush.bf16.msra.mxu0 %v4074_v63  ;;  %v4594_v63 = vld [vmem:[%s5277_s27 + $0x11c] sm:$0xf0] }
  0xee   : > { %2575 = vmatpush.bf16.msra.mxu2 %v4046_v61 }
  0xef   : > { %2519 = vmatpush.bf16.msra.mxu0 %v4042_v59  ;;  %v4666_v59 = vld [vmem:[%s5277_s27 + $0x35c] sm:$0xf0] }
  0xf8   : > { %1493 = vmatmul.bf16.gmra.mxu0 %v5099_v46  ;;  %1512 = vmatmul.bf16.gmra.mxu1 %v5101_v10 }
  0xf9   : > { %1531 = vmatmul.bf16.gmra.mxu2 %v5099_v46  ;;  %1550 = vmatmul.bf16.gmra.mxu3 %v5101_v10 }
 0x108   : > { %1564 = vmatmul.bf16.vlgmr.msrb.gmra.mxu0 %v5011_v11  ;;  %1583 = vmatmul.bf16.vlgmr.msrb.gmra.mxu1 %v5013_v12 }
 0x109   : > { %1602 = vmatmul.bf16.vlgmr.msrb.gmra.mxu2 %v5011_v11  ;;  %1621 = vmatmul.bf16.vlgmr.msrb.gmra.mxu3 %v5013_v12 }
 0x118   : > { %1569 = vmatmul.bf16.gmra.mxu0 %v5099_v46  ;;  %1588 = vmatmul.bf16.gmra.mxu1 %v5101_v10 }
 0x119   : > { %1607 = vmatmul.bf16.gmra.mxu2 %v5099_v46  ;;  %1626 = vmatmul.bf16.gmra.mxu3 %v5101_v10 }
 0x11a   : > { %v1337_v23 = vpop.f32.mrf.mxu0  ;;  %v1356_v62 = vpop.f32.mrf.mxu1 }
 0x11b   : > { %v5227_v24 = vadd.f32 %v1356_v62, %v1337_v23  ;;  %v4678_v23 = vld [vmem:[%s5277_s27 + $0x3c4] sm:$0xf] }
 0x11c   : > { %v4331_v62 = vld [vmem:[%s5277_s27 + $0x3e0] sm:$0xf0] }
 0x121   : > { %v1375_v0 = vpop.f32.mrf.mxu2  ;;  %v1394_v1 = vpop.f32.mrf.mxu3 }
 0x122   : > { %v5229_v2 = vadd.f32 %v1394_v1, %v1375_v0  ;;  %v5231_v11 = vpop.f32.mrf.mxu0  ;;  %v5233_v12 = vpop.f32.mrf.mxu1  ;;  %v4329_v0 = vld [vmem:[%s5277_s27 + $0x3c0] sm:$0xf] }
 0x129   : > { %v5235_v3 = vpop.f32.mrf.mxu2  ;;  %v5237_v4 = vpop.f32.mrf.mxu3 }
 0x135   : > { %v1342_v46 = vpop.f32.mrf.mxu0  ;;  %v1361_v10 = vpop.f32.mrf.mxu1 }
 0x136   : > { %v1362_v5 = vadd.f32 %v1361_v10, %v1342_v46  ;;  %v4334_v46 = vor.u32 %v4678_v23, %v4331_v62  ;;  %v4682_v10 = vld [vmem:[%s5277_s27 + $0x3dc] sm:$0xf0] }
 0x137   : > { %v3945_v23 = vld [vmem:[%s5277_s27 + $0xc0] sm:$0xf] }
 0x138   : > { %2602 = vmatpush.bf16.msra.mxu3 %v4334_v46  ;;  %v4586_v62 = vld [vmem:[%s5277_s27 + $0xdc] sm:$0xf0]  ;;  %v3947_v46 = vld [vmem:[%s5277_s27 + $0xe0] sm:$0xf0] }
 0x13c   : > { %v1380_v6 = vpop.f32.mrf.mxu2  ;;  %v1399_v7 = vpop.f32.mrf.mxu3 }
 0x13d   : > { %v5242_v8 = vadd.f32 %v1399_v7, %v1380_v6  ;;  %v1344_v9 = vpop.f32.mrf.mxu0  ;;  %v1363_v13 = vpop.f32.mrf.mxu1  ;;  %v4330_v6 = vor.u32 %v4682_v10, %v4329_v0  ;;  %v4009_v7 = vld [vmem:[%s5277_s27 + $0x140] sm:$0xf]  ;;  %v4582_v0 = vld [vmem:[%s5277_s27 + $0xc4] sm:$0xf] }
 0x13e   : > { %v1364_v15 = vadd.f32 %v1363_v13, %v1344_v9  ;;  %v4602_v9 = vld [vmem:[%s5277_s27 + $0x15c] sm:$0xf0]  ;;  %v4598_v13 = vld [vmem:[%s5277_s27 + $0x144] sm:$0xf] }
 0x13f   : > { %2546 = vmatpush.bf16.msra.mxu1 %v4330_v6  ;;  %v3950_v6 = vor.u32 %v4582_v0, %v3947_v46 }
 0x140   : > { %v1714_v16 = vmul.f32 %v5240_v55, %v1364_v15 }
 0x142   : > { %v5249_v17 = vadd.f32 %v1714_v16, %v5245_v14  ;;  %v4010_v16 = vor.u32 %v4602_v9, %v4009_v7  ;;  %v4654_v7 = vld [vmem:[%s5277_s27 + $0x304] sm:$0xf] }
 0x143   : > { %v4235_v9 = vld [vmem:[%s5277_s27 + $0x320] sm:$0xf0] }
 0x144   : > { %v1382_v21 = vpop.f32.mrf.mxu2  ;;  %v1401_v56 = vpop.f32.mrf.mxu3  ;;  %2520 = vmatpush.bf16.msra.mxu0 %v4010_v16  ;;  %v4238_v16 = vor.u32 %v4654_v7, %v4235_v9  ;;  %v4558_v7 = vld [vmem:[%s5277_s27 + $0x4] sm:$0xf] }
 0x145   : > { %v1402_v45 = vadd.f32 %v1401_v56, %v1382_v21  ;;  %v1413_v20 = vpop.f32.mrf.mxu0  ;;  %v1432_v18 = vpop.f32.mrf.mxu1  ;;  %v4670_v21 = vld [vmem:[%s5277_s27 + $0x384] sm:$0xf] }
 0x146   : > { %v5256_v19 = vadd.f32 %v1432_v18, %v1413_v20  ;;  %v4299_v56 = vld [vmem:[%s5277_s27 + $0x3a0] sm:$0xf0] }
 0x147   : > { %v1715_v57 = vmul.f32 %v5252_v44, %v1402_v45 }
 0x149   : > { %v5260_v25 = vadd.f32 %v1715_v57, %v5254_v54  ;;  %v4302_v57 = vor.u32 %v4670_v21, %v4299_v56 }
 0x14b   : > { %2603 = vmatpush.bf16.msra.mxu3 %v4302_v57  ;;  %v4578_v57 = vld [vmem:[%s5277_s27 + $0x9c] sm:$0xf0] }
 0x14c   : > { %v1451_v58 = vpop.f32.mrf.mxu2  ;;  %v1470_v22 = vpop.f32.mrf.mxu3 }
 0x14d   : > { %v5262_v28 = vadd.f32 %v1470_v22, %v1451_v58  ;;  %v5264_v29 = vpop.f32.mrf.mxu0  ;;  %v5266_v30 = vpop.f32.mrf.mxu1  ;;  %v4297_v58 = vld [vmem:[%s5277_s27 + $0x380] sm:$0xf] }
 0x14e   : > { %v4674_v22 = vld [vmem:[%s5277_s27 + $0x39c] sm:$0xf0] }
 0x14f   : > { %v4298_v37 = vor.u32 %v4674_v22, %v4297_v58  ;;  %v4574_v22 = vld [vmem:[%s5277_s27 + $0x84] sm:$0xf] }
 0x151   : > { %2547 = vmatpush.bf16.msra.mxu1 %v4298_v37 }
 0x154   : > { %v5268_v31 = vpop.f32.mrf.mxu2  ;;  %v5270_v32 = vpop.f32.mrf.mxu3 }
 0x155   : > { %v1418_v33 = vpop.f32.mrf.mxu0  ;;  %v1437_v34 = vpop.f32.mrf.mxu1 }
 0x156   : > { %v1438_v35 = vadd.f32 %v1437_v34, %v1418_v33 }
 0x158   : > { %v1696_v51 = vmul.f32 %v5240_v55, %v1438_v35 }
 0x15a   : > { %v1698_v53 = vadd.f32 %v1696_v51, %v5245_v14 }
 0x15c   : > { %v1456_v40 = vpop.f32.mrf.mxu2  ;;  %v1475_v41 = vpop.f32.mrf.mxu3  ;;  %v1700_v39 = vmax.f32 %v1698_v53, 0.0 }
 0x15d   : > { %v1476_v42 = vadd.f32 %v1475_v41, %v1456_v40  ;;  %v1420_v43 = vpop.f32.mrf.mxu0  ;;  %v1439_v47 = vpop.f32.mrf.mxu1  ;;  %v3978_v41 = vor.u32 %v4594_v63, %v3977_v38  ;;  %v4646_v38 = vld [vmem:[%s5277_s27 + $0x2c4] sm:$0xf] }
 0x15e   : > { %v1440_v52 = vadd.f32 %v1439_v47, %v1420_v43  ;;  %v4203_v63 = vld [vmem:[%s5277_s27 + $0x2e0] sm:$0xf0] }
 0x15f   : > { %v1697_v33 = vmul.f32 %v5252_v44, %v1476_v42  ;;  %v3979_v42 = vld [vmem:[%s5277_s27 + $0x120] sm:$0xf0]  ;;  %2521 = vmatpush.bf16.msra.mxu0 %v3978_v41 }
 0x160   : > { %v1704_v1 = vadd.f32 %v1440_v52, %v1362_v5  ;;  %v4014_v5 = vor.u32 %v4598_v13, %v4011_v50  ;;  %v3982_v47 = vor.u32 %v4590_v26, %v3979_v42  ;;  %v4270_v52 = vor.u32 %v4662_v48, %v4267_v27  ;;  %v4233_v13 = vld [vmem:[%s5277_s27 + $0x300] sm:$0xf]  ;;  %v3883_v27 = vld [vmem:[%s5277_s27 + $0x60] sm:$0xf0] }
 0x161   : > { %v1699_v60 = vadd.f32 %v1697_v33, %v5254_v54  ;;  %v4658_v50 = vld [vmem:[%s5277_s27 + $0x31c] sm:$0xf0]  ;;  %v3915_v33 = vld [vmem:[%s5277_s27 + $0xa0] sm:$0xf0] }
 0x162   : > { %v1706_v15 = vmul.f32 %v1704_v1, %v5240_v55  ;;  %2576 = vmatpush.bf16.msra.mxu2 %v4014_v5  ;;  %2604 = vmatpush.bf16.msra.mxu3 %v4270_v52  ;;  %v3946_v1 = vor.u32 %v4586_v62, %v3945_v23  ;;  %v3918_v37 = vor.u32 %v4574_v22, %v3915_v33  ;;  %v4201_v26 = vld [vmem:[%s5277_s27 + $0x2c0] sm:$0xf]  ;;  %v4638_v52 = vld [vmem:[%s5277_s27 + $0x284] sm:$0xf] }
 0x163   : > { %v1701_v5 = vmax.f32 %v1699_v60, 0.0  ;;  %v3881_v42 = vld [vmem:[%s5277_s27 + $0x40] sm:$0xf]  ;;  %v4107_v22 = vld [vmem:[%s5277_s27 + $0x220] sm:$0xf0] }
 0x164   : > { %v1708_v45 = vadd.f32 %v1706_v15, %v5245_v14  ;;  %v1458_v20 = vpop.f32.mrf.mxu2  ;;  %v1477_v18 = vpop.f32.mrf.mxu3  ;;  %2522 = vmatpush.bf16.msra.mxu0 %v3946_v1  ;;  %v4169_v60 = vld [vmem:[%s5277_s27 + $0x280] sm:$0xf] }
 0x165   : > { %v1478_v34 = vadd.f32 %v1477_v18, %v1458_v20  ;;  %v5304_v35 = vpop.f32.mrf.mxu0  ;;  %v5306_v36 = vpop.f32.mrf.mxu1  ;;  %v4234_v20 = vor.u32 %v4658_v50, %v4233_v13  ;;  %v3913_v18 = vld [vmem:[%s5277_s27 + $0x80] sm:$0xf]  ;;  %v3851_v13 = vld [vmem:[%s5277_s27 + $0x20] sm:$0xf0] }
 0x166   : > { %v1710_v40 = vmax.f32 %v1708_v45, 0.0  ;;  %2577 = vmatpush.bf16.msra.mxu2 %v3982_v47  ;;  %2605 = vmatpush.bf16.msra.mxu3 %v4238_v16  ;;  %v3914_v58 = vor.u32 %v4578_v57, %v3913_v18  ;;  %v4566_v47 = vld [vmem:[%s5277_s27 + $0x44] sm:$0xf]  ;;  %v4642_v62 = vld [vmem:[%s5277_s27 + $0x29c] sm:$0xf0]  ;;  %v3854_v16 = vor.u32 %v4558_v7, %v3851_v13 }
 0x167   : > { %v1705_v43 = vadd.f32 %v1478_v34, %v5242_v8  ;;  %v4266_v8 = vor.u32 %v4666_v59, %v4265_v49  ;;  %v3886_v49 = vor.u32 %v4566_v47, %v3883_v27  ;;  %v4171_v59 = vld [vmem:[%s5277_s27 + $0x2a0] sm:$0xf0]  ;;  %v4170_v46 = vor.u32 %v4642_v62, %v4169_v60  ;;  %v4634_v18 = vld [vmem:[%s5277_s27 + $0x25c] sm:$0xf0]  ;;  %v4615_v27 = vld [vmem:[%s5277_s27 + $0x1cc] sm:$0xf] }
 0x168   : > { %v5316_v51 = vpack.c.bf16 %v1710_v40, %v1700_v39  ;;  %2523 = vmatpush.bf16.msra.mxu0 %v3914_v58  ;;  %v4206_v39 = vor.u32 %v4646_v38, %v4203_v63  ;;  %v4650_v40 = vld [vmem:[%s5277_s27 + $0x2dc] sm:$0xf0]  ;;  %v4174_v23 = vor.u32 %v4638_v52, %v4171_v59  ;;  %v4630_v50 = vld [vmem:[%s5277_s27 + $0x244] sm:$0xf]  ;;  %v4679_v52 = vld [vmem:[%s5277_s27 + $0x3cc] sm:$0xf] }
 0x169   : > { %v1707_v61 = vmul.f32 %v1705_v43, %v5252_v44  ;;  %2548 = vmatpush.bf16.msra.mxu1 %v4266_v8  ;;  %v4202_v41 = vor.u32 %v4650_v40, %v4201_v26  ;;  %v4570_v43 = vld [vmem:[%s5277_s27 + $0x5c] sm:$0xf0]  ;;  %v4622_v58 = vld [vmem:[%s5277_s27 + $0x204] sm:$0xf]  ;;  %v4339_v60 = vld [vmem:[%s5277_s27 + $0x3e8] sm:$0xf0] }
 0x16a   : > { %2578 = vmatpush.bf16.msra.mxu2 %v3950_v6  ;;  %2606 = vmatpush.bf16.msra.mxu3 %v4206_v39  ;;  %v3882_v48 = vor.u32 %v4570_v43, %v3881_v42  ;;  %v4562_v6 = vld [vmem:[%s5277_s27 + $0x1c] sm:$0xf0]  ;;  %v4110_v38 = vor.u32 %v4622_v58, %v4107_v22  ;;  %v4342_v62 = vor.u32 %v4679_v52, %v4339_v60  ;;  %v4607_v58 = vld [vmem:[%s5277_s27 + $0x18c] sm:$0xf]  ;;  %v4305_v52 = vld [vmem:[%s5277_s27 + $0x388] sm:$0xf] }
 0x16b   : > { %v1709_v10 = vadd.f32 %v1707_v61, %v5254_v54  ;;  %v4105_v63 = vld [vmem:[%s5277_s27 + $0x200] sm:$0xf]  ;;  %v4051_v22 = vld [vmem:[%s5277_s27 + $0x1a8] sm:$0xf0] }
 0x16c   : > { %v5329_v53 = vpop.f32.mrf.mxu2  ;;  %v5331_v15 = vpop.f32.mrf.mxu3  ;;  %2524 = vmatpush.bf16.msra.mxu0 %v3882_v48  ;;  %v4626_v26 = vld [vmem:[%s5277_s27 + $0x21c] sm:$0xf0] }
 0x16d   : > { %v1711_v21 = vmax.f32 %v1709_v10, 0.0  ;;  %v5334_v56 = vpop.f32.mrf.mxu0  ;;  %v5336_v45 = vpop.f32.mrf.mxu1  ;;  %2549 = vmatpush.bf16.msra.mxu1 %v4234_v20  ;;  %v3849_v10 = vld [vmem:[%s5277_s27] sm:$0xf] }
 0x16e   : > { %2579 = vmatpush.bf16.msra.mxu2 %v3918_v37  ;;  %2607 = vmatpush.bf16.msra.mxu3 %v4174_v23  ;;  %v3850_v9 = vor.u32 %v4562_v6, %v3849_v10 }
 0x16f   : > { %v5342_v34 = vpack.c.bf16 %v1711_v21, %v1701_v5  ;;  %v4139_v5 = vld [vmem:[%s5277_s27 + $0x260] sm:$0xf0]  ;;  %v4137_v21 = vld [vmem:[%s5277_s27 + $0x240] sm:$0xf] }
 0x170   : > { %2525 = vmatpush.bf16.msra.mxu0 %v3850_v9  ;;  %v4142_v20 = vor.u32 %v4630_v50, %v4139_v5  ;;  %v4138_v57 = vor.u32 %v4634_v18, %v4137_v21  ;;  %v1509_v9 = vadd.f32 %v5306_v36, %v5304_v35  ;;  %v4081_v50 = vld [vmem:[%s5277_s27 + $0x1c8] sm:$0xf]  ;;  %v4671_v35 = vld [vmem:[%s5277_s27 + $0x38c] sm:$0xf] }
 0x171   : > { %2550 = vmatpush.bf16.msra.mxu1 %v4202_v41  ;;  %v4106_v41 = vor.u32 %v4626_v26, %v4105_v63  ;;  %v4619_v5 = vld [vmem:[%s5277_s27 + $0x1e4] sm:$0xf0]  ;;  %v4054_v26 = vor.u32 %v4607_v58, %v4051_v22  ;;  %v4307_v36 = vld [vmem:[%s5277_s27 + $0x3a8] sm:$0xf0] }
 0x172   : > { %2580 = vmatpush.bf16.msra.mxu2 %v3886_v49  ;;  %2608 = vmatpush.bf16.msra.mxu3 %v4142_v20  ;;  %v4083_v49 = vld [vmem:[%s5277_s27 + $0x1e8] sm:$0xf0]  ;;  %v4337_v21 = vld [vmem:[%s5277_s27 + $0x3c8] sm:$0xf]  ;;  %v4082_v18 = vor.u32 %v4619_v5, %v4081_v50  ;;  %v1547_v5 = vadd.f32 %v5331_v15, %v5329_v53 }
 0x173   : > { %v4086_v59 = vor.u32 %v4615_v27, %v4083_v49  ;;  %v4310_v27 = vor.u32 %v4671_v35, %v4307_v36  ;;  %v4611_v49 = vld [vmem:[%s5277_s27 + $0x1a4] sm:$0xf0] }
 0x174   : > { %v5355_v61 = vpop.f32.mrf.mxu2  ;;  %v5357_v8 = vpop.f32.mrf.mxu3  ;;  %2630 = vmatpush.bf16.msrb.mxu0 %v4082_v18  ;;  %v4017_v50 = vld [vmem:[%s5277_s27 + $0x148] sm:$0xf] }
 0x175   : > { %v5360_v0 = vpop.f32.mrf.mxu0  ;;  %v5362_v1 = vpop.f32.mrf.mxu1  ;;  %2551 = vmatpush.bf16.msra.mxu1 %v4170_v46  ;;  %v4603_v22 = vld [vmem:[%s5277_s27 + $0x164] sm:$0xf0] }
 0x176   : > { %2581 = vmatpush.bf16.msra.mxu2 %v3854_v16  ;;  %2609 = vmatpush.bf16.msra.mxu3 %v4110_v38  ;;  %v4018_v53 = vor.u32 %v4603_v22, %v4017_v50  ;;  %v3985_v22 = vld [vmem:[%s5277_s27 + $0x108] sm:$0xf] }
 0x179   : > { %2552 = vmatpush.bf16.msra.mxu1 %v4138_v57  ;;  %v4683_v57 = vld [vmem:[%s5277_s27 + $0x3e4] sm:$0xf0] }
 0x17a   : > { %2686 = vmatpush.bf16.msrb.mxu2 %v4086_v59  ;;  %2714 = vmatpush.bf16.msrb.mxu3 %v4342_v62  ;;  %v4338_v63 = vor.u32 %v4683_v57, %v4337_v21  ;;  %v4675_v59 = vld [vmem:[%s5277_s27 + $0x3a4] sm:$0xf0]  ;;  %v4599_v62 = vld [vmem:[%s5277_s27 + $0x14c] sm:$0xf] }
 0x17c   : > { %v5374_v33 = vpop.f32.mrf.mxu2  ;;  %v5376_v37 = vpop.f32.mrf.mxu3 }
 0x17d   : > { %v5380_v39 = vpop.f32.mrf.mxu0  ;;  %v5382_v40 = vpop.f32.mrf.mxu1  ;;  %2553 = vmatpush.bf16.msra.mxu1 %v4106_v41  ;;  %v4049_v41 = vld [vmem:[%s5277_s27 + $0x188] sm:$0xf] }
 0x17e   : > { %2687 = vmatpush.bf16.msrb.mxu2 %v4054_v26  ;;  %v4050_v60 = vor.u32 %v4611_v49, %v4049_v41  ;;  %2715 = vmatpush.bf16.msrb.mxu3 %v4310_v27  ;;  %v4667_v26 = vld [vmem:[%s5277_s27 + $0x364] sm:$0xf0] }
 0x180   : > { %2631 = vmatpush.bf16.msrb.mxu0 %v4050_v60  ;;  %v3987_v60 = vld [vmem:[%s5277_s27 + $0x128] sm:$0xf0] }
 0x181   : > { %2658 = vmatpush.bf16.msrb.mxu1 %v4338_v63  ;;  %v4273_v63 = vld [vmem:[%s5277_s27 + $0x348] sm:$0xf] }
 0x182   : > { %v4274_v15 = vor.u32 %v4667_v26, %v4273_v63  ;;  %v4595_v63 = vld [vmem:[%s5277_s27 + $0x124] sm:$0xf0] }
 0x184   : > { %v5384_v42 = vpop.f32.mrf.mxu2  ;;  %v5386_v43 = vpop.f32.mrf.mxu3  ;;  %2632 = vmatpush.bf16.msrb.mxu0 %v4018_v53  ;;  %v4647_v53 = vld [vmem:[%s5277_s27 + $0x2cc] sm:$0xf] }
 0x185   : > { %v1565_v47 = vpop.f32.mrf.mxu0  ;;  %v1584_v48 = vpop.f32.mrf.mxu1 }
 0x186   : > { %v1585_v23 = vadd.f32 %v1584_v48, %v1565_v47 }
 0x188   : > { %v1634_v13 = vmul.f32 %v5240_v55, %v1585_v23  ;;  %v4306_v23 = vor.u32 %v4675_v59, %v4305_v52  ;;  %v1511_v52 = vadd.f32 %v5336_v45, %v5334_v56  ;;  %v4591_v59 = vld [vmem:[%s5277_s27 + $0x10c] sm:$0xf] }
 0x18a   : > { %v1638_v47 = vadd.f32 %v5245_v14, %v1634_v13  ;;  %v4663_v13 = vld [vmem:[%s5277_s27 + $0x34c] sm:$0xf]  ;;  %2659 = vmatpush.bf16.msrb.mxu1 %v4306_v23 }
 0x18b   : > { %v4655_v23 = vld [vmem:[%s5277_s27 + $0x30c] sm:$0xf] }
 0x18c   : > { %v1603_v46 = vpop.f32.mrf.mxu2  ;;  %v1622_v10 = vpop.f32.mrf.mxu3  ;;  %v1640_v35 = vmax.f32 %v1638_v47, 0.0 }
 0x18d   : > { %v1567_v6 = vpop.f32.mrf.mxu0  ;;  %v1586_v7 = vpop.f32.mrf.mxu1  ;;  %v1623_v38 = vadd.f32 %v1622_v10, %v1603_v46  ;;  %v4019_v46 = vld [vmem:[%s5277_s27 + $0x168] sm:$0xf0] }
 0x18e   : > { %v1587_v16 = vadd.f32 %v1586_v7, %v1567_v6  ;;  %2660 = vmatpush.bf16.msrb.mxu1 %v4274_v15  ;;  %v4211_v15 = vld [vmem:[%s5277_s27 + $0x2e8] sm:$0xf0] }
 0x18f   : > { %v1635_v21 = vmul.f32 %v5252_v44, %v1623_v38 }
 0x190   : > { %v1644_v20 = vadd.f32 %v1587_v16, %v1509_v9  ;;  %v4022_v9 = vor.u32 %v4599_v62, %v4019_v46  ;;  %v4275_v16 = vld [vmem:[%s5277_s27 + $0x368] sm:$0xf0] }
 0x191   : > { %v4278_v58 = vor.u32 %v4663_v13, %v4275_v16  ;;  %v1639_v49 = vadd.f32 %v5254_v54, %v1635_v21  ;;  %v4243_v46 = vld [vmem:[%s5277_s27 + $0x328] sm:$0xf0]  ;;  %v1654_v16 = vmul.f32 %v5240_v55, %v1511_v52  ;;  %v1435_v21 = vadd.f32 %v5266_v30, %v5264_v29 }
 0x192   : > { %v1646_v48 = vmul.f32 %v1644_v20, %v5240_v55  ;;  %2688 = vmatpush.bf16.msrb.mxu2 %v4022_v9  ;;  %v4246_v9 = vor.u32 %v4655_v23, %v4243_v46  ;;  %v1514_v29 = vadd.f32 %v5362_v1, %v5360_v0  ;;  %v3986_v30 = vor.u32 %v4595_v63, %v3985_v22 }
 0x193   : > { %2716 = vmatpush.bf16.msrb.mxu3 %v4278_v58  ;;  %v1641_v56 = vmax.f32 %v1639_v49, 0.0  ;;  %v1656_v26 = vadd.f32 %v1654_v16, %v5245_v14  ;;  %v4214_v52 = vor.u32 %v4647_v53, %v4211_v15 }
 0x194   : > { %v1648_v10 = vadd.f32 %v1646_v48, %v5245_v14  ;;  %v1605_v6 = vpop.f32.mrf.mxu2  ;;  %v1624_v7 = vpop.f32.mrf.mxu3  ;;  %2633 = vmatpush.bf16.msrb.mxu0 %v3986_v30 }
 0x195   : > { %v1625_v20 = vadd.f32 %v1624_v7, %v1605_v6  ;;  %v1570_v18 = vpop.f32.mrf.mxu0  ;;  %v1589_v57 = vpop.f32.mrf.mxu1  ;;  %v1658_v0 = vmax.f32 %v1656_v26, 0.0  ;;  %v4179_v26 = vld [vmem:[%s5277_s27 + $0x2a8] sm:$0xf0] }
 0x196   : > { %v1650_v36 = vmax.f32 %v1648_v10, 0.0  ;;  %v1590_v41 = vadd.f32 %v1589_v57, %v1570_v18  ;;  %v1549_v18 = vadd.f32 %v5357_v8, %v5355_v61  ;;  %v3955_v61 = vld [vmem:[%s5277_s27 + $0xe8] sm:$0xf0] }
 0x197   : > { %v1645_v48 = vadd.f32 %v1625_v20, %v1547_v5  ;;  %2717 = vmatpush.bf16.msrb.mxu3 %v4246_v9  ;;  %v4209_v9 = vld [vmem:[%s5277_s27 + $0x2c8] sm:$0xf] }
 0x198   : > { %v5421_v38 = vpack.c.bf16 %v1650_v36, %v1640_v35  ;;  %v1662_v27 = vadd.f32 %v1590_v41, %v5256_v19  ;;  %v3990_v19 = vor.u32 %v4591_v59, %v3987_v60  ;;  %v4659_v35 = vld [vmem:[%s5277_s27 + $0x324] sm:$0xf0]  ;;  %v4583_v36 = vld [vmem:[%s5277_s27 + $0xcc] sm:$0xf]  ;;  %v1655_v59 = vmul.f32 %v5252_v44, %v1549_v18 }
 0x199   : > { %v1647_v47 = vmul.f32 %v1645_v48, %v5252_v44  ;;  %v3958_v48 = vor.u32 %v4583_v36, %v3955_v61  ;;  %v1516_v60 = vadd.f32 %v5382_v40, %v5380_v39  ;;  %v1552_v39 = vadd.f32 %v5376_v37, %v5374_v33  ;;  %v4177_v36 = vld [vmem:[%s5277_s27 + $0x288] sm:$0xf] }
 0x19a   : > { %2526 = vmatmul.bf16.vlgmr.msra.gmra.mxu0 %v5421_v38  ;;  %2582 = vmatmul.bf16.vlgmr.msra.gmra.mxu2 %v5421_v38  ;;  %v1664_v10 = vmul.f32 %v1662_v27, %v5240_v55  ;;  %v1672_v27 = vadd.f32 %v1435_v21, %v5227_v24  ;;  %v1473_v24 = vadd.f32 %v5270_v32, %v5268_v31  ;;  %v3953_v31 = vld [vmem:[%s5277_s27 + $0xc8] sm:$0xf] }
 0x19b   : > { %v1649_v62 = vadd.f32 %v1647_v47, %v5254_v54  ;;  %2689 = vmatpush.bf16.msrb.mxu2 %v3990_v19  ;;  %2718 = vmatpush.bf16.msrb.mxu3 %v4214_v52  ;;  %v4587_v32 = vld [vmem:[%s5277_s27 + $0xe4] sm:$0xf0]  ;;  %v1554_v21 = vadd.f32 %v5386_v43, %v5384_v42  ;;  %v4575_v42 = vld [vmem:[%s5277_s27 + $0x8c] sm:$0xf] }
 0x19c   : > { %v1608_v6 = vpop.f32.mrf.mxu2  ;;  %v1627_v7 = vpop.f32.mrf.mxu3  ;;  %v1666_v20 = vadd.f32 %v1664_v10, %v5245_v14  ;;  %v1674_v1 = vadd.f32 %v1672_v27, %v1514_v29  ;;  %v3923_v43 = vld [vmem:[%s5277_s27 + $0xa8] sm:$0xf0]  ;;  %v4643_v61 = vld [vmem:[%s5277_s27 + $0x2a4] sm:$0xf0] }
 0x19d   : > { %v1651_v45 = vmax.f32 %v1649_v62, 0.0  ;;  %v1628_v13 = vadd.f32 %v1627_v7, %v1608_v6  ;;  %v1572_v57 = vpop.f32.mrf.mxu0  ;;  %v1591_v58 = vpop.f32.mrf.mxu1  ;;  %v1359_v62 = vadd.f32 %v5233_v12, %v5231_v11  ;;  %v1657_v7 = vadd.f32 %v1655_v59, %v5254_v54 }
 0x19e   : > { %v1668_v49 = vmax.f32 %v1666_v20, 0.0  ;;  %v1592_v47 = vadd.f32 %v1591_v58, %v1572_v57  ;;  %v1673_v11 = vadd.f32 %v1473_v24, %v5229_v2  ;;  %v1397_v20 = vadd.f32 %v5237_v4, %v5235_v3  ;;  %v3921_v3 = vld [vmem:[%s5277_s27 + $0x88] sm:$0xf] }
 0x19f   : > { %v5437_v50 = vpack.c.bf16 %v1651_v45, %v1641_v56  ;;  %v1663_v5 = vadd.f32 %v1628_v13, %v5262_v28  ;;  %v4241_v28 = vld [vmem:[%s5277_s27 + $0x308] sm:$0xf]  ;;  %2690 = vmatpush.bf16.msrb.mxu2 %v3958_v48  ;;  %v1686_v40 = vadd.f32 %v1516_v60, %v1359_v62  ;;  %v3954_v45 = vor.u32 %v4587_v32, %v3953_v31  ;;  %v4623_v31 = vld [vmem:[%s5277_s27 + $0x20c] sm:$0xf] }
 0x1a0   : > { %v4242_v41 = vor.u32 %v4659_v35, %v4241_v28  ;;  %v5468_v19 = vpack.c.bf16 %v1668_v49, %v1658_v0  ;;  %v1676_v46 = vadd.f32 %v1674_v1, %v1592_v47  ;;  %v4651_v13 = vld [vmem:[%s5277_s27 + $0x2e4] sm:$0xf0]  ;;  %v1659_v33 = vmax.f32 %v1657_v7, 0.0  ;;  %v4567_v49 = vld [vmem:[%s5277_s27 + $0x4c] sm:$0xf] }
 0x1a1   : > { %2554 = vmatmul.bf16.vlgmr.msra.gmra.mxu1 %v5437_v50  ;;  %2610 = vmatmul.bf16.vlgmr.msra.gmra.mxu3 %v5437_v50  ;;  %v1665_v8 = vmul.f32 %v1663_v5, %v5252_v44  ;;  %v4210_v5 = vor.u32 %v4651_v13, %v4209_v9  ;;  %v1675_v37 = vadd.f32 %v1673_v11, %v1552_v39  ;;  %v4579_v4 = vld [vmem:[%s5277_s27 + $0xa4] sm:$0xf0]  ;;  %v3891_v47 = vld [vmem:[%s5277_s27 + $0x68] sm:$0xf0] }
 0x1a2   : > { %2661 = vmatpush.bf16.msrb.mxu1 %v4242_v41  ;;  %v1678_v16 = vmul.f32 %v1676_v46, %v5240_v55  ;;  %2634 = vmatpush.bf16.msrb.mxu0 %v3954_v45  ;;  %v1688_v2 = vmul.f32 %v1686_v40, %v5240_v55  ;;  %v1687_v22 = vadd.f32 %v1554_v21, %v1397_v20  ;;  %v4639_v55 = vld [vmem:[%s5277_s27 + $0x28c] sm:$0xf]  ;;  %v3889_v24 = vld [vmem:[%s5277_s27 + $0x48] sm:$0xf]  ;;  %v4089_v20 = vld [vmem:[%s5277_s27 + $0x1d0] sm:$0xf] }
 0x1a3   : > { %v1667_v23 = vadd.f32 %v1665_v8, %v5254_v54  ;;  %v3926_v28 = vor.u32 %v4575_v42, %v3923_v43  ;;  %v4182_v30 = vor.u32 %v4639_v55, %v4179_v26  ;;  %v3922_v35 = vor.u32 %v4579_v4, %v3921_v3  ;;  %v4147_v0 = vld [vmem:[%s5277_s27 + $0x268] sm:$0xf0]  ;;  %v4145_v62 = vld [vmem:[%s5277_s27 + $0x248] sm:$0xf]  ;;  %v4345_v42 = vld [vmem:[%s5277_s27 + $0x3d0] sm:$0xf] }
 0x1a4   : > { %v1610_v10 = vpop.f32.mrf.mxu2  ;;  %v1629_v6 = vpop.f32.mrf.mxu3  ;;  %v1680_v58 = vadd.f32 %v1678_v16, %v5245_v14  ;;  %v1690_v63 = vadd.f32 %v1688_v2, %v5245_v14  ;;  %v4178_v41 = vor.u32 %v4643_v61, %v4177_v36  ;;  %v1689_v48 = vmul.f32 %v1687_v22, %v5252_v44  ;;  %v3859_v7 = vld [vmem:[%s5277_s27 + $0x28] sm:$0xf0]  ;;  %v3857_v9 = vld [vmem:[%s5277_s27 + $0x8] sm:$0xf]  ;;  %v4347_v2 = vld [vmem:[%s5277_s27 + $0x3f0] sm:$0xf0] }
 0x1a5   : > { %v1669_v12 = vmax.f32 %v1667_v23, 0.0  ;;  %v1630_v56 = vadd.f32 %v1629_v6, %v1610_v10  ;;  %2691 = vmatpush.bf16.msrb.mxu2 %v3926_v28  ;;  %2719 = vmatpush.bf16.msrb.mxu3 %v4182_v30  ;;  %v3894_v59 = vor.u32 %v4567_v49, %v3891_v47  ;;  %v4571_v23 = vld [vmem:[%s5277_s27 + $0x64] sm:$0xf0]  ;;  %v4559_v6 = vld [vmem:[%s5277_s27 + $0xc] sm:$0xf]  ;;  %v1718_v55 = vmax.f32 %v5249_v17, 0.0 }
 0x1a6   : > { %2662 = vmatpush.bf16.msrb.mxu1 %v4210_v5  ;;  %v1682_v8 = vmax.f32 %v1680_v58, 0.0  ;;  %2635 = vmatpush.bf16.msrb.mxu0 %v3922_v35  ;;  %v1692_v14 = vmax.f32 %v1690_v63, 0.0  ;;  %v1691_v27 = vadd.f32 %v1689_v48, %v5254_v54  ;;  %v3890_v46 = vor.u32 %v4571_v23, %v3889_v24  ;;  %v4635_v10 = vld [vmem:[%s5277_s27 + $0x264] sm:$0xf0]  ;;  %v4115_v32 = vld [vmem:[%s5277_s27 + $0x228] sm:$0xf0] }
 0x1a7   : > { %v5486_v18 = vpack.c.bf16 %v1669_v12, %v1659_v33  ;;  %v1677_v57 = vadd.f32 %v1675_v37, %v1630_v56  ;;  %v4146_v39 = vor.u32 %v4635_v10, %v4145_v62  ;;  %v3862_v40 = vor.u32 %v4559_v6, %v3859_v7  ;;  %v4563_v12 = vld [vmem:[%s5277_s27 + $0x24] sm:$0xf0]  ;;  %v4616_v5 = vld [vmem:[%s5277_s27 + $0x1d4] sm:$0xf]  ;;  %v4684_v43 = vld [vmem:[%s5277_s27 + $0x3ec] sm:$0xf0] }
 0x1a8   : > { %v5503_v15 = vpack.c.bf16 %v1692_v14, %v1682_v8  ;;  %v1693_v60 = vmax.f32 %v1691_v27, 0.0  ;;  %v4118_v11 = vor.u32 %v4623_v31, %v4115_v32  ;;  %v3858_v56 = vor.u32 %v4563_v12, %v3857_v9  ;;  %v4113_v45 = vld [vmem:[%s5277_s27 + $0x208] sm:$0xf]  ;;  %v4091_v33 = vld [vmem:[%s5277_s27 + $0x1f0] sm:$0xf0] }
 0x1a9   : > { %v1679_v29 = vmul.f32 %v1677_v57, %v5252_v44  ;;  %v4631_v44 = vld [vmem:[%s5277_s27 + $0x24c] sm:$0xf]  ;;  %2692 = vmatpush.bf16.msrb.mxu2 %v3894_v59  ;;  %v4627_v13 = vld [vmem:[%s5277_s27 + $0x224] sm:$0xf0]  ;;  %v4680_v37 = vld [vmem:[%s5277_s27 + $0x3d4] sm:$0xf]  ;;  %v4094_v21 = vor.u32 %v4616_v5, %v4091_v33  ;;  %v4346_v63 = vor.u32 %v4684_v43, %v4345_v42  ;;  %v5541_v28 = vpack.c.bf16 %v1718_v55, %v1718_v55 }
 0x1aa   : > { %2531 = vmatmul.bf16.gmra.mxu0 %v5468_v19  ;;  %2587 = vmatmul.bf16.gmra.mxu2 %v5468_v19  ;;  %v4150_v1 = vor.u32 %v4631_v44, %v4147_v0  ;;  %v4114_v16 = vor.u32 %v4627_v13, %v4113_v45  ;;  %v4620_v57 = vld [vmem:[%s5277_s27 + $0x1ec] sm:$0xf0]  ;;  %v4350_v58 = vor.u32 %v4680_v37, %v4347_v2  ;;  %v1719_v26 = vmax.f32 %v5260_v25, 0.0  ;;  %v4608_v3 = vld [vmem:[%s5277_s27 + $0x194] sm:$0xf] }
 0x1ab   : > { %2663 = vmatpush.bf16.msrb.mxu1 %v4178_v41  ;;  %v1681_v53 = vadd.f32 %v1679_v29, %v5254_v54  ;;  %2636 = vmatpush.bf16.msrb.mxu0 %v3890_v46  ;;  %v4090_v22 = vor.u32 %v4620_v57, %v4089_v20  ;;  %v4059_v4 = vld [vmem:[%s5277_s27 + $0x1b0] sm:$0xf0]  ;;  %v4057_v35 = vld [vmem:[%s5277_s27 + $0x190] sm:$0xf] }
 0x1ac   : > { %2720 = vmatpush.bf16.msrb.mxu3 %v4150_v1  ;;  %v4672_v29 = vld [vmem:[%s5277_s27 + $0x394] sm:$0xf]  ;;  %v4062_v17 = vor.u32 %v4608_v3, %v4059_v4  ;;  %v4612_v36 = vld [vmem:[%s5277_s27 + $0x1ac] sm:$0xf0]  ;;  %v5554_v14 = vpack.c.bf16 %v1719_v26, %v1719_v26 }
 0x1ad   : > { %v1683_v52 = vmax.f32 %v1681_v53, 0.0  ;;  %2693 = vmatpush.bf16.msrb.mxu2 %v3862_v40  ;;  %v4315_v30 = vld [vmem:[%s5277_s27 + $0x3b0] sm:$0xf0]  ;;  %v4058_v8 = vor.u32 %v4612_v36, %v4057_v35  ;;  %v4313_v41 = vld [vmem:[%s5277_s27 + $0x390] sm:$0xf] }
 0x1ae   : > { %v4318_v61 = vor.u32 %v4672_v29, %v4315_v30  ;;  %v4676_v25 = vld [vmem:[%s5277_s27 + $0x3ac] sm:$0xf0]  ;;  %v4600_v53 = vld [vmem:[%s5277_s27 + $0x154] sm:$0xf] }
 0x1af   : > { %v5512_v54 = vpack.c.bf16 %v1693_v60, %v1683_v52  ;;  %2664 = vmatpush.bf16.msrb.mxu1 %v4146_v39  ;;  %2637 = vmatpush.bf16.msrb.mxu0 %v3858_v56  ;;  %v4314_v48 = vor.u32 %v4676_v25, %v4313_v41  ;;  %v4027_v27 = vld [vmem:[%s5277_s27 + $0x170] sm:$0xf0]  ;;  %v4025_v52 = vld [vmem:[%s5277_s27 + $0x150] sm:$0xf] }
 0x1b0   : > { %2721 = vmatpush.bf16.msrb.mxu3 %v4118_v11  ;;  %v4664_v49 = vld [vmem:[%s5277_s27 + $0x354] sm:$0xf]  ;;  %v4030_v47 = vor.u32 %v4600_v53, %v4027_v27  ;;  %v4604_v59 = vld [vmem:[%s5277_s27 + $0x16c] sm:$0xf0] }
 0x1b1   : > { %2559 = vmatmul.bf16.gmra.mxu1 %v5486_v18  ;;  %2615 = vmatmul.bf16.gmra.mxu3 %v5486_v18  ;;  %v4283_v44 = vld [vmem:[%s5277_s27 + $0x370] sm:$0xf0]  ;;  %v4026_v1 = vor.u32 %v4604_v59, %v4025_v52  ;;  %v4281_v60 = vld [vmem:[%s5277_s27 + $0x350] sm:$0xf] }
 0x1b2   : > { %2798 = vmatpush.bf16.msra.mxu2 %v4094_v21  ;;  %v4286_v0 = vor.u32 %v4664_v49, %v4283_v44  ;;  %v4668_v24 = vld [vmem:[%s5277_s27 + $0x36c] sm:$0xf0]  ;;  %v4592_v62 = vld [vmem:[%s5277_s27 + $0x114] sm:$0xf] }
 0x1b3   : > { %2665 = vmatpush.bf16.msrb.mxu1 %v4114_v16  ;;  %2742 = vmatpush.bf16.msra.mxu0 %v4090_v22  ;;  %v4282_v23 = vor.u32 %v4668_v24, %v4281_v60  ;;  %v3995_v46 = vld [vmem:[%s5277_s27 + $0x130] sm:$0xf0]  ;;  %v3993_v40 = vld [vmem:[%s5277_s27 + $0x110] sm:$0xf] }
 0x1b4   : > { %2826 = vmatpush.bf16.msra.mxu3 %v4350_v58  ;;  %v4656_v10 = vld [vmem:[%s5277_s27 + $0x314] sm:$0xf]  ;;  %v3998_v6 = vor.u32 %v4592_v62, %v3995_v46  ;;  %v4596_v31 = vld [vmem:[%s5277_s27 + $0x12c] sm:$0xf0] }
 0x1b5   : > { %v4251_v7 = vld [vmem:[%s5277_s27 + $0x330] sm:$0xf0]  ;;  %v4249_v32 = vld [vmem:[%s5277_s27 + $0x310] sm:$0xf]  ;;  %v3994_v9 = vor.u32 %v4596_v31, %v3993_v40 }
 0x1b6   : > { %2799 = vmatpush.bf16.msra.mxu2 %v4062_v17  ;;  %v4254_v39 = vor.u32 %v4656_v10, %v4251_v7  ;;  %v4660_v11 = vld [vmem:[%s5277_s27 + $0x32c] sm:$0xf0]  ;;  %v4584_v56 = vld [vmem:[%s5277_s27 + $0xd4] sm:$0xf] }
 0x1b7   : > { %2770 = vmatpush.bf16.msra.mxu1 %v4346_v63  ;;  %2743 = vmatpush.bf16.msra.mxu0 %v4058_v8  ;;  %v4250_v12 = vor.u32 %v4660_v11, %v4249_v32  ;;  %v3963_v45 = vld [vmem:[%s5277_s27 + $0xf0] sm:$0xf0]  ;;  %v3961_v37 = vld [vmem:[%s5277_s27 + $0xd0] sm:$0xf] }
 0x1b8   : > { %2827 = vmatpush.bf16.msra.mxu3 %v4318_v61  ;;  %v4648_v13 = vld [vmem:[%s5277_s27 + $0x2d4] sm:$0xf]  ;;  %v3966_v16 = vor.u32 %v4584_v56, %v3963_v45  ;;  %v4588_v21 = vld [vmem:[%s5277_s27 + $0xec] sm:$0xf0]  ;;  %v4099_v56 = vld [vmem:[%s5277_s27 + $0x1f8] sm:$0xf0] }
 0x1b9   : > { %v4219_v5 = vld [vmem:[%s5277_s27 + $0x2f0] sm:$0xf0]  ;;  %v4217_v2 = vld [vmem:[%s5277_s27 + $0x2d0] sm:$0xf]  ;;  %v3962_v20 = vor.u32 %v4588_v21, %v3961_v37  ;;  %v4681_v45 = vld [vmem:[%s5277_s27 + $0x3dc] sm:$0xf] }
 0x1ba   : > { %2535 = vmatmul.bf16.gmra.mxu0 %v5503_v15  ;;  %2591 = vmatmul.bf16.gmra.mxu2 %v5503_v15  ;;  %v4222_v33 = vor.u32 %v4648_v13, %v4219_v5  ;;  %v4652_v57 = vld [vmem:[%s5277_s27 + $0x2ec] sm:$0xf0]  ;;  %v4576_v22 = vld [vmem:[%s5277_s27 + $0x94] sm:$0xf] }
 0x1bb   : > { %2771 = vmatpush.bf16.msra.mxu1 %v4314_v48  ;;  %2800 = vmatpush.bf16.msra.mxu2 %v4030_v47  ;;  %v4218_v58 = vor.u32 %v4652_v57, %v4217_v2  ;;  %v3931_v42 = vld [vmem:[%s5277_s27 + $0xb0] sm:$0xf0]  ;;  %v3929_v3 = vld [vmem:[%s5277_s27 + $0x90] sm:$0xf]  ;;  %v4097_v2 = vld [vmem:[%s5277_s27 + $0x1d8] sm:$0xf] }
 0x1bc   : > { %2828 = vmatpush.bf16.msra.mxu3 %v4286_v0  ;;  %2744 = vmatpush.bf16.msra.mxu0 %v4026_v1  ;;  %v4640_v43 = vld [vmem:[%s5277_s27 + $0x294] sm:$0xf]  ;;  %v3934_v55 = vor.u32 %v4576_v22, %v3931_v42  ;;  %v4580_v4 = vld [vmem:[%s5277_s27 + $0xac] sm:$0xf0]  ;;  %v4353_v57 = vld [vmem:[%s5277_s27 + $0x3d8] sm:$0xf] }
 0x1bd   : > { %v4187_v63 = vld [vmem:[%s5277_s27 + $0x2b0] sm:$0xf0]  ;;  %v4185_v29 = vld [vmem:[%s5277_s27 + $0x290] sm:$0xf]  ;;  %v3930_v17 = vor.u32 %v4580_v4, %v3929_v3  ;;  %v4685_v42 = vld [vmem:[%s5277_s27 + $0x3f4] sm:$0xf0] }
 0x1be   : > { %v4190_v26 = vor.u32 %v4640_v43, %v4187_v63  ;;  %v4644_v30 = vld [vmem:[%s5277_s27 + $0x2ac] sm:$0xf0]  ;;  %v4568_v36 = vld [vmem:[%s5277_s27 + $0x54] sm:$0xf]  ;;  %v4354_v63 = vor.u32 %v4685_v42, %v4353_v57  ;;  %v4067_v3 = vld [vmem:[%s5277_s27 + $0x1b8] sm:$0xf0] }
 0x1bf   : > { %2772 = vmatpush.bf16.msra.mxu1 %v4282_v23  ;;  %2801 = vmatpush.bf16.msra.mxu2 %v3998_v6  ;;  %v4186_v35 = vor.u32 %v4644_v30, %v4185_v29  ;;  %v3899_v61 = vld [vmem:[%s5277_s27 + $0x70] sm:$0xf0]  ;;  %v3897_v53 = vld [vmem:[%s5277_s27 + $0x50] sm:$0xf]  ;;  %v4673_v4 = vld [vmem:[%s5277_s27 + $0x39c] sm:$0xf] }
 0x1c0   : > { %2829 = vmatpush.bf16.msra.mxu3 %v4254_v39  ;;  %2745 = vmatpush.bf16.msra.mxu0 %v3994_v9  ;;  %v4632_v8 = vld [vmem:[%s5277_s27 + $0x254] sm:$0xf]  ;;  %v3902_v41 = vor.u32 %v4568_v36, %v3899_v61  ;;  %v4572_v27 = vld [vmem:[%s5277_s27 + $0x6c] sm:$0xf0]  ;;  %v4257_v42 = vld [vmem:[%s5277_s27 + $0x318] sm:$0xf] }
 0x1c1   : > { %2563 = vmatmul.bf16.gmra.mxu1 %v5512_v54  ;;  %2619 = vmatmul.bf16.gmra.mxu3 %v5512_v54  ;;  %v4155_v25 = vld [vmem:[%s5277_s27 + $0x270] sm:$0xf0]  ;;  %v4153_v49 = vld [vmem:[%s5277_s27 + $0x250] sm:$0xf]  ;;  %v3898_v47 = vor.u32 %v4572_v27, %v3897_v53 }
 0x1c2   : > { %v4158_v48 = vor.u32 %v4632_v8, %v4155_v25  ;;  %v4636_v44 = vld [vmem:[%s5277_s27 + $0x26c] sm:$0xf0]  ;;  %v4560_v59 = vld [vmem:[%s5277_s27 + $0x14] sm:$0xf]  ;;  %v4613_v25 = vld [vmem:[%s5277_s27 + $0x1b4] sm:$0xf0] }
 0x1c3   : > { %2773 = vmatpush.bf16.msra.mxu1 %v4250_v12  ;;  %2802 = vmatpush.bf16.msra.mxu2 %v3966_v16  ;;  %v4154_v52 = vor.u32 %v4636_v44, %v4153_v49  ;;  %v3867_v0 = vld [vmem:[%s5277_s27 + $0x30] sm:$0xf0]  ;;  %v3865_v1 = vld [vmem:[%s5277_s27 + $0x10] sm:$0xf]  ;;  %v4617_v12 = vld [vmem:[%s5277_s27 + $0x1dc] sm:$0xf] }
 0x1c4   : > { %2830 = vmatpush.bf16.msra.mxu3 %v4222_v33  ;;  %2746 = vmatpush.bf16.msra.mxu0 %v3962_v20  ;;  %v3870_v60 = vor.u32 %v4560_v59, %v3867_v0  ;;  %v4564_v24 = vld [vmem:[%s5277_s27 + $0x2c] sm:$0xf0]  ;;  %v4624_v62 = vld [vmem:[%s5277_s27 + $0x214] sm:$0xf]  ;;  %v4102_v13 = vor.u32 %v4617_v12, %v4099_v56  ;;  %v4355_v16 = vld [vmem:[%s5277_s27 + $0x3f8] sm:$0xf0] }
 0x1c5   : > { %v4123_v46 = vld [vmem:[%s5277_s27 + $0x230] sm:$0xf0]  ;;  %v3866_v10 = vor.u32 %v4564_v24, %v3865_v1  ;;  %v4121_v7 = vld [vmem:[%s5277_s27 + $0x210] sm:$0xf]  ;;  %v4358_v5 = vor.u32 %v4681_v45, %v4355_v16  ;;  %v4621_v20 = vld [vmem:[%s5277_s27 + $0x1f4] sm:$0xf0] }
 0x1c6   : > { %v4126_v6 = vor.u32 %v4624_v62, %v4123_v46  ;;  %v4628_v39 = vld [vmem:[%s5277_s27 + $0x22c] sm:$0xf0]  ;;  %v4098_v22 = vor.u32 %v4621_v20, %v4097_v2  ;;  %v4677_v49 = vld [vmem:[%s5277_s27 + $0x3b4] sm:$0xf0]  ;;  %v4035_v59 = vld [vmem:[%s5277_s27 + $0x178] sm:$0xf0] }
 0x1c7   : > { %2774 = vmatpush.bf16.msra.mxu1 %v4218_v58  ;;  %2803 = vmatpush.bf16.msra.mxu2 %v3934_v55  ;;  %v4122_v40 = vor.u32 %v4628_v39, %v4121_v7  ;;  %v4665_v0 = vld [vmem:[%s5277_s27 + $0x35c] sm:$0xf]  ;;  %v4605_v7 = vld [vmem:[%s5277_s27 + $0x174] sm:$0xf0] }
 0x1c8   : > { %2831 = vmatpush.bf16.msra.mxu3 %v4190_v26  ;;  %2747 = vmatpush.bf16.msra.mxu0 %v3930_v17  ;;  %v4609_v26 = vld [vmem:[%s5277_s27 + $0x19c] sm:$0xf]  ;;  %v4289_v39 = vld [vmem:[%s5277_s27 + $0x358] sm:$0xf] }
 0x1c9   : > { %v4070_v29 = vor.u32 %v4609_v26, %v4067_v3  ;;  %v4323_v17 = vld [vmem:[%s5277_s27 + $0x3b8] sm:$0xf0] }
 0x1ca   : > { %2539 = vmatmul.bf16.gmra.mxu0 %v5316_v51  ;;  %2595 = vmatmul.bf16.gmra.mxu2 %v5316_v51  ;;  %v4291_v24 = vld [vmem:[%s5277_s27 + $0x378] sm:$0xf0] }
 0x1cb   : > { %2775 = vmatpush.bf16.msra.mxu1 %v4186_v35  ;;  %2804 = vmatpush.bf16.msra.mxu2 %v3902_v41  ;;  %v4326_v35 = vor.u32 %v4673_v4, %v4323_v17  ;;  %v4065_v41 = vld [vmem:[%s5277_s27 + $0x198] sm:$0xf]  ;;  %v4294_v62 = vor.u32 %v4665_v0, %v4291_v24  ;;  %v4003_v16 = vld [vmem:[%s5277_s27 + $0x138] sm:$0xf0] }
 0x1cc   : > { %2832 = vmatpush.bf16.msra.mxu3 %v4158_v48  ;;  %2748 = vmatpush.bf16.msra.mxu0 %v3898_v47  ;;  %v4321_v48 = vld [vmem:[%s5277_s27 + $0x398] sm:$0xf]  ;;  %v4066_v27 = vor.u32 %v4613_v25, %v4065_v41  ;;  %v4259_v20 = vld [vmem:[%s5277_s27 + $0x338] sm:$0xf0] }
 0x1cd   : > { %v4322_v47 = vor.u32 %v4677_v49, %v4321_v48  ;;  %v4227_v25 = vld [vmem:[%s5277_s27 + $0x2f8] sm:$0xf0]  ;;  %v4589_v49 = vld [vmem:[%s5277_s27 + $0xf4] sm:$0xf0] }
 0x1ce   : > { %v4577_v24 = vld [vmem:[%s5277_s27 + $0x9c] sm:$0xf] }
 0x1cf   : > { %2776 = vmatpush.bf16.msra.mxu1 %v4154_v52  ;;  %2805 = vmatpush.bf16.msra.mxu2 %v3870_v60  ;;  %v4601_v52 = vld [vmem:[%s5277_s27 + $0x15c] sm:$0xf] }
 0x1d0   : > { %2749 = vmatpush.bf16.msra.mxu0 %v3866_v10  ;;  %2833 = vmatpush.bf16.msra.mxu3 %v4126_v6  ;;  %v4038_v60 = vor.u32 %v4601_v52, %v4035_v59  ;;  %v4033_v6 = vld [vmem:[%s5277_s27 + $0x158] sm:$0xf] }
 0x1d1   : > { %2567 = vmatmul.bf16.gmra.mxu1 %v5342_v34  ;;  %2623 = vmatmul.bf16.gmra.mxu3 %v5342_v34  ;;  %v4653_v59 = vld [vmem:[%s5277_s27 + $0x2f4] sm:$0xf0] }
 0x1d3   : > { %2777 = vmatpush.bf16.msra.mxu1 %v4122_v40  ;;  %v4034_v40 = vor.u32 %v4605_v7, %v4033_v6  ;;  %v4195_v6 = vld [vmem:[%s5277_s27 + $0x2b8] sm:$0xf0] }
 0x1da   : > { %2542 = vmatmul.bf16.gmra.mxu0 %v5541_v28  ;;  %2598 = vmatmul.bf16.gmra.mxu2 %v5541_v28 }
 0x1e1   : > { %2570 = vmatmul.bf16.gmra.mxu1 %v5554_v14  ;;  %2626 = vmatmul.bf16.gmra.mxu3 %v5554_v14 }
 0x1ea   : > { %2638 = vmatmul.bf16.vlgmr.msrb.gmra.mxu0 %v5421_v38  ;;  %2694 = vmatmul.bf16.vlgmr.msrb.gmra.mxu2 %v5421_v38 }
 0x1eb   : > { %2910 = vmatpush.bf16.msrb.mxu2 %v4102_v13  ;;  %2854 = vmatpush.bf16.msrb.mxu0 %v4098_v22  ;;  %v4593_v13 = vld [vmem:[%s5277_s27 + $0x11c] sm:$0xf]  ;;  %v4597_v22 = vld [vmem:[%s5277_s27 + $0x134] sm:$0xf0] }
 0x1ec   : > { %v4006_v2 = vor.u32 %v4593_v13, %v4003_v16  ;;  %v4645_v16 = vld [vmem:[%s5277_s27 + $0x2b4] sm:$0xf0] }
 0x1ef   : > { %2911 = vmatpush.bf16.msrb.mxu2 %v4070_v29  ;;  %2855 = vmatpush.bf16.msrb.mxu0 %v4066_v27  ;;  %v3969_v27 = vld [vmem:[%s5277_s27 + $0xd8] sm:$0xf] }
 0x1f0   : > { %v3970_v52 = vor.u32 %v4589_v49, %v3969_v27 }
 0x1f1   : > { %2666 = vmatmul.bf16.vlgmr.msrb.gmra.mxu1 %v5437_v50  ;;  %2722 = vmatmul.bf16.vlgmr.msrb.gmra.mxu3 %v5437_v50 }
 0x1f2   : > { %2938 = vmatpush.bf16.msrb.mxu3 %v4358_v5  ;;  %2882 = vmatpush.bf16.msrb.mxu1 %v4354_v63  ;;  %v4657_v5 = vld [vmem:[%s5277_s27 + $0x31c] sm:$0xf]  ;;  %v4661_v63 = vld [vmem:[%s5277_s27 + $0x334] sm:$0xf0] }
 0x1f3   : > { %2912 = vmatpush.bf16.msrb.mxu2 %v4038_v60  ;;  %2856 = vmatpush.bf16.msrb.mxu0 %v4034_v40  ;;  %v4262_v57 = vor.u32 %v4657_v5, %v4259_v20  ;;  %v4258_v26 = vor.u32 %v4661_v63, %v4257_v42  ;;  %v4633_v42 = vld [vmem:[%s5277_s27 + $0x25c] sm:$0xf] }
 0x1f4   : > { %v4163_v63 = vld [vmem:[%s5277_s27 + $0x278] sm:$0xf0] }
 0x1f6   : > { %2939 = vmatpush.bf16.msrb.mxu3 %v4326_v35  ;;  %2883 = vmatpush.bf16.msrb.mxu1 %v4322_v47  ;;  %v4585_v35 = vld [vmem:[%s5277_s27 + $0xdc] sm:$0xf]  ;;  %v4225_v47 = vld [vmem:[%s5277_s27 + $0x2d8] sm:$0xf] }
 0x1f7   : > { %2913 = vmatpush.bf16.msrb.mxu2 %v4006_v2 }
 0x1fa   : > { %2642 = vmatmul.bf16.gmra.mxu0 %v5468_v19  ;;  %2698 = vmatmul.bf16.gmra.mxu2 %v5468_v19 }
 0x1fb   : > { %2940 = vmatpush.bf16.msrb.mxu3 %v4294_v62  ;;  %v4641_v62 = vld [vmem:[%s5277_s27 + $0x29c] sm:$0xf] }
 0x1fc   : > { %v4198_v7 = vor.u32 %v4641_v62, %v4195_v6 }
 0x1ff   : > { %2941 = vmatpush.bf16.msrb.mxu3 %v4262_v57 }
 0x201   : > { %2670 = vmatmul.bf16.gmra.mxu1 %v5486_v18  ;;  %2726 = vmatmul.bf16.gmra.mxu3 %v5486_v18 }
 0x20a   : > { %2646 = vmatmul.bf16.gmra.mxu0 %v5503_v15  ;;  %2702 = vmatmul.bf16.gmra.mxu2 %v5503_v15 }
 0x211   : > { %2674 = vmatmul.bf16.gmra.mxu1 %v5512_v54  ;;  %2730 = vmatmul.bf16.gmra.mxu3 %v5512_v54 }
 0x217   : > { %v2527_v23 = vpop.f32.mrf.mxu0 }
 0x21a   : > { %2651 = vmatmul.bf16.gmra.mxu0 %v5316_v51  ;;  %2707 = vmatmul.bf16.gmra.mxu2 %v5316_v51 }
 0x21d   : > { %v2583_v31 = vpop.f32.mrf.mxu2 }
 0x21e   : > { %v2555_v32 = vpop.f32.mrf.mxu1 }
 0x21f   : > { %v5620_v9 = vadd.f32 %v2555_v32, %v2527_v23  ;;  %v2529_v11 = vpop.f32.mrf.mxu0 }
 0x221   : > { %2679 = vmatmul.bf16.gmra.mxu1 %v5342_v34  ;;  %2735 = vmatmul.bf16.gmra.mxu3 %v5342_v34 }
 0x224   : > { %v2611_v33 = vpop.f32.mrf.mxu3 }
 0x225   : > { %v5628_v37 = vadd.f32 %v2611_v33, %v2583_v31  ;;  %v2585_v21 = vpop.f32.mrf.mxu2  ;;  %v4669_v31 = vld [vmem:[%s5277_s27 + $0x374] sm:$0xf0] }
 0x226   : > { %v2557_v58 = vpop.f32.mrf.mxu1  ;;  %v4290_v32 = vor.u32 %v4669_v31, %v4289_v39 }
 0x227   : > { %v5634_v43 = vadd.f32 %v2557_v58, %v2529_v11  ;;  %v2532_v55 = vpop.f32.mrf.mxu0  ;;  %v4001_v58 = vld [vmem:[%s5277_s27 + $0x118] sm:$0xf] }
 0x228   : > { %2884 = vmatpush.bf16.msrb.mxu1 %v4290_v32  ;;  %v4002_v55 = vor.u32 %v4597_v22, %v4001_v58  ;;  %v4569_v58 = vld [vmem:[%s5277_s27 + $0x5c] sm:$0xf] }
 0x229   : > { %v3907_v22 = vld [vmem:[%s5277_s27 + $0x78] sm:$0xf0] }
 0x22a   : > { %2654 = vmatmul.bf16.gmra.mxu0 %v5541_v28  ;;  %2710 = vmatmul.bf16.gmra.mxu2 %v5541_v28 }
 0x22b   : > { %2857 = vmatpush.bf16.msrb.mxu0 %v4002_v55  ;;  %v3910_v55 = vor.u32 %v4569_v58, %v3907_v22 }
 0x22c   : > { %v2613_v30 = vpop.f32.mrf.mxu3  ;;  %2885 = vmatpush.bf16.msrb.mxu1 %v4258_v26  ;;  %v4166_v26 = vor.u32 %v4633_v42, %v4163_v63 }
 0x22d   : > { %v5642_v36 = vadd.f32 %v2613_v30, %v2585_v21  ;;  %v2588_v61 = vpop.f32.mrf.mxu2 }
 0x22e   : > { %v2560_v8 = vpop.f32.mrf.mxu1  ;;  %v3971_v61 = vld [vmem:[%s5277_s27 + $0xf8] sm:$0xf0] }
 0x22f   : > { %v2533_v53 = vpop.f32.mrf.mxu0  ;;  %v4649_v8 = vld [vmem:[%s5277_s27 + $0x2dc] sm:$0xf]  ;;  %v3974_v41 = vor.u32 %v4585_v35, %v3971_v61  ;;  %2858 = vmatpush.bf16.msrb.mxu0 %v3970_v52  ;;  %v4637_v35 = vld [vmem:[%s5277_s27 + $0x274] sm:$0xf0] }
 0x230   : > { %v4230_v48 = vor.u32 %v4649_v8, %v4227_v25  ;;  %v4561_v25 = vld [vmem:[%s5277_s27 + $0x1c] sm:$0xf] }
 0x231   : > { %2682 = vmatmul.bf16.gmra.mxu1 %v5554_v14  ;;  %2738 = vmatmul.bf16.gmra.mxu3 %v5554_v14  ;;  %v4625_v52 = vld [vmem:[%s5277_s27 + $0x21c] sm:$0xf] }
 0x232   : > { %2914 = vmatpush.bf16.msrb.mxu2 %v3974_v41  ;;  %2942 = vmatpush.bf16.msrb.mxu3 %v4230_v48  ;;  %v3875_v48 = vld [vmem:[%s5277_s27 + $0x38] sm:$0xf0] }
 0x233   : > { %v3878_v49 = vor.u32 %v4561_v25, %v3875_v48 }
 0x234   : > { %v2616_v44 = vpop.f32.mrf.mxu3 }
 0x235   : > { %v2589_v1 = vpop.f32.mrf.mxu2 }
 0x236   : > { %v2561_v23 = vpop.f32.mrf.mxu1  ;;  %2943 = vmatpush.bf16.msrb.mxu3 %v4198_v7 }
 0x237   : > { %v5654_v46 = vadd.f32 %v2561_v23, %v2533_v53  ;;  %v2536_v10 = vpop.f32.mrf.mxu0  ;;  %v3939_v23 = vld [vmem:[%s5277_s27 + $0xb8] sm:$0xf0] }
 0x23a   : > { %2750 = vmatmul.bf16.vlgmr.msra.gmra.mxu0 %v5421_v38  ;;  %2806 = vmatmul.bf16.vlgmr.msra.gmra.mxu2 %v5421_v38 }
 0x23b   : > { %2944 = vmatpush.bf16.msrb.mxu3 %v4166_v26 }
 0x23c   : > { %v2617_v11 = vpop.f32.mrf.mxu3 }
 0x23d   : > { %v5662_v12 = vadd.f32 %v2617_v11, %v2589_v1  ;;  %v2592_v56 = vpop.f32.mrf.mxu2  ;;  %v4226_v1 = vor.u32 %v4653_v59, %v4225_v47  ;;  %v3937_v11 = vld [vmem:[%s5277_s27 + $0x98] sm:$0xf]  ;;  %v4131_v59 = vld [vmem:[%s5277_s27 + $0x238] sm:$0xf0] }
 0x23e   : > { %v2564_v45 = vpop.f32.mrf.mxu1  ;;  %v4565_v47 = vld [vmem:[%s5277_s27 + $0x34] sm:$0xf0] }
 0x23f   : > { %v5667_v33 = vadd.f32 %v2564_v45, %v2536_v10  ;;  %v2538_v21 = vpop.f32.mrf.mxu0  ;;  %2886 = vmatpush.bf16.msrb.mxu1 %v4226_v1  ;;  %v3942_v10 = vor.u32 %v4577_v24, %v3939_v23  ;;  %v4193_v45 = vld [vmem:[%s5277_s27 + $0x298] sm:$0xf]  ;;  %v4134_v1 = vor.u32 %v4625_v52, %v4131_v59 }
 0x240   : > { %v4194_v5 = vor.u32 %v4645_v16, %v4193_v45  ;;  %v4629_v24 = vld [vmem:[%s5277_s27 + $0x234] sm:$0xf0] }
 0x241   : > { %2778 = vmatmul.bf16.vlgmr.msra.gmra.mxu1 %v5437_v50  ;;  %2834 = vmatmul.bf16.vlgmr.msra.gmra.mxu3 %v5437_v50 }
 0x242   : > { %2915 = vmatpush.bf16.msrb.mxu2 %v3942_v10  ;;  %2945 = vmatpush.bf16.msrb.mxu3 %v4134_v1 }
 0x243   : > { %2887 = vmatpush.bf16.msrb.mxu1 %v4194_v5 }
 0x244   : > { %v2620_v3 = vpop.f32.mrf.mxu3 }
 0x245   : > { %v5676_v4 = vadd.f32 %v2620_v3, %v2592_v56  ;;  %v2594_v29 = vpop.f32.mrf.mxu2  ;;  %v4581_v56 = vld [vmem:[%s5277_s27 + $0xb4] sm:$0xf0] }
 0x246   : > { %v2566_v17 = vpop.f32.mrf.mxu1  ;;  %v3938_v13 = vor.u32 %v4581_v56, %v3937_v11  ;;  %v3905_v3 = vld [vmem:[%s5277_s27 + $0x58] sm:$0xf]  ;;  %2916 = vmatpush.bf16.msrb.mxu2 %v3910_v55 }
 0x247   : > { %v2540_v30 = vpop.f32.mrf.mxu0  ;;  %v4573_v29 = vld [vmem:[%s5277_s27 + $0x74] sm:$0xf0] }
 0x248   : > { %2859 = vmatpush.bf16.msrb.mxu0 %v3938_v13  ;;  %v4161_v17 = vld [vmem:[%s5277_s27 + $0x258] sm:$0xf]  ;;  %v3906_v30 = vor.u32 %v4573_v29, %v3905_v3 }
 0x249   : > { %v4162_v61 = vor.u32 %v4637_v35, %v4161_v17 }
 0x24a   : > { %2753 = vmatmul.bf16.gmra.mxu0 %v5468_v19  ;;  %2809 = vmatmul.bf16.gmra.mxu2 %v5468_v19 }
 0x24b   : > { %2888 = vmatpush.bf16.msrb.mxu1 %v4162_v61  ;;  %2917 = vmatpush.bf16.msrb.mxu2 %v3878_v49 }
 0x24c   : > { %v2622_v53 = vpop.f32.mrf.mxu3  ;;  %2860 = vmatpush.bf16.msrb.mxu0 %v3906_v30 }
 0x24d   : > { %v2596_v44 = vpop.f32.mrf.mxu2  ;;  %v3873_v53 = vld [vmem:[%s5277_s27 + $0x18] sm:$0xf] }
 0x24e   : > { %v2568_v0 = vpop.f32.mrf.mxu1 }
 0x24f   : > { %v2541_v60 = vpop.f32.mrf.mxu0  ;;  %v3874_v0 = vor.u32 %v4565_v47, %v3873_v53 }
 0x250   : > { %v4129_v60 = vld [vmem:[%s5277_s27 + $0x218] sm:$0xf] }
 0x251   : > { %2781 = vmatmul.bf16.gmra.mxu1 %v5486_v18  ;;  %2837 = vmatmul.bf16.gmra.mxu3 %v5486_v18  ;;  %v4130_v23 = vor.u32 %v4629_v24, %v4129_v60 }
 0x252   : > { %2861 = vmatpush.bf16.msrb.mxu0 %v3874_v0 }
 0x253   : > { %2889 = vmatpush.bf16.msrb.mxu1 %v4130_v23 }
 0x254   : > { %v2624_v39 = vpop.f32.mrf.mxu3 }
 0x255   : > { %v2597_v40 = vpop.f32.mrf.mxu2 }
 0x256   : > { %v2569_v31 = vpop.f32.mrf.mxu1 }
 0x257   : > { %v2543_v32 = vpop.f32.mrf.mxu0 }
 0x25a   : > { %2757 = vmatmul.bf16.gmra.mxu0 %v5503_v15  ;;  %2813 = vmatmul.bf16.gmra.mxu2 %v5503_v15 }
 0x25c   : > { %v2625_v21 = vpop.f32.mrf.mxu3 }
 0x25d   : > { %v2599_v2 = vpop.f32.mrf.mxu2 }
 0x25e   : > { %v2571_v20 = vpop.f32.mrf.mxu1 }
 0x25f   : > { %v2544_v57 = vpop.f32.mrf.mxu0 }
 0x261   : > { %2785 = vmatmul.bf16.gmra.mxu1 %v5512_v54  ;;  %2841 = vmatmul.bf16.gmra.mxu3 %v5512_v54 }
 0x264   : > { %v2627_v8 = vpop.f32.mrf.mxu3 }
 0x265   : > { %v2600_v41 = vpop.f32.mrf.mxu2 }
 0x266   : > { %v2572_v27 = vpop.f32.mrf.mxu1 }
 0x267   : > { %v2639_v44 = vpop.f32.mrf.mxu0 }
 0x26a   : > { %2761 = vmatmul.bf16.gmra.mxu0 %v5316_v51  ;;  %2817 = vmatmul.bf16.gmra.mxu2 %v5316_v51 }
 0x26c   : > { %v2628_v62 = vpop.f32.mrf.mxu3 }
 0x26d   : > { %v2695_v10 = vpop.f32.mrf.mxu2 }
 0x26e   : > { %v2667_v6 = vpop.f32.mrf.mxu1 }
 0x26f   : > { %v2640_v7 = vpop.f32.mrf.mxu0 }
 0x271   : > { %2789 = vmatmul.bf16.gmra.mxu1 %v5342_v34  ;;  %2845 = vmatmul.bf16.gmra.mxu3 %v5342_v34 }
 0x274   : > { %v2723_v39 = vpop.f32.mrf.mxu3 }
 0x275   : > { %v2696_v40 = vpop.f32.mrf.mxu2 }
 0x276   : > { %v2668_v31 = vpop.f32.mrf.mxu1 }
 0x277   : > { %v2669_v32 = vadd.f32 %v2668_v31, %v2640_v7  ;;  %v2643_v11 = vpop.f32.mrf.mxu0 }
 0x279   : > { %v5723_v56 = vadd.f32 %v2669_v32, %v5620_v9 }
 0x27a   : > { %2766 = vmatmul.bf16.gmra.mxu0 %v5541_v28  ;;  %2822 = vmatmul.bf16.gmra.mxu2 %v5541_v28 }
 0x27c   : > { %v2724_v45 = vpop.f32.mrf.mxu3 }
 0x27d   : > { %v2725_v13 = vadd.f32 %v2724_v45, %v2696_v40  ;;  %v2699_v16 = vpop.f32.mrf.mxu2 }
 0x27e   : > { %v2671_v5 = vpop.f32.mrf.mxu1 }
 0x27f   : > { %v5728_v21 = vadd.f32 %v2725_v13, %v5628_v37  ;;  %v2672_v2 = vadd.f32 %v2671_v5, %v2643_v11  ;;  %v2645_v20 = vpop.f32.mrf.mxu0 }
 0x281   : > { %v5731_v57 = vadd.f32 %v2672_v2, %v5634_v43  ;;  %2794 = vmatmul.bf16.gmra.mxu1 %v5554_v14  ;;  %2850 = vmatmul.bf16.gmra.mxu3 %v5554_v14 }
 0x284   : > { %v2727_v9 = vpop.f32.mrf.mxu3 }
 0x285   : > { %v2728_v58 = vadd.f32 %v2727_v9, %v2699_v16  ;;  %v2701_v22 = vpop.f32.mrf.mxu2 }
 0x286   : > { %v2673_v42 = vpop.f32.mrf.mxu1 }
 0x287   : > { %v5736_v55 = vadd.f32 %v2728_v58, %v5642_v36  ;;  %v2647_v63 = vpop.f32.mrf.mxu0 }
 0x28a   : > { %2862 = vmatmul.bf16.vlgmr.msrb.gmra.mxu0 %v5421_v38  ;;  %2918 = vmatmul.bf16.vlgmr.msrb.gmra.mxu2 %v5421_v38 }
 0x28c   : > { %v2729_v37 = vpop.f32.mrf.mxu3 }
 0x28d   : > { %v2703_v26 = vpop.f32.mrf.mxu2 }
 0x28e   : > { %v2675_v43 = vpop.f32.mrf.mxu1 }
 0x28f   : > { %v2676_v3 = vadd.f32 %v2675_v43, %v2647_v63  ;;  %v2649_v29 = vpop.f32.mrf.mxu0 }
 0x291   : > { %v5741_v17 = vadd.f32 %v2676_v3, %v5654_v46  ;;  %2890 = vmatmul.bf16.vlgmr.msrb.gmra.mxu1 %v5437_v50  ;;  %2946 = vmatmul.bf16.vlgmr.msrb.gmra.mxu3 %v5437_v50 }
 0x294   : > { %v2731_v30 = vpop.f32.mrf.mxu3 }
 0x295   : > { %v2732_v36 = vadd.f32 %v2731_v30, %v2703_v26  ;;  %v2705_v35 = vpop.f32.mrf.mxu2 }
 0x296   : > { %v2677_v61 = vpop.f32.mrf.mxu1 }
 0x297   : > { %v5746_v8 = vadd.f32 %v2732_v36, %v5662_v12  ;;  %v2678_v38 = vadd.f32 %v2677_v61, %v2649_v29  ;;  %v2652_v41 = vpop.f32.mrf.mxu0  ;;  %v4693_v36 = vld [vmem:[%s5790_s11 + $0x38] sm:$0xff] }
 0x298   : > { %3160 = vmatpush.bf16.msra.mxu0 %v4693_v36  ;;  %v4701_v61 = vld [vmem:[%s5790_s11 + $0x78] sm:$0xff] }
 0x299   : > { %v5749_v25 = vadd.f32 %v2678_v38, %v5667_v33  ;;  %3173 = vmatpush.bf16.msra.mxu1 %v4701_v61 }
 0x29a   : > { %2865 = vmatmul.bf16.gmra.mxu0 %v5468_v19  ;;  %2921 = vmatmul.bf16.gmra.mxu2 %v5468_v19 }
 0x29c   : > { %v2733_v46 = vpop.f32.mrf.mxu3 }
 0x29d   : > { %v2734_v48 = vadd.f32 %v2733_v46, %v2705_v35  ;;  %v2708_v53 = vpop.f32.mrf.mxu2 }
 0x29e   : > { %v2680_v50 = vpop.f32.mrf.mxu1 }
 0x29f   : > { %v5754_v27 = vadd.f32 %v2734_v48, %v5676_v4  ;;  %v2653_v49 = vpop.f32.mrf.mxu0 }
 0x2a1   : > { %2893 = vmatmul.bf16.gmra.mxu1 %v5486_v18  ;;  %2949 = vmatmul.bf16.gmra.mxu3 %v5486_v18 }
 0x2a4   : > { %v2736_v12 = vpop.f32.mrf.mxu3 }
 0x2a5   : > { %v2709_v47 = vpop.f32.mrf.mxu2  ;;  %v4692_v12 = vld [vmem:[%s5790_s11 + $0x30] sm:$0xff] }
 0x2a6   : > { %v2681_v33 = vpop.f32.mrf.mxu1  ;;  %3161 = vmatpush.bf16.msra.mxu0 %v4692_v12 }
 0x2a7   : > { %v2655_v44 = vpop.f32.mrf.mxu0 }
 0x2aa   : > { %2868 = vmatmul.bf16.gmra.mxu0 %v5503_v15  ;;  %2924 = vmatmul.bf16.gmra.mxu2 %v5503_v15 }
 0x2ac   : > { %v2737_v19 = vpop.f32.mrf.mxu3 }
 0x2ad   : > { %v2711_v52 = vpop.f32.mrf.mxu2  ;;  %v4700_v19 = vld [vmem:[%s5790_s11 + $0x70] sm:$0xff] }
 0x2ae   : > { %v2683_v59 = vpop.f32.mrf.mxu1  ;;  %3174 = vmatpush.bf16.msra.mxu1 %v4700_v19 }
 0x2af   : > { %v2656_v0 = vpop.f32.mrf.mxu0 }
 0x2b1   : > { %2896 = vmatmul.bf16.gmra.mxu1 %v5512_v54  ;;  %2952 = vmatmul.bf16.gmra.mxu3 %v5512_v54 }
 0x2b4   : > { %v2739_v4 = vpop.f32.mrf.mxu3 }
 0x2b5   : > { %v2712_v1 = vpop.f32.mrf.mxu2 }
 0x2b6   : > { %v2684_v60 = vpop.f32.mrf.mxu1 }
 0x2b7   : > { %v2751_v18 = vpop.f32.mrf.mxu0  ;;  %v4699_v60 = vld [vmem:[%s5790_s11 + $0x68] sm:$0xff] }
 0x2b8   : > { %3175 = vmatpush.bf16.msra.mxu1 %v4699_v60 }
 0x2ba   : > { %2873 = vmatmul.bf16.gmra.mxu0 %v5316_v51  ;;  %2929 = vmatmul.bf16.gmra.mxu2 %v5316_v51 }
 0x2bc   : > { %v2740_v24 = vpop.f32.mrf.mxu3 }
 0x2bd   : > { %v2807_v23 = vpop.f32.mrf.mxu2 }
 0x2be   : > { %v2779_v62 = vpop.f32.mrf.mxu1 }
 0x2bf   : > { %v2752_v15 = vpop.f32.mrf.mxu0 }
 0x2c1   : > { %2901 = vmatmul.bf16.gmra.mxu1 %v5342_v34  ;;  %2957 = vmatmul.bf16.gmra.mxu3 %v5342_v34 }
 0x2c4   : > { %v2835_v10 = vpop.f32.mrf.mxu3 }
 0x2c5   : > { %v2808_v6 = vpop.f32.mrf.mxu2 }
 0x2c6   : > { %v2780_v7 = vpop.f32.mrf.mxu1 }
 0x2c7   : > { %v2754_v54 = vpop.f32.mrf.mxu0  ;;  %v4690_v7 = vld [vmem:[%s5790_s11 + $0x20] sm:$0xff] }
 0x2c8   : > { %v4698_v54 = vld [vmem:[%s5790_s11 + $0x60] sm:$0xff] }
 0x2c9   : > { %3176 = vmatpush.bf16.msra.mxu1 %v4698_v54 }
 0x2ca   : > { %2877 = vmatmul.bf16.gmra.mxu0 %v5541_v28  ;;  %2933 = vmatmul.bf16.gmra.mxu2 %v5541_v28 }
 0x2cc   : > { %v2836_v39 = vpop.f32.mrf.mxu3 }
 0x2cd   : > { %v2810_v40 = vpop.f32.mrf.mxu2 }
 0x2ce   : > { %v2782_v31 = vpop.f32.mrf.mxu1 }
 0x2cf   : > { %v2755_v51 = vpop.f32.mrf.mxu0 }
 0x2d1   : > { %2905 = vmatmul.bf16.gmra.mxu1 %v5554_v14  ;;  %2961 = vmatmul.bf16.gmra.mxu3 %v5554_v14 }
 0x2d4   : > { %v2838_v32 = vpop.f32.mrf.mxu3 }
 0x2d5   : > { %v2811_v11 = vpop.f32.mrf.mxu2  ;;  %v4689_v32 = vld [vmem:[%s5790_s11 + $0x18] sm:$0xff] }
 0x2d6   : > { %v2783_v34 = vpop.f32.mrf.mxu1 }
 0x2d7   : > { %v2784_v45 = vadd.f32 %v2783_v34, %v2755_v51  ;;  %v2758_v13 = vpop.f32.mrf.mxu0 }
 0x2d9   : > { %v5771_v16 = vadd.f32 %v5723_v56, %v2784_v45 }
 0x2dc   : > { %v2839_v5 = vpop.f32.mrf.mxu3 }
 0x2dd   : > { %v2840_v28 = vadd.f32 %v2839_v5, %v2811_v11  ;;  %v2814_v2 = vpop.f32.mrf.mxu2  ;;  %v4697_v5 = vld [vmem:[%s5790_s11 + $0x58] sm:$0xff] }
 0x2de   : > { %v2786_v20 = vpop.f32.mrf.mxu1  ;;  %3177 = vmatpush.bf16.msra.mxu1 %v4697_v5 }
 0x2df   : > { %v5774_v9 = vadd.f32 %v5728_v21, %v2840_v28  ;;  %v2787_v58 = vadd.f32 %v2786_v20, %v2758_v13  ;;  %v2760_v22 = vpop.f32.mrf.mxu0  ;;  %v4688_v28 = vld [vmem:[%s5790_s11 + $0x10] sm:$0xff] }
 0x2e1   : > { %v5777_v14 = vadd.f32 %v5731_v57, %v2787_v58 }
 0x2e4   : > { %v2842_v42 = vpop.f32.mrf.mxu3 }
 0x2e5   : > { %v2843_v63 = vadd.f32 %v2842_v42, %v2814_v2  ;;  %v2816_v37 = vpop.f32.mrf.mxu2 }
 0x2e6   : > { %v2788_v56 = vpop.f32.mrf.mxu1 }
 0x2e7   : > { %v5784_v26 = vadd.f32 %v5736_v55, %v2843_v63  ;;  %v2762_v43 = vpop.f32.mrf.mxu0  ;;  %v4696_v63 = vld [vmem:[%s5790_s11 + $0x50] sm:$0xff]  ;;  %v4735_v56 = vld [vmem:[%s4920_s22] sm:$0x3f] }
 0x2e8   : > { %3178 = vmatpush.bf16.msra.mxu1 %v4696_v63 }
 0x2ec   : > { %v2844_v21 = vpop.f32.mrf.mxu3 }
 0x2ed   : > { %v2818_v57 = vpop.f32.mrf.mxu2 }
 0x2ee   : > { %v2790_v3 = vpop.f32.mrf.mxu1 }
 0x2ef   : > { %v2791_v29 = vadd.f32 %v2790_v3, %v2762_v43  ;;  %v2764_v30 = vpop.f32.mrf.mxu0  ;;  %v2972_v43 = vperm.slane %v4735_v56, 4 }
 0x2f1   : > { %v5794_v35 = vadd.f32 %v5741_v17, %v2791_v29 }
 0x2f4   : > { %v2846_v55 = vpop.f32.mrf.mxu3 }
 0x2f5   : > { %v2847_v38 = vadd.f32 %v2846_v55, %v2818_v57  ;;  %v2820_v41 = vpop.f32.mrf.mxu2  ;;  %v2976_v55 = vperm.slane %v4735_v56, 5 }
 0x2f6   : > { %v2792_v46 = vpop.f32.mrf.mxu1 }
 0x2f7   : > { %v5798_v48 = vadd.f32 %v5746_v8, %v2847_v38  ;;  %v2793_v53 = vadd.f32 %v2792_v46, %v2764_v30  ;;  %v2767_v50 = vpop.f32.mrf.mxu0  ;;  %v4687_v30 = vld [vmem:[%s5790_s11 + $0x8] sm:$0xff] }
 0x2f8   : > { %v4736_v46 = vld [vmem:[%s4920_s22 + $0x8] sm:$0x3f]  ;;  %v4686_v50 = vld [vmem:[%s5790_s11] sm:$0xff] }
 0x2f9   : > { %v5801_v49 = vadd.f32 %v5749_v25, %v2793_v53  ;;  %v4691_v25 = vld [vmem:[%s5790_s11 + $0x28] sm:$0xff]  ;;  %v2973_v53 = vperm.slane %v4736_v46, 4  ;;  %v2977_v19 = vperm.slane %v4736_v46, 5 }
 0x2fa   : > { %3162 = vmatpush.bf16.msra.mxu0 %v4691_v25 }
 0x2fc   : > { %v2848_v17 = vpop.f32.mrf.mxu3 }
 0x2fd   : > { %v2849_v47 = vadd.f32 %v2848_v17, %v2820_v41  ;;  %v2823_v33 = vpop.f32.mrf.mxu2 }
 0x2fe   : > { %v2795_v44 = vpop.f32.mrf.mxu1  ;;  %3163 = vmatpush.bf16.msra.mxu0 %v4690_v7  ;;  %v4695_v33 = vld [vmem:[%s5790_s11 + $0x48] sm:$0xff] }
 0x2ff   : > { %v5806_v52 = vadd.f32 %v5754_v27, %v2849_v47  ;;  %v2768_v59 = vpop.f32.mrf.mxu0  ;;  %3179 = vmatpush.bf16.msra.mxu1 %v4695_v33 }
 0x302   : > { %3164 = vmatpush.bf16.msra.mxu0 %v4689_v32 }
 0x304   : > { %v2851_v8 = vpop.f32.mrf.mxu3 }
 0x305   : > { %v2824_v0 = vpop.f32.mrf.mxu2 }
 0x306   : > { %v2796_v4 = vpop.f32.mrf.mxu1  ;;  %3165 = vmatpush.bf16.msra.mxu0 %v4688_v28 }
 0x307   : > { %v2863_v1 = vpop.f32.mrf.mxu0 }
 0x30a   : > { %3166 = vmatpush.bf16.msra.mxu0 %v4687_v30 }
 0x30c   : > { %v2852_v18 = vpop.f32.mrf.mxu3 }
 0x30d   : > { %v2919_v24 = vpop.f32.mrf.mxu2 }
 0x30e   : > { %v2891_v23 = vpop.f32.mrf.mxu1  ;;  %3167 = vmatpush.bf16.msra.mxu0 %v4686_v50 }
 0x30f   : > { %v2864_v62 = vpop.f32.mrf.mxu0 }
 0x314   : > { %v2947_v15 = vpop.f32.mrf.mxu3 }
 0x315   : > { %v2920_v27 = vpop.f32.mrf.mxu2 }
 0x316   : > { %v2892_v10 = vpop.f32.mrf.mxu1 }
 0x317   : > { %v2866_v6 = vpop.f32.mrf.mxu0 }
 0x31c   : > { %v2948_v39 = vpop.f32.mrf.mxu3 }
 0x31d   : > { %v2922_v40 = vpop.f32.mrf.mxu2 }
 0x31e   : > { %v2894_v31 = vpop.f32.mrf.mxu1 }
 0x31f   : > { %v2867_v51 = vpop.f32.mrf.mxu0 }
 0x324   : > { %v2950_v11 = vpop.f32.mrf.mxu3 }
 0x325   : > { %v2923_v34 = vpop.f32.mrf.mxu2 }
 0x326   : > { %v2895_v45 = vpop.f32.mrf.mxu1 }
 0x327   : > { %v2869_v13 = vpop.f32.mrf.mxu0 }
 0x32c   : > { %v2951_v2 = vpop.f32.mrf.mxu3 }
 0x32d   : > { %v2925_v20 = vpop.f32.mrf.mxu2 }
 0x32e   : > { %v2897_v58 = vpop.f32.mrf.mxu1 }
 0x32f   : > { %v2898_v22 = vadd.f32 %v2897_v58, %v2869_v13  ;;  %v2871_v42 = vpop.f32.mrf.mxu0 }
 0x331   : > { %v2970_v37 = vadd.f32 %v5771_v16, %v2898_v22 }
 0x333   : > { %v2974_v36 = vmul.f32 %v2972_v43, %v2970_v37 }
 0x334   : > { %v2953_v21 = vpop.f32.mrf.mxu3 }
 0x335   : > { %v2954_v57 = vadd.f32 %v2953_v21, %v2925_v20  ;;  %v2927_v3 = vpop.f32.mrf.mxu2  ;;  %v2978_v17 = vadd.f32 %v2976_v55, %v2974_v36 }
 0x336   : > { %v2899_v29 = vpop.f32.mrf.mxu1 }
 0x337   : > { %v2900_v61 = vadd.f32 %v2899_v29, %v2871_v42  ;;  %v2874_v38 = vpop.f32.mrf.mxu0  ;;  %v2971_v41 = vadd.f32 %v5774_v9, %v2954_v57  ;;  %v2980_v25 = vmax.f32 %v2978_v17, 0.0 }
 0x339   : > { %v2986_v16 = vadd.f32 %v5777_v14, %v2900_v61  ;;  %v2975_v44 = vmul.f32 %v2973_v53, %v2971_v41  ;;  %v4694_v14 = vld [vmem:[%s5790_s11 + $0x40] sm:$0xff] }
 0x33a   : > { %3180 = vmatpush.bf16.msra.mxu1 %v4694_v14 }
 0x33b   : > { %v2988_v12 = vmul.f32 %v2986_v16, %v2972_v43  ;;  %v2979_v18 = vadd.f32 %v2977_v19, %v2975_v44 }
 0x33c   : > { %v2955_v47 = vpop.f32.mrf.mxu3 }
 0x33d   : > { %v2990_v59 = vadd.f32 %v2988_v12, %v2976_v55  ;;  %v2956_v8 = vadd.f32 %v2955_v47, %v2927_v3  ;;  %v2930_v0 = vpop.f32.mrf.mxu2  ;;  %v2981_v27 = vmax.f32 %v2979_v18, 0.0  ;;  %v4728_v12 = vld [vmem:[%s366_s30] ss:$0 sm:$0xff] }
 0x33e   : > { %v2902_v4 = vpop.f32.mrf.mxu1 }
 0x33f   : > { %v2992_v9 = vmax.f32 %v2990_v59, 0.0  ;;  %v2987_v1 = vadd.f32 %v5784_v26, %v2956_v8  ;;  %v2875_v60 = vpop.f32.mrf.mxu0 }
 0x341   : > { %v2994_v24 = vadd.f32 %v2992_v9, %v2980_v25  ;;  %v2989_v23 = vmul.f32 %v2987_v1, %v2973_v53 }
 0x343   : > { %v2991_v62 = vadd.f32 %v2989_v23, %v2977_v19 }
 0x344   : > { %v2958_v15 = vpop.f32.mrf.mxu3 }
 0x345   : > { %v2993_v10 = vmax.f32 %v2991_v62, 0.0  ;;  %v2931_v6 = vpop.f32.mrf.mxu2 }
 0x346   : > { %v2903_v7 = vpop.f32.mrf.mxu1 }
 0x347   : > { %v2995_v54 = vadd.f32 %v2993_v10, %v2981_v27  ;;  %v2904_v39 = vadd.f32 %v2903_v7, %v2875_v60  ;;  %v2878_v40 = vpop.f32.mrf.mxu0 }
 0x349   : > { %v3000_v31 = vadd.f32 %v5794_v35, %v2904_v39 }
 0x34b   : > { %v3002_v51 = vmul.f32 %v3000_v31, %v2972_v43 }
 0x34c   : > { %v2959_v32 = vpop.f32.mrf.mxu3 }
 0x34d   : > { %v3004_v26 = vadd.f32 %v3002_v51, %v2976_v55  ;;  %v2960_v11 = vadd.f32 %v2959_v32, %v2931_v6  ;;  %v2934_v34 = vpop.f32.mrf.mxu2 }
 0x34e   : > { %v2906_v45 = vpop.f32.mrf.mxu1 }
 0x34f   : > { %v3006_v13 = vmax.f32 %v3004_v26, 0.0  ;;  %v3001_v5 = vadd.f32 %v5798_v48, %v2960_v11  ;;  %v2907_v28 = vadd.f32 %v2906_v45, %v2878_v40  ;;  %v2880_v2 = vpop.f32.mrf.mxu0 }
 0x351   : > { %v3008_v20 = vadd.f32 %v3006_v13, %v2994_v24  ;;  %v3003_v58 = vmul.f32 %v3001_v5, %v2973_v53  ;;  %v3014_v22 = vadd.f32 %v5801_v49, %v2907_v28 }
 0x353   : > { %v3005_v42 = vadd.f32 %v3003_v58, %v2977_v19  ;;  %v3016_v63 = vmul.f32 %v3014_v22, %v2972_v43 }
 0x354   : > { %v2962_v37 = vpop.f32.mrf.mxu3 }
 0x355   : > { %v3007_v56 = vmax.f32 %v3005_v42, 0.0  ;;  %v3018_v35 = vadd.f32 %v3016_v63, %v2976_v55  ;;  %v2963_v21 = vadd.f32 %v2962_v37, %v2934_v34  ;;  %v2936_v57 = vpop.f32.mrf.mxu2 }
 0x356   : > { %v2908_v3 = vpop.f32.mrf.mxu1 }
 0x357   : > { %v3009_v29 = vadd.f32 %v3007_v56, %v2995_v54  ;;  %v3020_v30 = vmax.f32 %v3018_v35, 0.0  ;;  %v3015_v36 = vadd.f32 %v5806_v52, %v2963_v21 }
 0x359   : > { %v3022_v48 = vadd.f32 %v3020_v30, %v3008_v20  ;;  %v3017_v61 = vmul.f32 %v3015_v36, %v2973_v53 }
 0x35b   : > { %v3024_v38 = vmul.f32 0.25, %v3022_v48  ;;  %v3019_v41 = vadd.f32 %v3017_v61, %v2977_v19 }
 0x35c   : > { %v2964_v46 = vpop.f32.mrf.mxu3 }
 0x35d   : > { %v3026_v16 = vpack.c.bf16 %v3024_v38, %v3024_v38  ;;  %v3021_v49 = vmax.f32 %v3019_v41, 0.0 }
 0x35f   : > { %v3023_v50 = vadd.f32 %v3021_v49, %v3009_v29  ;;  %3168 = vmatmul.bf16.vlgmr.msra.gmra.mxu0 %v3026_v16 }
 0x361   : > { %v3025_v43 = vmul.f32 0.25, %v3023_v50 }
 0x363   : > { %v3027_v17 = vpack.c.bf16 %v3025_v43, %v3025_v43 }
 0x365   : > { %3181 = vmatmul.bf16.vlgmr.msra.gmra.mxu1 %v3027_v17 }
 0x3dc   : > { %v3169_v55 = vpop.f32.mrf.mxu0 }
 0x3dd   : > { %v3170_v47 = vadd.f32 %v4728_v12, %v3169_v55 }
 0x3e2   : > { %v3182_v52 = vpop.f32.mrf.mxu1 }
 0x3e3   : > { %v3183_v33 = vadd.f32 %v3182_v52, %v3170_v47 }
 0x3e4   : > { %v3171_v53 = vpop.f32.mrf.mxu0 }
 0x3e5   : > { %3186 = vmax.xlane.f32.xlu0 %v3183_v33 }
 0x3ea   : > { %v3184_v44 = vpop.f32.mrf.mxu1 }
 0x458   : > { %v3187_v19 = vpop.xlane.xlu0 %3186 }
 0x459   : > { %v3188_v59 = vsub.f32 %v3183_v33, %v3187_v19 }
 0x45b   : > { %v3189_v8 = vmul.f32 1.442695, %v3188_v59 }
 0x45d   : > { %4729 = vpow2.f32 %v3189_v8 }
 0x463   : > { %v4730_v0 = vpop.eup %4729 }
 0x464   : > { %3191 = vadd.xlane.f32.xlu1 %v4730_v0 }
 0x4d7   : > { %v3192_v4 = vpop.xlane.xlu1 %3191 }
 0x4d8   : > { %4731 = vrcp.f32 %v3192_v4  ;;  %v3204_v60 = vand.u32 2147483648, %v3192_v4  ;;  %v3202_v18 = vand.u32 2147483647, %v3192_v4  ;;  %vm3198_vm1 = vweird.f32 %v3192_v4 }
 0x4da   : > { %v3205_v23 = vor.u32 1.1754944e-38, %v3204_v60  ;;  %vm3203_vm3 = vcmp.eq.f32.partialorder %v3202_v18, 8.507059e+37 }
 0x4de   : > { %v4732_v25 = vpop.eup %4731 }
 0x4df   : > { %v3194_v9 = vmul.f32 %v4732_v25, %v3192_v4  ;;  %vm3199_vm0 = vweird.f32 %v4732_v25 }
 0x4e0   : > { %vm3200_vm2 = vmor %vm3198_vm1, %vm3199_vm0 }
 0x4e1   : > { %v3195_v1 = vsub.f32 1.0, %v3194_v9 }
 0x4e3   : > { %v3196_v14 = vmul.f32 %v4732_v25, %v3195_v1 }
 0x4e5   : > { %v3197_v24 = vadd.f32 %v4732_v25, %v3196_v14 }
 0x4e7   : > { %v3201_v62 = vsel %vm3200_vm2, %v4732_v25, %v3197_v24 }
 0x4e8   : > { %v3206_v15 = vsel %vm3203_vm3, %v3205_v23, %v3201_v62 }
 0x4e9   : > { %v3207_v27 = vmul.f32 %v4730_v0, %v3206_v15 }
 0x4eb   : > { %3208 = vst [vmem:[%s370_s17] sm:$0xff] %v3207_v27 }
 0x4ec PF: > { %s17_s24 = sadd.s32 1, %s4743_s24  }
 0x4ed   : > { %p14_p4 = scmp.ge.s32.totalorder %s17_s24, 16  }
 0x4ef   :  { %16 = sbr.rel (!%p14_p4) target bundleno = 1 (0x1), region = 93 }

</bundles_post_ra>
